<compile_context>
chip_gen: v6e
topology: v6e:2x2x1
jax: 0.10.0
libtpu: 0.0.40
codegen_flags: <defaults>
</compile_context>

<pallas_src>
import math
from functools import partial

import jax
import jax.numpy as jnp
from jax import lax
from jax.experimental import pallas as pl
from jax.experimental.pallas import tpu as pltpu

# ------------------------------ config (small synthetic sizes) ------------------------------
BATCH = 2
SUBWORD_LEN = 12
SEQ_LEN = 8            # word-level sequence length
VOCAB = 64
EMB_DIM = 32           # "transformer" output dim
HIDDEN = 32            # config.hidden_dim
LABEL_SIZE = 5         # NER label set size
REL_LABEL_NUM = 4      # relation label set size
NUM_SPANS = 12
NUM_REL = 6
NUM_WIDTH_EMB = 32     # num_width_embeddings
WIDTH_EMB_DIM = 64     # span_width_embedding_dim
SPANS_PER_WORD = 0.6
NER_NEG_ID = 0
RE_NEG_ID = 0

PAD_N = 128            # lane-dense padding for the tiny label projections


# ------------------------------ Pallas kernels ------------------------------
def _linear_kernel(x_ref, w_ref, b_ref, o_ref, *, activation):
    # bf16 operands on the MXU, f32 accumulation; elementwise in f32.
    acc = jnp.dot(x_ref[...].astype(jnp.bfloat16), w_ref[...],
                  preferred_element_type=jnp.float32) + b_ref[...]
    if activation == "relu":
        acc = jnp.maximum(acc, 0.0)
    elif activation == "tanh":
        acc = jnp.tanh(acc)
    o_ref[...] = acc.astype(o_ref.dtype)


def pallas_linear(x, w_bf16, b_row, activation=None, tile_m=512):
    """x: (M, K) f32, w: (K, N) bf16, b: (1, N) f32 -> (M, N) f32. Row-tiled over M."""
    M, K = x.shape
    K2, N = w_bf16.shape
    assert K == K2
    tm = M if M <= tile_m else tile_m   # production sizes get M-tiling (v7x VMEM headroom + 2-TC sharding)
    return pl.pallas_call(
        partial(_linear_kernel, activation=activation),
        out_shape=jax.ShapeDtypeStruct((M, N), jnp.float32),
        grid=(pl.cdiv(M, tm),),
        in_specs=[pl.BlockSpec((tm, K), lambda i: (i, 0)),
                  pl.BlockSpec((K, N), lambda i: (0, 0)),
                  pl.BlockSpec((1, N), lambda i: (0, 0))],
        out_specs=pl.BlockSpec((tm, N), lambda i: (i, 0)),
        compiler_params=pltpu.CompilerParams(dimension_semantics=("parallel",)),
    )(x, w_bf16, b_row)


def _bilstm_dir_kernel(x_ref, wih_ref, whh_ref, b_ref, len_ref, o_ref):
    """One LSTM direction. x_ref: (T, B, D) time-major, o_ref: (T, B, H2).
    Weights stay resident in VMEM for the whole recurrence; gates never hit HBM."""
    T, B, D = x_ref.shape
    H2 = whh_ref.shape[0]
    wih = wih_ref[...]          # (D, 4H2) bf16
    whh = whh_ref[...]          # (H2, 4H2) bf16
    bias = b_ref[...]           # (1, 4H2) f32  (b_ih + b_hh)
    lens = len_ref[...]         # (B, 1) i32

    def step(t, carry):
        h, c = carry
        x_t = x_ref[t].astype(jnp.bfloat16)                                   # (B, D)
        g = (jnp.dot(x_t, wih, preferred_element_type=jnp.float32) +
             jnp.dot(h.astype(jnp.bfloat16), whh, preferred_element_type=jnp.float32) +
             bias)                                                            # (B, 4H2) f32
        i = 1.0 / (1.0 + jnp.exp(-g[:, 0 * H2:1 * H2]))
        f = 1.0 / (1.0 + jnp.exp(-g[:, 1 * H2:2 * H2]))
        gg = jnp.tanh(g[:, 2 * H2:3 * H2])
        o = 1.0 / (1.0 + jnp.exp(-g[:, 3 * H2:4 * H2]))
        c_new = f * c + i * gg
        h_new = o * jnp.tanh(c_new)
        valid = t < lens                                                      # (B, 1) bool
        o_ref[t] = jnp.where(valid, h_new, 0.0)                               # padded steps -> 0
        return (jnp.where(valid, h_new, h), jnp.where(valid, c_new, c))

    h0 = jnp.zeros((B, H2), jnp.float32)
    c0 = jnp.zeros((B, H2), jnp.float32)
    lax.fori_loop(0, T, step, (h0, c0), unroll=True)


def _att_span_head_kernel(word_rep_ref, inspan_ref, span_mask_ref, ep_ref,
                          att_w_ref, att_b_ref,
                          ff1_w_ref, ff1_b_ref, ff2_w_ref, ff2_b_ref,
                          proj_w_ref, proj_b_ref,
                          span_emb_ref, logits_ref, prob_ref):
    """Fused self-attentive span extractor + span classifier head for one batch element."""
    wr = word_rep_ref[...]                                                    # (T, D) f32
    # Attention scores: VPU broadcast-multiply + lane reduction (no N=1 MXU matmul).
    att_col = jnp.sum(wr * att_w_ref[...], axis=-1, keepdims=True) + att_b_ref[...]   # (T, 1)
    m = jnp.max(att_col, axis=0, keepdims=True)                               # global max (stable)
    e_col = jnp.exp(att_col - m)                                              # (T, 1) f32
    # softmax(masked) @ word_rep  ==  (inspan @ (e * wr)) / (inspan @ e)
    inspan = inspan_ref[...].astype(jnp.bfloat16)                             # (NS, T) 0/1
    numer = jnp.dot(inspan, (e_col * wr).astype(jnp.bfloat16),
                    preferred_element_type=jnp.float32)                       # (NS, D)
    denom = jnp.dot(inspan, e_col.astype(jnp.bfloat16),
                    preferred_element_type=jnp.float32)                       # (NS, 1)
    denom = jnp.maximum(denom, 1e-30)
    pooled = numer * pl.reciprocal(denom, approx=True)                        # (NS, D)
    att_emb = pooled * span_mask_ref[...]                                     # (NS, D)

    span_emb = jnp.concatenate([ep_ref[...], att_emb], axis=-1)               # (NS, SD)
    span_emb_ref[...] = span_emb

    # span classifier: ff1 -> ff2 -> (lane-padded) label projection -> softmax, all in VMEM
    h = jnp.dot(span_emb.astype(jnp.bfloat16), ff1_w_ref[...],
                preferred_element_type=jnp.float32) + ff1_b_ref[...]
    h = jnp.maximum(h, 0.0)
    h = jnp.dot(h.astype(jnp.bfloat16), ff2_w_ref[...],
                preferred_element_type=jnp.float32) + ff2_b_ref[...]
    h = jnp.maximum(h, 0.0)
    logits = jnp.dot(h.astype(jnp.bfloat16), proj_w_ref[...],
                     preferred_element_type=jnp.float32) + proj_b_ref[...]    # (NS, 128), pad cols = -1e30
    logits_ref[...] = logits
    lm = jnp.max(logits, axis=-1, keepdims=True)
    le = jnp.exp(logits - lm)
    ls = jnp.sum(le, axis=-1, keepdims=True)
    prob_ref[...] = le * pl.reciprocal(ls, approx=True)


def _pair_head_kernel(sp_ref, oh_p_ref, oh_c_ref, dist_ref,
                      red_w_ref, red_b_ref,
                      ff1_w_ref, ff1_b_ref, ff2_w_ref, ff2_b_ref,
                      proj_w_ref, proj_b_ref,
                      logits_ref, prob_ref):
    """Fused SpanPairPairedLayer + relation label projection for one batch element.
    Parent/child gathers are expressed as one-hot matmuls (MXU), no in-kernel gather."""
    red = jnp.dot(sp_ref[...].astype(jnp.bfloat16), red_w_ref[...],
                  preferred_element_type=jnp.float32) + red_b_ref[...]        # (k, H)
    red = jnp.maximum(red, 0.0)
    red_bf = red.astype(jnp.bfloat16)
    p_emb = jnp.dot(oh_p_ref[...], red_bf, preferred_element_type=jnp.float32)  # (KK, H)
    c_emb = jnp.dot(oh_c_ref[...], red_bf, preferred_element_type=jnp.float32)  # (KK, H)
    pair_repr = jnp.concatenate([p_emb, c_emb, p_emb * c_emb, dist_ref[...]], axis=-1)  # (KK, PR)

    h = jnp.dot(pair_repr.astype(jnp.bfloat16), ff1_w_ref[...],
                preferred_element_type=jnp.float32) + ff1_b_ref[...]
    h = jnp.maximum(h, 0.0)
    h = jnp.dot(h.astype(jnp.bfloat16), ff2_w_ref[...],
                preferred_element_type=jnp.float32) + ff2_b_ref[...]
    h = jnp.maximum(h, 0.0)
    logits = jnp.dot(h.astype(jnp.bfloat16), proj_w_ref[...],
                     preferred_element_type=jnp.float32) + proj_b_ref[...]    # (KK, 128)
    logits_ref[...] = logits
    lm = jnp.max(logits, axis=-1, keepdims=True)
    le = jnp.exp(logits - lm)
    ls = jnp.sum(le, axis=-1, keepdims=True)
    prob_ref[...] = le * pl.reciprocal(ls, approx=True)


# ------------------------------ kernel wrappers ------------------------------
def bilstm(kp, x, seq_lens):
    """BiLSTM with HIDDEN//2 units per direction; padded steps zeroed (pack/pad semantics)."""
    B, T, D = x.shape
    H2 = HIDDEN // 2
    t_idx = jnp.arange(T)[None, :]
    rev_idx = jnp.where(t_idx < seq_lens[:, None], seq_lens[:, None] - 1 - t_idx, t_idx)
    x_rev = jnp.take_along_axis(x, rev_idx[:, :, None], axis=1)
    # time-major so the kernel can index the time axis with ref[t]
    x2 = jnp.stack([jnp.transpose(x, (1, 0, 2)), jnp.transpose(x_rev, (1, 0, 2))], axis=0)  # (2,T,B,D)
    lens_col = seq_lens.astype(jnp.int32).reshape(B, 1)

    out = pl.pallas_call(
        _bilstm_dir_kernel,
        out_shape=jax.ShapeDtypeStruct((2, T, B, H2), jnp.float32),
        grid=(2,),   # two directions; independent blocks -> can shard across v7x's 2 TCs
        in_specs=[pl.BlockSpec((None, T, B, D), lambda d: (d, 0, 0, 0)),
                  pl.BlockSpec((None, D, 4 * H2), lambda d: (d, 0, 0)),
                  pl.BlockSpec((None, H2, 4 * H2), lambda d: (d, 0, 0)),
                  pl.BlockSpec((None, 1, 4 * H2), lambda d: (d, 0, 0)),
                  pl.BlockSpec((B, 1), lambda d: (0, 0))],
        out_specs=pl.BlockSpec((None, T, B, H2), lambda d: (d, 0, 0, 0)),
        compiler_params=pltpu.CompilerParams(dimension_semantics=("parallel",)),
    )(x2, kp["lstm_wih2"], kp["lstm_whh2"], kp["lstm_bias2"], lens_col)

    out_f = jnp.transpose(out[0], (1, 0, 2))
    out_b = jnp.take_along_axis(jnp.transpose(out[1], (1, 0, 2)), rev_idx[:, :, None], axis=1)
    return jnp.concatenate([out_f, out_b], axis=-1)


def attentive_and_span_head(kp, word_rep, inspan, span_mask_col, ep_span_emb):
    B, T, D = word_rep.shape
    NS = inspan.shape[1]
    EP = ep_span_emb.shape[-1]
    SD = EP + D
    data3 = lambda b: (b, 0, 0)
    w2 = lambda b: (0, 0)
    return pl.pallas_call(
        _att_span_head_kernel,
        out_shape=(jax.ShapeDtypeStruct((B, NS, SD), jnp.float32),
                   jax.ShapeDtypeStruct((B, NS, PAD_N), jnp.float32),
                   jax.ShapeDtypeStruct((B, NS, PAD_N), jnp.float32)),
        grid=(B,),
        in_specs=[pl.BlockSpec((None, T, D), data3),
                  pl.BlockSpec((None, NS, T), data3),
                  pl.BlockSpec((None, NS, 1), data3),
                  pl.BlockSpec((None, NS, EP), data3),
                  pl.BlockSpec(kp["att_w_row"].shape, w2),
                  pl.BlockSpec(kp["att_b_11"].shape, w2),
                  pl.BlockSpec(kp["span_ff1_w"].shape, w2),
                  pl.BlockSpec(kp["span_ff1_b"].shape, w2),
                  pl.BlockSpec(kp["span_ff2_w"].shape, w2),
                  pl.BlockSpec(kp["span_ff2_b"].shape, w2),
                  pl.BlockSpec(kp["span_proj_w_pad"].shape, w2),
                  pl.BlockSpec(kp["span_proj_b_pad"].shape, w2)],
        out_specs=(pl.BlockSpec((None, NS, SD), data3),
                   pl.BlockSpec((None, NS, PAD_N), data3),
                   pl.BlockSpec((None, NS, PAD_N), data3)),
        compiler_params=pltpu.CompilerParams(dimension_semantics=("parallel",)),
    )(word_rep, inspan, span_mask_col, ep_span_emb,
      kp["att_w_row"], kp["att_b_11"],
      kp["span_ff1_w"], kp["span_ff1_b"], kp["span_ff2_w"], kp["span_ff2_b"],
      kp["span_proj_w_pad"], kp["span_proj_b_pad"])


def pair_head(kp, sp_sel, onehot_p, onehot_c, dist_emb):
    B, k, SD = sp_sel.shape
    KK = onehot_p.shape[1]
    W = dist_emb.shape[-1]
    data3 = lambda b: (b, 0, 0)
    w2 = lambda b: (0, 0)
    return pl.pallas_call(
        _pair_head_kernel,
        out_shape=(jax.ShapeDtypeStruct((B, KK, PAD_N), jnp.float32),
                   jax.ShapeDtypeStruct((B, KK, PAD_N), jnp.float32)),
        grid=(B,),
        in_specs=[pl.BlockSpec((None, k, SD), data3),
                  pl.BlockSpec((None, KK, k), data3),
                  pl.BlockSpec((None, KK, k), data3),
                  pl.BlockSpec((None, KK, W), data3),
                  pl.BlockSpec(kp["dimred_w"].shape, w2),
                  pl.BlockSpec(kp["dimred_b"].shape, w2),
                  pl.BlockSpec(kp["pair_ff1_w"].shape, w2),
                  pl.BlockSpec(kp["pair_ff1_b"].shape, w2),
                  pl.BlockSpec(kp["pair_ff2_w"].shape, w2),
                  pl.BlockSpec(kp["pair_ff2_b"].shape, w2),
                  pl.BlockSpec(kp["pair_proj_w_pad"].shape, w2),
                  pl.BlockSpec(kp["pair_proj_b_pad"].shape, w2)],
        out_specs=(pl.BlockSpec((None, KK, PAD_N), data3),
                   pl.BlockSpec((None, KK, PAD_N), data3)),
        compiler_params=pltpu.CompilerParams(dimension_semantics=("parallel",)),
    )(sp_sel, onehot_p, onehot_c, dist_emb,
      kp["dimred_w"], kp["dimred_b"], kp["pair_ff1_w"], kp["pair_ff1_b"],
      kp["pair_ff2_w"], kp["pair_ff2_b"], kp["pair_proj_w_pad"], kp["pair_proj_b_pad"])


# ------------------------------ parameter init ------------------------------
def init_params(key):
    ks = iter(jax.random.split(key, 40))

    def dense(k, fan_in, fan_out):
        w = jax.random.normal(k, (fan_in, fan_out), jnp.float32) / math.sqrt(fan_in)
        b = jnp.zeros((fan_out,), jnp.float32)
        return w, b

    p = {}
    p["tok_emb"] = jax.random.normal(next(ks), (VOCAB, EMB_DIM), jnp.float32) * 0.02
    p["enc_w"], p["enc_b"] = dense(next(ks), EMB_DIM, EMB_DIM)

    H2 = HIDDEN // 2
    for d in ("fwd", "bwd"):
        p[f"lstm_{d}_wih"], p[f"lstm_{d}_bih"] = dense(next(ks), EMB_DIM, 4 * H2)
        p[f"lstm_{d}_whh"], _ = dense(next(ks), H2, 4 * H2)
        p[f"lstm_{d}_bhh"] = jnp.zeros((4 * H2,), jnp.float32)

    p["width_emb"] = jax.random.normal(next(ks), (NUM_WIDTH_EMB, WIDTH_EMB_DIM), jnp.float32) * 0.02
    p["att_w"], p["att_b"] = dense(next(ks), EMB_DIM, 1)

    span_in = 2 * HIDDEN + WIDTH_EMB_DIM + EMB_DIM  # endpoint + attentive dims
    p["span_ff1_w"], p["span_ff1_b"] = dense(next(ks), span_in, HIDDEN)
    p["span_ff2_w"], p["span_ff2_b"] = dense(next(ks), HIDDEN, HIDDEN)
    p["span_proj_w"], p["span_proj_b"] = dense(next(ks), HIDDEN, LABEL_SIZE)

    p["dimred_w"], p["dimred_b"] = dense(next(ks), span_in, HIDDEN)
    p["dist_emb"] = jax.random.normal(next(ks), (NUM_WIDTH_EMB, WIDTH_EMB_DIM), jnp.float32) * 0.02
    pair_in = HIDDEN * 3 + WIDTH_EMB_DIM
    p["pair_ff1_w"], p["pair_ff1_b"] = dense(next(ks), pair_in, HIDDEN // 4)
    p["pair_ff2_w"], p["pair_ff2_b"] = dense(next(ks), HIDDEN // 4, HIDDEN // 4)
    p["pair_proj_w"], p["pair_proj_b"] = dense(next(ks), HIDDEN // 4, REL_LABEL_NUM)
    return p


def prepare_kernel_params(p):
    """Pack weights for the fused kernels: bf16 MXU operands, f32 biases, lane-padded projections."""
    bf16 = jnp.bfloat16
    H2 = HIDDEN // 2
    kp = {}
    kp["enc_w"] = p["enc_w"].astype(bf16)
    kp["enc_b"] = p["enc_b"].reshape(1, -1)

    kp["lstm_wih2"] = jnp.stack([p["lstm_fwd_wih"], p["lstm_bwd_wih"]], axis=0).astype(bf16)
    kp["lstm_whh2"] = jnp.stack([p["lstm_fwd_whh"], p["lstm_bwd_whh"]], axis=0).astype(bf16)
    kp["lstm_bias2"] = jnp.stack(
        [(p["lstm_fwd_bih"] + p["lstm_fwd_bhh"]).reshape(1, 4 * H2),
         (p["lstm_bwd_bih"] + p["lstm_bwd_bhh"]).reshape(1, 4 * H2)], axis=0)

    kp["att_w_row"] = p["att_w"].reshape(1, EMB_DIM)   # f32: used on the VPU broadcast path
    kp["att_b_11"] = p["att_b"].reshape(1, 1)

    kp["span_ff1_w"] = p["span_ff1_w"].astype(bf16)
    kp["span_ff1_b"] = p["span_ff1_b"].reshape(1, -1)
    kp["span_ff2_w"] = p["span_ff2_w"].astype(bf16)
    kp["span_ff2_b"] = p["span_ff2_b"].reshape(1, -1)
    # lane-dense padded label projection; padded bias = -1e30 so the fused softmax ignores pad cols
    kp["span_proj_w_pad"] = jnp.zeros((HIDDEN, PAD_N), bf16).at[:, :LABEL_SIZE].set(
        p["span_proj_w"].astype(bf16))
    kp["span_proj_b_pad"] = jnp.full((1, PAD_N), -1e30, jnp.float32).at[0, :LABEL_SIZE].set(
        p["span_proj_b"])

    kp["dimred_w"] = p["dimred_w"].astype(bf16)
    kp["dimred_b"] = p["dimred_b"].reshape(1, -1)
    kp["pair_ff1_w"] = p["pair_ff1_w"].astype(bf16)
    kp["pair_ff1_b"] = p["pair_ff1_b"].reshape(1, -1)
    kp["pair_ff2_w"] = p["pair_ff2_w"].astype(bf16)
    kp["pair_ff2_b"] = p["pair_ff2_b"].reshape(1, -1)
    kp["pair_proj_w_pad"] = jnp.zeros((HIDDEN // 4, PAD_N), bf16).at[:, :REL_LABEL_NUM].set(
        p["pair_proj_w"].astype(bf16))
    kp["pair_proj_b_pad"] = jnp.full((1, PAD_N), -1e30, jnp.float32).at[0, :REL_LABEL_NUM].set(
        p["pair_proj_b"])
    return kp


# ------------------------------ glue submodules (plain JAX) ------------------------------
def bucket_values(distances, num_identity_buckets=4, num_total_buckets=NUM_WIDTH_EMB):
    d = distances.astype(jnp.float32)
    logspace = jnp.floor(jnp.log(jnp.maximum(d, 1.0)) / math.log(2)).astype(jnp.int32) + (num_identity_buckets - 1)
    use_id = distances <= num_identity_buckets
    combined = jnp.where(use_id, distances, logspace)
    return jnp.clip(combined, 0, num_total_buckets - 1)


def endpoint_span_extractor(params, encoding, span_ids, span_mask):
    starts = span_ids[:, :, 0]
    ends = span_ids[:, :, 1]
    start_emb = jnp.take_along_axis(encoding, starts[:, :, None], axis=1)
    end_emb = jnp.take_along_axis(encoding, ends[:, :, None], axis=1)
    widths = ends - starts
    w_emb = params["width_emb"][bucket_values(widths)]
    combined = jnp.concatenate([start_emb, end_emb, w_emb], axis=-1)
    return combined * span_mask[:, :, None]


def batched_index_select(target, indices):
    """target: (B, S, D), indices: (B, ...) int -> (B, ..., D)."""
    B = target.shape[0]
    D = target.shape[-1]
    idx = indices.reshape(B, -1)
    out = jnp.take_along_axis(target, idx[:, :, None], axis=1)
    return out.reshape(indices.shape + (D,))


def masked_ce_sum(logits, labels, mask):
    logp = jax.nn.log_softmax(logits, axis=-1)
    nll = -jnp.take_along_axis(logp, labels[..., None], axis=-1)[..., 0]
    return jnp.sum(nll * mask)


# ------------------------------ full forward ------------------------------
def transformers_crf_forward(params, subword_input_ids, attention_mask, orig_to_tok_index,
                             word_seq_lens, span_ids, span_mask, relation_indices,
                             relation_mask, span_ner_labels, relation_labels, is_train=True):
    kp = prepare_kernel_params(params)
    B, T = orig_to_tok_index.shape
    NS = span_ids.shape[1]

    # --- TransformersEmbedder ---
    # TODO(synk): pretrained HuggingFace transformer replaced by token embedding + one Pallas dense layer.
    sub_emb = params["tok_emb"][subword_input_ids] * attention_mask[:, :, None]
    SW = sub_emb.shape[1]
    sub_enc = pallas_linear(sub_emb.reshape(B * SW, EMB_DIM), kp["enc_w"], kp["enc_b"],
                            activation="tanh").reshape(B, SW, EMB_DIM)
    word_rep = jnp.take_along_axis(sub_enc, orig_to_tok_index[:, :, None], axis=1)  # (B, T, EMB)

    # --- BiLSTM contextual encoder (single fused Pallas kernel; dropout skipped: deterministic) ---
    contextual = bilstm(kp, word_rep, word_seq_lens)  # (B, T, HIDDEN)

    # --- span extractors + span classifier (fused kernel) ---
    ep_span_emb = endpoint_span_extractor(params, contextual, span_ids, span_mask)   # (B, NS, 128)
    starts = span_ids[:, :, 0]
    ends = span_ids[:, :, 1]
    t_pos = jnp.arange(T)[None, None, :]
    inspan = ((t_pos >= starts[:, :, None]) & (t_pos <= ends[:, :, None])).astype(jnp.float32)
    span_mask_col = span_mask[:, :, None]

    span_emb, span_logits_pad, span_prob_pad = attentive_and_span_head(
        kp, word_rep, inspan, span_mask_col, ep_span_emb)
    span_logits = span_logits_pad[:, :, :LABEL_SIZE]
    span_prob = span_prob_pad[:, :, :LABEL_SIZE]
    SD = span_emb.shape[-1]

    # prob_mask adds the penalty to ALL label columns (matches the PyTorch reference's broadcast).
    span_prob_masked = span_prob + ((1.0 - span_mask) * 1.0)[:, :, None]

    num_keep = max(min(int(math.floor(SPANS_PER_WORD * T)), NS), 1)
    neg_score = -span_prob_masked[:, :, NER_NEG_ID]
    top_vals, top_ind = lax.top_k(neg_score, num_keep)

    if is_train:
        top_v = top_vals[:, -1:]
        top_mask = span_prob[:, :, NER_NEG_ID] <= -top_v
        keep = jnp.logical_or(top_mask, span_ner_labels != NER_NEG_ID)
        span_mask_subset = span_mask * keep.astype(jnp.float32)
    else:
        span_mask_subset = span_mask

    span_len = span_ids[:, :, 1] - span_ids[:, :, 0] + 1
    span_loss = masked_ce_sum(span_logits, span_ner_labels, span_mask_subset)

    # --- select top spans for relation scoring ---
    top_ind = jnp.sort(top_ind, axis=-1)
    top_ind_mask = top_ind < jnp.sum(span_mask, axis=-1, keepdims=True).astype(jnp.int32)

    # external -> internal index converter (scatter). Unselected spans map to internal index 0;
    # correctness relies on span_pair_mask gating those pairs (matches reference behaviour).
    k = num_keep
    batch_idx = jnp.arange(B)[:, None]
    converter = jnp.zeros((B, NS), jnp.int32).at[batch_idx, top_ind].set(
        jnp.broadcast_to(jnp.arange(k, dtype=jnp.int32), (B, k)))

    # all pairs of selected spans
    parent = jnp.repeat(top_ind[:, :, None], k, axis=2)
    child = jnp.repeat(top_ind[:, None, :], k, axis=1)
    span_pairs = jnp.stack([parent, child], axis=-1).reshape(B, k * k, 2)
    pm = jnp.stack([jnp.repeat(top_ind_mask[:, :, None], k, axis=2),
                    jnp.repeat(top_ind_mask[:, None, :], k, axis=1)], axis=-1).reshape(B, k * k, 2)
    span_pair_mask = jnp.all(pm, axis=-1).astype(jnp.float32)

    span_pairs_internal = jnp.take_along_axis(converter, span_pairs.reshape(B, -1), axis=1).reshape(B, k * k, 2)

    span_pair_len = batched_index_select(span_len[:, :, None], span_pairs)[..., 0]
    span_pair_len = jnp.max(span_pair_len, axis=-1)  # kept for parity (used only at eval)

    span_emb_for_pair = batched_index_select(span_emb, top_ind)  # (B, k, SD)

    # --- SpanPairPairedLayer + relation projection (fused kernel; gathers via one-hot matmuls) ---
    p_idx = span_pairs_internal[:, :, 0]
    c_idx = span_pairs_internal[:, :, 1]
    onehot_p = jax.nn.one_hot(p_idx, k, dtype=jnp.float32).astype(jnp.bfloat16)   # (B, k*k, k)
    onehot_c = jax.nn.one_hot(c_idx, k, dtype=jnp.float32).astype(jnp.bfloat16)
    pair_dist_emb = params["dist_emb"][bucket_values(jnp.abs(p_idx - c_idx))]      # (B, k*k, W)

    span_pair_logits_pad, span_pair_prob_pad = pair_head(
        kp, span_emb_for_pair, onehot_p, onehot_c, pair_dist_emb)
    span_pair_logits = span_pair_logits_pad[:, :, :REL_LABEL_NUM]
    span_pair_prob = span_pair_prob_pad[:, :, :REL_LABEL_NUM]
    span_pair_pred = jnp.argmax(span_pair_prob, axis=-1)  # kept for parity (used only at eval)

    # --- label_span_pair: vectorized replacement of the python dict loop ---
    match = ((span_pairs[:, :, None, 0] == relation_indices[:, None, :, 0]) &
             (span_pairs[:, :, None, 1] == relation_indices[:, None, :, 1]) &
             (relation_mask[:, None, :] > 0))
    any_match = jnp.any(match, axis=-1)
    first = jnp.argmax(match, axis=-1)
    matched_labels = jnp.take_along_axis(relation_labels, first, axis=1)
    span_pair_labels = jnp.where(any_match, matched_labels, RE_NEG_ID)

    span_pair_loss = masked_ce_sum(span_pair_logits, span_pair_labels, span_pair_mask)

    # TODO(synk): eval branch (PrecisionRecallF1 stateful metrics) not implemented; train loss path only.
    return span_loss + span_pair_loss


# ------------------------------ main ------------------------------
if __name__ == "__main__":
    key = jax.random.PRNGKey(0)
    kp_, k1, k2, k3, k4, k5, k6, k7 = jax.random.split(key, 8)

    params = init_params(kp_)

    subword_input_ids = jax.random.randint(k1, (BATCH, SUBWORD_LEN), 0, VOCAB)
    attention_mask = jnp.ones((BATCH, SUBWORD_LEN), jnp.float32)
    orig_to_tok_index = jax.random.randint(k2, (BATCH, SEQ_LEN), 0, SUBWORD_LEN)
    word_seq_lens = jnp.array([SEQ_LEN, SEQ_LEN - 2], jnp.int32)

    starts = jax.random.randint(k3, (BATCH, NUM_SPANS), 0, SEQ_LEN)
    widths = jax.random.randint(k4, (BATCH, NUM_SPANS), 0, 3)
    ends = jnp.minimum(starts + widths, SEQ_LEN - 1)
    span_ids = jnp.stack([starts, ends], axis=-1)
    span_mask = (jnp.arange(NUM_SPANS)[None, :] <
                 jnp.array([NUM_SPANS, NUM_SPANS - 3])[:, None]).astype(jnp.float32)

    relation_indices = jax.random.randint(k5, (BATCH, NUM_REL, 2), 0, NUM_SPANS)
    relation_mask = jnp.ones((BATCH, NUM_REL), jnp.float32)
    span_ner_labels = jax.random.randint(k6, (BATCH, NUM_SPANS), 0, LABEL_SIZE)
    relation_labels = jax.random.randint(k7, (BATCH, NUM_REL), 0, REL_LABEL_NUM)

    fwd = jax.jit(transformers_crf_forward, static_argnames=("is_train",))
    loss = fwd(params, subword_input_ids, attention_mask, orig_to_tok_index,
               word_seq_lens, span_ids, span_mask, relation_indices, relation_mask,
               span_ner_labels, relation_labels, is_train=True)
    jax.block_until_ready(loss)
    assert jnp.isfinite(loss)
    print("KERNEL_OK")
</pallas_src>

<mosaic_0001>
module attributes {stable_mosaic.version = 11 : i64} {
  func.func @_linear_kernel(%arg0: i32, %arg1: memref<24x32xf32, #tpu.memory_space<vmem>>, %arg2: memref<32x32xbf16, #tpu.memory_space<vmem>>, %arg3: memref<1x32xf32, #tpu.memory_space<vmem>>, %arg4: memref<24x32xf32, #tpu.memory_space<vmem>>) attributes {dimension_semantics = [#tpu.dimension_semantics<parallel>], iteration_bounds = array<i64: 1>, scalar_prefetch = 0 : i64, scratch_operands = 0 : i64, tpu.core_type = #tpu.core_type<tc>, window_params = [{transform_indices = @transform_0, window_bounds = array<i64: 24, 32>}, {pipeline_mode = #tpu.pipeline_mode<synchronous>, transform_indices = @transform_1, window_bounds = array<i64: 32, 32>}, {pipeline_mode = #tpu.pipeline_mode<synchronous>, transform_indices = @transform_2, window_bounds = array<i64: 1, 32>}, {transform_indices = @transform_3, window_bounds = array<i64: 24, 32>}]} {
    %c0 = arith.constant 0 : index
    %c0_0 = arith.constant 0 : index
    %0 = vector.load %arg1[%c0, %c0_0] : memref<24x32xf32, #tpu.memory_space<vmem>>, vector<24x32xf32>
    %1 = arith.truncf %0 : vector<24x32xf32> to vector<24x32xbf16>
    %c0_1 = arith.constant 0 : index
    %c0_2 = arith.constant 0 : index
    %2 = vector.load %arg2[%c0_1, %c0_2] : memref<32x32xbf16, #tpu.memory_space<vmem>>, vector<32x32xbf16>
    %cst = arith.constant dense<0.000000e+00> : vector<24x32xf32>
    %3 = tpu.matmul %1, %2, %cst {dimension_numbers = #tpu.dot_dimension_numbers<[1], [0], [0], [1], [0, 0, 1, 1], [], []>} : vector<24x32xbf16>, vector<32x32xbf16>, vector<24x32xf32> -> vector<24x32xf32>
    %c0_3 = arith.constant 0 : index
    %c0_4 = arith.constant 0 : index
    %4 = vector.load %arg3[%c0_3, %c0_4] : memref<1x32xf32, #tpu.memory_space<vmem>>, vector<1x32xf32>
    %5 = vector.broadcast %4 : vector<1x32xf32> to vector<24x32xf32>
    %6 = arith.addf %3, %5 : vector<24x32xf32>
    %7 = math.tanh %6 : vector<24x32xf32>
    %c0_5 = arith.constant 0 : index
    %c0_6 = arith.constant 0 : index
    %8 = vector.load %arg4[%c0_5, %c0_6] : memref<24x32xf32, #tpu.memory_space<vmem>>, vector<24x32xf32>
    tpu.vector_store %arg4[%c0_5, %c0_6], %7 {strides = array<i32>} : memref<24x32xf32, #tpu.memory_space<vmem>>, vector<24x32xf32>,
    return
  }
  func.func @transform_0(%arg0: i32) -> (i32, i32) {
    %c0_i32 = arith.constant 0 : i32
    %c0_i32_0 = arith.constant 0 : i32
    return %arg0, %c0_i32 : i32, i32
  }
  func.func @transform_1(%arg0: i32) -> (i32, i32) {
    %c0_i32 = arith.constant 0 : i32
    %c0_i32_0 = arith.constant 0 : i32
    %c0_i32_1 = arith.constant 0 : i32
    return %c0_i32, %c0_i32_0 : i32, i32
  }
  func.func @transform_2(%arg0: i32) -> (i32, i32) {
    %c0_i32 = arith.constant 0 : i32
    %c0_i32_0 = arith.constant 0 : i32
    %c0_i32_1 = arith.constant 0 : i32
    return %c0_i32, %c0_i32_0 : i32, i32
  }
  func.func @transform_3(%arg0: i32) -> (i32, i32) {
    %c0_i32 = arith.constant 0 : i32
    %c0_i32_0 = arith.constant 0 : i32
    return %arg0, %c0_i32 : i32, i32
  }
}

module attributes {stable_mosaic.version = 11 : i64} {
  func.func @_bilstm_dir_kernel(%arg0: i32, %arg1: memref<1x8x2x32xf32, #tpu.memory_space<vmem>>, %arg2: memref<1x32x64xbf16, #tpu.memory_space<vmem>>, %arg3: memref<1x16x64xbf16, #tpu.memory_space<vmem>>, %arg4: memref<1x1x64xf32, #tpu.memory_space<vmem>>, %arg5: memref<2x1xi32, #tpu.memory_space<vmem>>, %arg6: memref<1x8x2x16xf32, #tpu.memory_space<vmem>>) attributes {dimension_semantics = [#tpu.dimension_semantics<parallel>], iteration_bounds = array<i64: 2>, scalar_prefetch = 0 : i64, scratch_operands = 0 : i64, tpu.core_type = #tpu.core_type<tc>, window_params = [{transform_indices = @transform_0, window_bounds = array<i64: 1, 8, 2, 32>}, {transform_indices = @transform_1, window_bounds = array<i64: 1, 32, 64>}, {transform_indices = @transform_2, window_bounds = array<i64: 1, 16, 64>}, {transform_indices = @transform_3, window_bounds = array<i64: 1, 1, 64>}, {pipeline_mode = #tpu.pipeline_mode<synchronous>, transform_indices = @transform_4, window_bounds = array<i64: 2, 1>}, {transform_indices = @transform_5, window_bounds = array<i64: 1, 8, 2, 16>}]} {
    %c0 = arith.constant 0 : index
    %c0_0 = arith.constant 0 : index
    %c0_1 = arith.constant 0 : index
    %0 = vector.load %arg2[%c0, %c0_0, %c0_1] : memref<1x32x64xbf16, #tpu.memory_space<vmem>>, vector<1x32x64xbf16>
    %1 = vector.shape_cast %0 : vector<1x32x64xbf16> to vector<32x64xbf16>
    %c0_2 = arith.constant 0 : index
    %c0_3 = arith.constant 0 : index
    %c0_4 = arith.constant 0 : index
    %2 = vector.load %arg3[%c0_2, %c0_3, %c0_4] : memref<1x16x64xbf16, #tpu.memory_space<vmem>>, vector<1x16x64xbf16>
    %3 = vector.shape_cast %2 : vector<1x16x64xbf16> to vector<16x64xbf16>
    %c0_5 = arith.constant 0 : index
    %c0_6 = arith.constant 0 : index
    %c0_7 = arith.constant 0 : index
    %4 = vector.load %arg4[%c0_5, %c0_6, %c0_7] : memref<1x1x64xf32, #tpu.memory_space<vmem>>, vector<1x1x64xf32>
    %5 = vector.shape_cast %4 : vector<1x1x64xf32> to vector<1x64xf32>
    %c0_8 = arith.constant 0 : index
    %c0_9 = arith.constant 0 : index
    %6 = vector.load %arg5[%c0_8, %c0_9] : memref<2x1xi32, #tpu.memory_space<vmem>>, vector<2x1xi32>
    %cst = arith.constant 0.000000e+00 : f32
    %7 = vector.broadcast %cst : f32 to vector<2x16xf32>
    %cst_10 = arith.constant 0.000000e+00 : f32
    %8 = vector.broadcast %cst_10 : f32 to vector<2x16xf32>
    %c0_i32 = arith.constant 0 : i32
    %c0_11 = arith.constant 0 : index
    %9 = arith.index_cast %c0_i32 : i32 to index
    %c0_12 = arith.constant 0 : index
    %c0_13 = arith.constant 0 : index
    %10 = vector.load %arg1[%c0_11, %9, %c0_12, %c0_13] : memref<1x8x2x32xf32, #tpu.memory_space<vmem>>, vector<1x1x2x32xf32>
    %11 = vector.shape_cast %10 : vector<1x1x2x32xf32> to vector<2x32xf32>
    %12 = arith.truncf %11 : vector<2x32xf32> to vector<2x32xbf16>
    %cst_14 = arith.constant dense<0.000000e+00> : vector<2x64xf32>
    %13 = tpu.matmul %12, %1, %cst_14 {dimension_numbers = #tpu.dot_dimension_numbers<[1], [0], [0], [1], [0, 0, 1, 1], [], []>} : vector<2x32xbf16>, vector<32x64xbf16>, vector<2x64xf32> -> vector<2x64xf32>
    %14 = arith.truncf %7 : vector<2x16xf32> to vector<2x16xbf16>
    %cst_15 = arith.constant dense<0.000000e+00> : vector<2x64xf32>
    %15 = tpu.matmul %14, %3, %cst_15 {dimension_numbers = #tpu.dot_dimension_numbers<[1], [0], [0], [1], [0, 0, 1, 1], [], []>} : vector<2x16xbf16>, vector<16x64xbf16>, vector<2x64xf32> -> vector<2x64xf32>
    %16 = arith.addf %13, %15 : vector<2x64xf32>
    %17 = vector.broadcast %5 : vector<1x64xf32> to vector<2x64xf32>
    %18 = arith.addf %16, %17 : vector<2x64xf32>
    %19 = vector.extract_strided_slice %18 {offsets = [0, 0], sizes = [2, 16], strides = [1, 1]} : vector<2x64xf32> to vector<2x16xf32>
    %cst_16 = arith.constant 0.000000e+00 : f32
    %20 = vector.broadcast %cst_16 : f32 to vector<2x16xf32>
    %21 = arith.subf %20, %19 : vector<2x16xf32>
    %22 = math.exp %21 : vector<2x16xf32>
    %cst_17 = arith.constant 1.000000e+00 : f32
    %23 = vector.broadcast %cst_17 : f32 to vector<2x16xf32>
    %24 = arith.addf %23, %22 : vector<2x16xf32>
    %cst_18 = arith.constant 1.000000e+00 : f32
    %25 = vector.broadcast %cst_18 : f32 to vector<2x16xf32>
    %26 = arith.divf %25, %24 : vector<2x16xf32>
    %27 = vector.extract_strided_slice %18 {offsets = [0, 16], sizes = [2, 16], strides = [1, 1]} : vector<2x64xf32> to vector<2x16xf32>
    %cst_19 = arith.constant 0.000000e+00 : f32
    %28 = vector.broadcast %cst_19 : f32 to vector<2x16xf32>
    %29 = arith.subf %28, %27 : vector<2x16xf32>
    %30 = math.exp %29 : vector<2x16xf32>
    %cst_20 = arith.constant 1.000000e+00 : f32
    %31 = vector.broadcast %cst_20 : f32 to vector<2x16xf32>
    %32 = arith.addf %31, %30 : vector<2x16xf32>
    %cst_21 = arith.constant 1.000000e+00 : f32
    %33 = vector.broadcast %cst_21 : f32 to vector<2x16xf32>
    %34 = arith.divf %33, %32 : vector<2x16xf32>
    %35 = vector.extract_strided_slice %18 {offsets = [0, 32], sizes = [2, 16], strides = [1, 1]} : vector<2x64xf32> to vector<2x16xf32>
    %36 = math.tanh %35 : vector<2x16xf32>
    %37 = vector.extract_strided_slice %18 {offsets = [0, 48], sizes = [2, 16], strides = [1, 1]} : vector<2x64xf32> to vector<2x16xf32>
    %cst_22 = arith.constant 0.000000e+00 : f32
    %38 = vector.broadcast %cst_22 : f32 to vector<2x16xf32>
    %39 = arith.subf %38, %37 : vector<2x16xf32>
    %40 = math.exp %39 : vector<2x16xf32>
    %cst_23 = arith.constant 1.000000e+00 : f32
    %41 = vector.broadcast %cst_23 : f32 to vector<2x16xf32>
    %42 = arith.addf %41, %40 : vector<2x16xf32>
    %cst_24 = arith.constant 1.000000e+00 : f32
    %43 = vector.broadcast %cst_24 : f32 to vector<2x16xf32>
    %44 = arith.divf %43, %42 : vector<2x16xf32>
    %45 = arith.mulf %34, %8 : vector<2x16xf32>
    %46 = arith.mulf %26, %36 : vector<2x16xf32>
    %47 = arith.addf %45, %46 : vector<2x16xf32>
    %48 = math.tanh %47 : vector<2x16xf32>
    %49 = arith.mulf %44, %48 : vector<2x16xf32>
    %50 = vector.broadcast %c0_i32 : i32 to vector<2x1xi32>
    %51 = arith.cmpi slt, %50, %6 : vector<2x1xi32>
    %cst_25 = arith.constant 0.000000e+00 : f32
    %52 = vector.shape_cast %51 : vector<2x1xi1> to vector<2x1xi1>
    %53 = vector.broadcast %52 : vector<2x1xi1> to vector<2x16xi1>
    %54 = vector.broadcast %cst_25 : f32 to vector<2x16xf32>
    %55 = arith.select %53, %49, %54 : vector<2x16xi1>, vector<2x16xf32>
    %c0_26 = arith.constant 0 : index
    %56 = arith.index_cast %c0_i32 : i32 to index
    %c0_27 = arith.constant 0 : index
    %c0_28 = arith.constant 0 : index
    %57 = vector.load %arg6[%c0_26, %56, %c0_27, %c0_28] : memref<1x8x2x16xf32, #tpu.memory_space<vmem>>, vector<1x1x2x16xf32>
    %58 = vector.shape_cast %57 : vector<1x1x2x16xf32> to vector<2x16xf32>
    %59 = vector.shape_cast %55 : vector<2x16xf32> to vector<1x1x2x16xf32>
    tpu.vector_store %arg6[%c0_26, %56, %c0_27, %c0_28], %59 {strides = array<i32>} : memref<1x8x2x16xf32, #tpu.memory_space<vmem>>, vector<1x1x2x16xf32>,
    %60 = vector.shape_cast %51 : vector<2x1xi1> to vector<2x1xi1>
    %61 = vector.broadcast %60 : vector<2x1xi1> to vector<2x16xi1>
    %62 = arith.select %61, %49, %7 : vector<2x16xi1>, vector<2x16xf32>
    %63 = vector.shape_cast %51 : vector<2x1xi1> to vector<2x1xi1>
    %64 = vector.broadcast %63 : vector<2x1xi1> to vector<2x16xi1>
    %65 = arith.select %64, %47, %8 : vector<2x16xi1>, vector<2x16xf32>
    %c1_i32 = arith.constant 1 : i32
    %c0_29 = arith.constant 0 : index
    %66 = arith.index_cast %c1_i32 : i32 to index
    %c0_30 = arith.constant 0 : index
    %c0_31 = arith.constant 0 : index
    %67 = vector.load %arg1[%c0_29, %66, %c0_30, %c0_31] : memref<1x8x2x32xf32, #tpu.memory_space<vmem>>, vector<1x1x2x32xf32>
    %68 = vector.shape_cast %67 : vector<1x1x2x32xf32> to vector<2x32xf32>
    %69 = arith.truncf %68 : vector<2x32xf32> to vector<2x32xbf16>
    %cst_32 = arith.constant dense<0.000000e+00> : vector<2x64xf32>
    %70 = tpu.matmul %69, %1, %cst_32 {dimension_numbers = #tpu.dot_dimension_numbers<[1], [0], [0], [1], [0, 0, 1, 1], [], []>} : vector<2x32xbf16>, vector<32x64xbf16>, vector<2x64xf32> -> vector<2x64xf32>
    %71 = arith.truncf %62 : vector<2x16xf32> to vector<2x16xbf16>
    %cst_33 = arith.constant dense<0.000000e+00> : vector<2x64xf32>
    %72 = tpu.matmul %71, %3, %cst_33 {dimension_numbers = #tpu.dot_dimension_numbers<[1], [0], [0], [1], [0, 0, 1, 1], [], []>} : vector<2x16xbf16>, vector<16x64xbf16>, vector<2x64xf32> -> vector<2x64xf32>
    %73 = arith.addf %70, %72 : vector<2x64xf32>
    %74 = vector.broadcast %5 : vector<1x64xf32> to vector<2x64xf32>
    %75 = arith.addf %73, %74 : vector<2x64xf32>
    %76 = vector.extract_strided_slice %75 {offsets = [0, 0], sizes = [2, 16], strides = [1, 1]} : vector<2x64xf32> to vector<2x16xf32>
    %cst_34 = arith.constant 0.000000e+00 : f32
    %77 = vector.broadcast %cst_34 : f32 to vector<2x16xf32>
    %78 = arith.subf %77, %76 : vector<2x16xf32>
    %79 = math.exp %78 : vector<2x16xf32>
    %cst_35 = arith.constant 1.000000e+00 : f32
    %80 = vector.broadcast %cst_35 : f32 to vector<2x16xf32>
    %81 = arith.addf %80, %79 : vector<2x16xf32>
    %cst_36 = arith.constant 1.000000e+00 : f32
    %82 = vector.broadcast %cst_36 : f32 to vector<2x16xf32>
    %83 = arith.divf %82, %81 : vector<2x16xf32>
    %84 = vector.extract_strided_slice %75 {offsets = [0, 16], sizes = [2, 16], strides = [1, 1]} : vector<2x64xf32> to vector<2x16xf32>
    %cst_37 = arith.constant 0.000000e+00 : f32
    %85 = vector.broadcast %cst_37 : f32 to vector<2x16xf32>
    %86 = arith.subf %85, %84 : vector<2x16xf32>
    %87 = math.exp %86 : vector<2x16xf32>
    %cst_38 = arith.constant 1.000000e+00 : f32
    %88 = vector.broadcast %cst_38 : f32 to vector<2x16xf32>
    %89 = arith.addf %88, %87 : vector<2x16xf32>
    %cst_39 = arith.constant 1.000000e+00 : f32
    %90 = vector.broadcast %cst_39 : f32 to vector<2x16xf32>
    %91 = arith.divf %90, %89 : vector<2x16xf32>
    %92 = vector.extract_strided_slice %75 {offsets = [0, 32], sizes = [2, 16], strides = [1, 1]} : vector<2x64xf32> to vector<2x16xf32>
    %93 = math.tanh %92 : vector<2x16xf32>
    %94 = vector.extract_strided_slice %75 {offsets = [0, 48], sizes = [2, 16], strides = [1, 1]} : vector<2x64xf32> to vector<2x16xf32>
    %cst_40 = arith.constant 0.000000e+00 : f32
    %95 = vector.broadcast %cst_40 : f32 to vector<2x16xf32>
    %96 = arith.subf %95, %94 : vector<2x16xf32>
    %97 = math.exp %96 : vector<2x16xf32>
    %cst_41 = arith.constant 1.000000e+00 : f32
    %98 = vector.broadcast %cst_41 : f32 to vector<2x16xf32>
    %99 = arith.addf %98, %97 : vector<2x16xf32>
    %cst_42 = arith.constant 1.000000e+00 : f32
    %100 = vector.broadcast %cst_42 : f32 to vector<2x16xf32>
    %101 = arith.divf %100, %99 : vector<2x16xf32>
    %102 = arith.mulf %91, %65 : vector<2x16xf32>
    %103 = arith.mulf %83, %93 : vector<2x16xf32>
    %104 = arith.addf %102, %103 : vector<2x16xf32>
    %105 = math.tanh %104 : vector<2x16xf32>
    %106 = arith.mulf %101, %105 : vector<2x16xf32>
    %107 = vector.broadcast %c1_i32 : i32 to vector<2x1xi32>
    %108 = arith.cmpi slt, %107, %6 : vector<2x1xi32>
    %cst_43 = arith.constant 0.000000e+00 : f32
    %109 = vector.shape_cast %108 : vector<2x1xi1> to vector<2x1xi1>
    %110 = vector.broadcast %109 : vector<2x1xi1> to vector<2x16xi1>
    %111 = vector.broadcast %cst_43 : f32 to vector<2x16xf32>
    %112 = arith.select %110, %106, %111 : vector<2x16xi1>, vector<2x16xf32>
    %c0_44 = arith.constant 0 : index
    %113 = arith.index_cast %c1_i32 : i32 to index
    %c0_45 = arith.constant 0 : index
    %c0_46 = arith.constant 0 : index
    %114 = vector.load %arg6[%c0_44, %113, %c0_45, %c0_46] : memref<1x8x2x16xf32, #tpu.memory_space<vmem>>, vector<1x1x2x16xf32>
    %115 = vector.shape_cast %114 : vector<1x1x2x16xf32> to vector<2x16xf32>
    %116 = vector.shape_cast %112 : vector<2x16xf32> to vector<1x1x2x16xf32>
    tpu.vector_store %arg6[%c0_44, %113, %c0_45, %c0_46], %116 {strides = array<i32>} : memref<1x8x2x16xf32, #tpu.memory_space<vmem>>, vector<1x1x2x16xf32>,
    %117 = vector.shape_cast %108 : vector<2x1xi1> to vector<2x1xi1>
    %118 = vector.broadcast %117 : vector<2x1xi1> to vector<2x16xi1>
    %119 = arith.select %118, %106, %62 : vector<2x16xi1>, vector<2x16xf32>
    %120 = vector.shape_cast %108 : vector<2x1xi1> to vector<2x1xi1>
    %121 = vector.broadcast %120 : vector<2x1xi1> to vector<2x16xi1>
    %122 = arith.select %121, %104, %65 : vector<2x16xi1>, vector<2x16xf32>
    %c2_i32 = arith.constant 2 : i32
    %c0_47 = arith.constant 0 : index
    %123 = arith.index_cast %c2_i32 : i32 to index
    %c0_48 = arith.constant 0 : index
    %c0_49 = arith.constant 0 : index
    %124 = vector.load %arg1[%c0_47, %123, %c0_48, %c0_49] : memref<1x8x2x32xf32, #tpu.memory_space<vmem>>, vector<1x1x2x32xf32>
    %125 = vector.shape_cast %124 : vector<1x1x2x32xf32> to vector<2x32xf32>
    %126 = arith.truncf %125 : vector<2x32xf32> to vector<2x32xbf16>
    %cst_50 = arith.constant dense<0.000000e+00> : vector<2x64xf32>
    %127 = tpu.matmul %126, %1, %cst_50 {dimension_numbers = #tpu.dot_dimension_numbers<[1], [0], [0], [1], [0, 0, 1, 1], [], []>} : vector<2x32xbf16>, vector<32x64xbf16>, vector<2x64xf32> -> vector<2x64xf32>
    %128 = arith.truncf %119 : vector<2x16xf32> to vector<2x16xbf16>
    %cst_51 = arith.constant dense<0.000000e+00> : vector<2x64xf32>
    %129 = tpu.matmul %128, %3, %cst_51 {dimension_numbers = #tpu.dot_dimension_numbers<[1], [0], [0], [1], [0, 0, 1, 1], [], []>} : vector<2x16xbf16>, vector<16x64xbf16>, vector<2x64xf32> -> vector<2x64xf32>
    %130 = arith.addf %127, %129 : vector<2x64xf32>
    %131 = vector.broadcast %5 : vector<1x64xf32> to vector<2x64xf32>
    %132 = arith.addf %130, %131 : vector<2x64xf32>
    %133 = vector.extract_strided_slice %132 {offsets = [0, 0], sizes = [2, 16], strides = [1, 1]} : vector<2x64xf32> to vector<2x16xf32>
    %cst_52 = arith.constant 0.000000e+00 : f32
    %134 = vector.broadcast %cst_52 : f32 to vector<2x16xf32>
    %135 = arith.subf %134, %133 : vector<2x16xf32>
    %136 = math.exp %135 : vector<2x16xf32>
    %cst_53 = arith.constant 1.000000e+00 : f32
    %137 = vector.broadcast %cst_53 : f32 to vector<2x16xf32>
    %138 = arith.addf %137, %136 : vector<2x16xf32>
    %cst_54 = arith.constant 1.000000e+00 : f32
    %139 = vector.broadcast %cst_54 : f32 to vector<2x16xf32>
    %140 = arith.divf %139, %138 : vector<2x16xf32>
    %141 = vector.extract_strided_slice %132 {offsets = [0, 16], sizes = [2, 16], strides = [1, 1]} : vector<2x64xf32> to vector<2x16xf32>
    %cst_55 = arith.constant 0.000000e+00 : f32
    %142 = vector.broadcast %cst_55 : f32 to vector<2x16xf32>
    %143 = arith.subf %142, %141 : vector<2x16xf32>
    %144 = math.exp %143 : vector<2x16xf32>
    %cst_56 = arith.constant 1.000000e+00 : f32
    %145 = vector.broadcast %cst_56 : f32 to vector<2x16xf32>
    %146 = arith.addf %145, %144 : vector<2x16xf32>
    %cst_57 = arith.constant 1.000000e+00 : f32
    %147 = vector.broadcast %cst_57 : f32 to vector<2x16xf32>
    %148 = arith.divf %147, %146 : vector<2x16xf32>
    %149 = vector.extract_strided_slice %132 {offsets = [0, 32], sizes = [2, 16], strides = [1, 1]} : vector<2x64xf32> to vector<2x16xf32>
    %150 = math.tanh %149 : vector<2x16xf32>
    %151 = vector.extract_strided_slice %132 {offsets = [0, 48], sizes = [2, 16], strides = [1, 1]} : vector<2x64xf32> to vector<2x16xf32>
    %cst_58 = arith.constant 0.000000e+00 : f32
    %152 = vector.broadcast %cst_58 : f32 to vector<2x16xf32>
    %153 = arith.subf %152, %151 : vector<2x16xf32>
    %154 = math.exp %153 : vector<2x16xf32>
    %cst_59 = arith.constant 1.000000e+00 : f32
    %155 = vector.broadcast %cst_59 : f32 to vector<2x16xf32>
    %156 = arith.addf %155, %154 : vector<2x16xf32>
    %cst_60 = arith.constant 1.000000e+00 : f32
    %157 = vector.broadcast %cst_60 : f32 to vector<2x16xf32>
    %158 = arith.divf %157, %156 : vector<2x16xf32>
    %159 = arith.mulf %148, %122 : vector<2x16xf32>
    %160 = arith.mulf %140, %150 : vector<2x16xf32>
    %161 = arith.addf %159, %160 : vector<2x16xf32>
    %162 = math.tanh %161 : vector<2x16xf32>
    %163 = arith.mulf %158, %162 : vector<2x16xf32>
    %164 = vector.broadcast %c2_i32 : i32 to vector<2x1xi32>
    %165 = arith.cmpi slt, %164, %6 : vector<2x1xi32>
    %cst_61 = arith.constant 0.000000e+00 : f32
    %166 = vector.shape_cast %165 : vector<2x1xi1> to vector<2x1xi1>
    %167 = vector.broadcast %166 : vector<2x1xi1> to vector<2x16xi1>
    %168 = vector.broadcast %cst_61 : f32 to vector<2x16xf32>
    %169 = arith.select %167, %163, %168 : vector<2x16xi1>, vector<2x16xf32>
    %c0_62 = arith.constant 0 : index
    %170 = arith.index_cast %c2_i32 : i32 to index
    %c0_63 = arith.constant 0 : index
    %c0_64 = arith.constant 0 : index
    %171 = vector.load %arg6[%c0_62, %170, %c0_63, %c0_64] : memref<1x8x2x16xf32, #tpu.memory_space<vmem>>, vector<1x1x2x16xf32>
    %172 = vector.shape_cast %171 : vector<1x1x2x16xf32> to vector<2x16xf32>
    %173 = vector.shape_cast %169 : vector<2x16xf32> to vector<1x1x2x16xf32>
    tpu.vector_store %arg6[%c0_62, %170, %c0_63, %c0_64], %173 {strides = array<i32>} : memref<1x8x2x16xf32, #tpu.memory_space<vmem>>, vector<1x1x2x16xf32>,
    %174 = vector.shape_cast %165 : vector<2x1xi1> to vector<2x1xi1>
    %175 = vector.broadcast %174 : vector<2x1xi1> to vector<2x16xi1>
    %176 = arith.select %175, %163, %119 : vector<2x16xi1>, vector<2x16xf32>
    %177 = vector.shape_cast %165 : vector<2x1xi1> to vector<2x1xi1>
    %178 = vector.broadcast %177 : vector<2x1xi1> to vector<2x16xi1>
    %179 = arith.select %178, %161, %122 : vector<2x16xi1>, vector<2x16xf32>
    %c3_i32 = arith.constant 3 : i32
    %c0_65 = arith.constant 0 : index
    %180 = arith.index_cast %c3_i32 : i32 to index
    %c0_66 = arith.constant 0 : index
    %c0_67 = arith.constant 0 : index
    %181 = vector.load %arg1[%c0_65, %180, %c0_66, %c0_67] : memref<1x8x2x32xf32, #tpu.memory_space<vmem>>, vector<1x1x2x32xf32>
    %182 = vector.shape_cast %181 : vector<1x1x2x32xf32> to vector<2x32xf32>
    %183 = arith.truncf %182 : vector<2x32xf32> to vector<2x32xbf16>
    %cst_68 = arith.constant dense<0.000000e+00> : vector<2x64xf32>
    %184 = tpu.matmul %183, %1, %cst_68 {dimension_numbers = #tpu.dot_dimension_numbers<[1], [0], [0], [1], [0, 0, 1, 1], [], []>} : vector<2x32xbf16>, vector<32x64xbf16>, vector<2x64xf32> -> vector<2x64xf32>
    %185 = arith.truncf %176 : vector<2x16xf32> to vector<2x16xbf16>
    %cst_69 = arith.constant dense<0.000000e+00> : vector<2x64xf32>
    %186 = tpu.matmul %185, %3, %cst_69 {dimension_numbers = #tpu.dot_dimension_numbers<[1], [0], [0], [1], [0, 0, 1, 1], [], []>} : vector<2x16xbf16>, vector<16x64xbf16>, vector<2x64xf32> -> vector<2x64xf32>
    %187 = arith.addf %184, %186 : vector<2x64xf32>
    %188 = vector.broadcast %5 : vector<1x64xf32> to vector<2x64xf32>
    %189 = arith.addf %187, %188 : vector<2x64xf32>
    %190 = vector.extract_strided_slice %189 {offsets = [0, 0], sizes = [2, 16], strides = [1, 1]} : vector<2x64xf32> to vector<2x16xf32>
    %cst_70 = arith.constant 0.000000e+00 : f32
    %191 = vector.broadcast %cst_70 : f32 to vector<2x16xf32>
    %192 = arith.subf %191, %190 : vector<2x16xf32>
    %193 = math.exp %192 : vector<2x16xf32>
    %cst_71 = arith.constant 1.000000e+00 : f32
    %194 = vector.broadcast %cst_71 : f32 to vector<2x16xf32>
    %195 = arith.addf %194, %193 : vector<2x16xf32>
    %cst_72 = arith.constant 1.000000e+00 : f32
    %196 = vector.broadcast %cst_72 : f32 to vector<2x16xf32>
    %197 = arith.divf %196, %195 : vector<2x16xf32>
    %198 = vector.extract_strided_slice %189 {offsets = [0, 16], sizes = [2, 16], strides = [1, 1]} : vector<2x64xf32> to vector<2x16xf32>
    %cst_73 = arith.constant 0.000000e+00 : f32
    %199 = vector.broadcast %cst_73 : f32 to vector<2x16xf32>
    %200 = arith.subf %199, %198 : vector<2x16xf32>
    %201 = math.exp %200 : vector<2x16xf32>
    %cst_74 = arith.constant 1.000000e+00 : f32
    %202 = vector.broadcast %cst_74 : f32 to vector<2x16xf32>
    %203 = arith.addf %202, %201 : vector<2x16xf32>
    %cst_75 = arith.constant 1.000000e+00 : f32
    %204 = vector.broadcast %cst_75 : f32 to vector<2x16xf32>
    %205 = arith.divf %204, %203 : vector<2x16xf32>
    %206 = vector.extract_strided_slice %189 {offsets = [0, 32], sizes = [2, 16], strides = [1, 1]} : vector<2x64xf32> to vector<2x16xf32>
    %207 = math.tanh %206 : vector<2x16xf32>
    %208 = vector.extract_strided_slice %189 {offsets = [0, 48], sizes = [2, 16], strides = [1, 1]} : vector<2x64xf32> to vector<2x16xf32>
    %cst_76 = arith.constant 0.000000e+00 : f32
    %209 = vector.broadcast %cst_76 : f32 to vector<2x16xf32>
    %210 = arith.subf %209, %208 : vector<2x16xf32>
    %211 = math.exp %210 : vector<2x16xf32>
    %cst_77 = arith.constant 1.000000e+00 : f32
    %212 = vector.broadcast %cst_77 : f32 to vector<2x16xf32>
    %213 = arith.addf %212, %211 : vector<2x16xf32>
    %cst_78 = arith.constant 1.000000e+00 : f32
    %214 = vector.broadcast %cst_78 : f32 to vector<2x16xf32>
    %215 = arith.divf %214, %213 : vector<2x16xf32>
    %216 = arith.mulf %205, %179 : vector<2x16xf32>
    %217 = arith.mulf %197, %207 : vector<2x16xf32>
    %218 = arith.addf %216, %217 : vector<2x16xf32>
    %219 = math.tanh %218 : vector<2x16xf32>
    %220 = arith.mulf %215, %219 : vector<2x16xf32>
    %221 = vector.broadcast %c3_i32 : i32 to vector<2x1xi32>
    %222 = arith.cmpi slt, %221, %6 : vector<2x1xi32>
    %cst_79 = arith.constant 0.000000e+00 : f32
    %223 = vector.shape_cast %222 : vector<2x1xi1> to vector<2x1xi1>
    %224 = vector.broadcast %223 : vector<2x1xi1> to vector<2x16xi1>
    %225 = vector.broadcast %cst_79 : f32 to vector<2x16xf32>
    %226 = arith.select %224, %220, %225 : vector<2x16xi1>, vector<2x16xf32>
    %c0_80 = arith.constant 0 : index
    %227 = arith.index_cast %c3_i32 : i32 to index
    %c0_81 = arith.constant 0 : index
    %c0_82 = arith.constant 0 : index
    %228 = vector.load %arg6[%c0_80, %227, %c0_81, %c0_82] : memref<1x8x2x16xf32, #tpu.memory_space<vmem>>, vector<1x1x2x16xf32>
    %229 = vector.shape_cast %228 : vector<1x1x2x16xf32> to vector<2x16xf32>
    %230 = vector.shape_cast %226 : vector<2x16xf32> to vector<1x1x2x16xf32>
    tpu.vector_store %arg6[%c0_80, %227, %c0_81, %c0_82], %230 {strides = array<i32>} : memref<1x8x2x16xf32, #tpu.memory_space<vmem>>, vector<1x1x2x16xf32>,
    %231 = vector.shape_cast %222 : vector<2x1xi1> to vector<2x1xi1>
    %232 = vector.broadcast %231 : vector<2x1xi1> to vector<2x16xi1>
    %233 = arith.select %232, %220, %176 : vector<2x16xi1>, vector<2x16xf32>
    %234 = vector.shape_cast %222 : vector<2x1xi1> to vector<2x1xi1>
    %235 = vector.broadcast %234 : vector<2x1xi1> to vector<2x16xi1>
    %236 = arith.select %235, %218, %179 : vector<2x16xi1>, vector<2x16xf32>
    %c4_i32 = arith.constant 4 : i32
    %c0_83 = arith.constant 0 : index
    %237 = arith.index_cast %c4_i32 : i32 to index
    %c0_84 = arith.constant 0 : index
    %c0_85 = arith.constant 0 : index
    %238 = vector.load %arg1[%c0_83, %237, %c0_84, %c0_85] : memref<1x8x2x32xf32, #tpu.memory_space<vmem>>, vector<1x1x2x32xf32>
    %239 = vector.shape_cast %238 : vector<1x1x2x32xf32> to vector<2x32xf32>
    %240 = arith.truncf %239 : vector<2x32xf32> to vector<2x32xbf16>
    %cst_86 = arith.constant dense<0.000000e+00> : vector<2x64xf32>
    %241 = tpu.matmul %240, %1, %cst_86 {dimension_numbers = #tpu.dot_dimension_numbers<[1], [0], [0], [1], [0, 0, 1, 1], [], []>} : vector<2x32xbf16>, vector<32x64xbf16>, vector<2x64xf32> -> vector<2x64xf32>
    %242 = arith.truncf %233 : vector<2x16xf32> to vector<2x16xbf16>
    %cst_87 = arith.constant dense<0.000000e+00> : vector<2x64xf32>
    %243 = tpu.matmul %242, %3, %cst_87 {dimension_numbers = #tpu.dot_dimension_numbers<[1], [0], [0], [1], [0, 0, 1, 1], [], []>} : vector<2x16xbf16>, vector<16x64xbf16>, vector<2x64xf32> -> vector<2x64xf32>
    %244 = arith.addf %241, %243 : vector<2x64xf32>
    %245 = vector.broadcast %5 : vector<1x64xf32> to vector<2x64xf32>
    %246 = arith.addf %244, %245 : vector<2x64xf32>
    %247 = vector.extract_strided_slice %246 {offsets = [0, 0], sizes = [2, 16], strides = [1, 1]} : vector<2x64xf32> to vector<2x16xf32>
    %cst_88 = arith.constant 0.000000e+00 : f32
    %248 = vector.broadcast %cst_88 : f32 to vector<2x16xf32>
    %249 = arith.subf %248, %247 : vector<2x16xf32>
    %250 = math.exp %249 : vector<2x16xf32>
    %cst_89 = arith.constant 1.000000e+00 : f32
    %251 = vector.broadcast %cst_89 : f32 to vector<2x16xf32>
    %252 = arith.addf %251, %250 : vector<2x16xf32>
    %cst_90 = arith.constant 1.000000e+00 : f32
    %253 = vector.broadcast %cst_90 : f32 to vector<2x16xf32>
    %254 = arith.divf %253, %252 : vector<2x16xf32>
    %255 = vector.extract_strided_slice %246 {offsets = [0, 16], sizes = [2, 16], strides = [1, 1]} : vector<2x64xf32> to vector<2x16xf32>
    %cst_91 = arith.constant 0.000000e+00 : f32
    %256 = vector.broadcast %cst_91 : f32 to vector<2x16xf32>
    %257 = arith.subf %256, %255 : vector<2x16xf32>
    %258 = math.exp %257 : vector<2x16xf32>
    %cst_92 = arith.constant 1.000000e+00 : f32
    %259 = vector.broadcast %cst_92 : f32 to vector<2x16xf32>
    %260 = arith.addf %259, %258 : vector<2x16xf32>
    %cst_93 = arith.constant 1.000000e+00 : f32
    %261 = vector.broadcast %cst_93 : f32 to vector<2x16xf32>
    %262 = arith.divf %261, %260 : vector<2x16xf32>
    %263 = vector.extract_strided_slice %246 {offsets = [0, 32], sizes = [2, 16], strides = [1, 1]} : vector<2x64xf32> to vector<2x16xf32>
    %264 = math.tanh %263 : vector<2x16xf32>
    %265 = vector.extract_strided_slice %246 {offsets = [0, 48], sizes = [2, 16], strides = [1, 1]} : vector<2x64xf32> to vector<2x16xf32>
    %cst_94 = arith.constant 0.000000e+00 : f32
    %266 = vector.broadcast %cst_94 : f32 to vector<2x16xf32>
    %267 = arith.subf %266, %265 : vector<2x16xf32>
    %268 = math.exp %267 : vector<2x16xf32>
    %cst_95 = arith.constant 1.000000e+00 : f32
    %269 = vector.broadcast %cst_95 : f32 to vector<2x16xf32>
    %270 = arith.addf %269, %268 : vector<2x16xf32>
    %cst_96 = arith.constant 1.000000e+00 : f32
    %271 = vector.broadcast %cst_96 : f32 to vector<2x16xf32>
    %272 = arith.divf %271, %270 : vector<2x16xf32>
    %273 = arith.mulf %262, %236 : vector<2x16xf32>
    %274 = arith.mulf %254, %264 : vector<2x16xf32>
    %275 = arith.addf %273, %274 : vector<2x16xf32>
    %276 = math.tanh %275 : vector<2x16xf32>
    %277 = arith.mulf %272, %276 : vector<2x16xf32>
    %278 = vector.broadcast %c4_i32 : i32 to vector<2x1xi32>
    %279 = arith.cmpi slt, %278, %6 : vector<2x1xi32>
    %cst_97 = arith.constant 0.000000e+00 : f32
    %280 = vector.shape_cast %279 : vector<2x1xi1> to vector<2x1xi1>
    %281 = vector.broadcast %280 : vector<2x1xi1> to vector<2x16xi1>
    %282 = vector.broadcast %cst_97 : f32 to vector<2x16xf32>
    %283 = arith.select %281, %277, %282 : vector<2x16xi1>, vector<2x16xf32>
    %c0_98 = arith.constant 0 : index
    %284 = arith.index_cast %c4_i32 : i32 to index
    %c0_99 = arith.constant 0 : index
    %c0_100 = arith.constant 0 : index
    %285 = vector.load %arg6[%c0_98, %284, %c0_99, %c0_100] : memref<1x8x2x16xf32, #tpu.memory_space<vmem>>, vector<1x1x2x16xf32>
    %286 = vector.shape_cast %285 : vector<1x1x2x16xf32> to vector<2x16xf32>
    %287 = vector.shape_cast %283 : vector<2x16xf32> to vector<1x1x2x16xf32>
    tpu.vector_store %arg6[%c0_98, %284, %c0_99, %c0_100], %287 {strides = array<i32>} : memref<1x8x2x16xf32, #tpu.memory_space<vmem>>, vector<1x1x2x16xf32>,
    %288 = vector.shape_cast %279 : vector<2x1xi1> to vector<2x1xi1>
    %289 = vector.broadcast %288 : vector<2x1xi1> to vector<2x16xi1>
    %290 = arith.select %289, %277, %233 : vector<2x16xi1>, vector<2x16xf32>
    %291 = vector.shape_cast %279 : vector<2x1xi1> to vector<2x1xi1>
    %292 = vector.broadcast %291 : vector<2x1xi1> to vector<2x16xi1>
    %293 = arith.select %292, %275, %236 : vector<2x16xi1>, vector<2x16xf32>
    %c5_i32 = arith.constant 5 : i32
    %c0_101 = arith.constant 0 : index
    %294 = arith.index_cast %c5_i32 : i32 to index
    %c0_102 = arith.constant 0 : index
    %c0_103 = arith.constant 0 : index
    %295 = vector.load %arg1[%c0_101, %294, %c0_102, %c0_103] : memref<1x8x2x32xf32, #tpu.memory_space<vmem>>, vector<1x1x2x32xf32>
    %296 = vector.shape_cast %295 : vector<1x1x2x32xf32> to vector<2x32xf32>
    %297 = arith.truncf %296 : vector<2x32xf32> to vector<2x32xbf16>
    %cst_104 = arith.constant dense<0.000000e+00> : vector<2x64xf32>
    %298 = tpu.matmul %297, %1, %cst_104 {dimension_numbers = #tpu.dot_dimension_numbers<[1], [0], [0], [1], [0, 0, 1, 1], [], []>} : vector<2x32xbf16>, vector<32x64xbf16>, vector<2x64xf32> -> vector<2x64xf32>
    %299 = arith.truncf %290 : vector<2x16xf32> to vector<2x16xbf16>
    %cst_105 = arith.constant dense<0.000000e+00> : vector<2x64xf32>
    %300 = tpu.matmul %299, %3, %cst_105 {dimension_numbers = #tpu.dot_dimension_numbers<[1], [0], [0], [1], [0, 0, 1, 1], [], []>} : vector<2x16xbf16>, vector<16x64xbf16>, vector<2x64xf32> -> vector<2x64xf32>
    %301 = arith.addf %298, %300 : vector<2x64xf32>
    %302 = vector.broadcast %5 : vector<1x64xf32> to vector<2x64xf32>
    %303 = arith.addf %301, %302 : vector<2x64xf32>
    %304 = vector.extract_strided_slice %303 {offsets = [0, 0], sizes = [2, 16], strides = [1, 1]} : vector<2x64xf32> to vector<2x16xf32>
    %cst_106 = arith.constant 0.000000e+00 : f32
    %305 = vector.broadcast %cst_106 : f32 to vector<2x16xf32>
    %306 = arith.subf %305, %304 : vector<2x16xf32>
    %307 = math.exp %306 : vector<2x16xf32>
    %cst_107 = arith.constant 1.000000e+00 : f32
    %308 = vector.broadcast %cst_107 : f32 to vector<2x16xf32>
    %309 = arith.addf %308, %307 : vector<2x16xf32>
    %cst_108 = arith.constant 1.000000e+00 : f32
    %310 = vector.broadcast %cst_108 : f32 to vector<2x16xf32>
    %311 = arith.divf %310, %309 : vector<2x16xf32>
    %312 = vector.extract_strided_slice %303 {offsets = [0, 16], sizes = [2, 16], strides = [1, 1]} : vector<2x64xf32> to vector<2x16xf32>
    %cst_109 = arith.constant 0.000000e+00 : f32
    %313 = vector.broadcast %cst_109 : f32 to vector<2x16xf32>
    %314 = arith.subf %313, %312 : vector<2x16xf32>
    %315 = math.exp %314 : vector<2x16xf32>
    %cst_110 = arith.constant 1.000000e+00 : f32
    %316 = vector.broadcast %cst_110 : f32 to vector<2x16xf32>
    %317 = arith.addf %316, %315 : vector<2x16xf32>
    %cst_111 = arith.constant 1.000000e+00 : f32
    %318 = vector.broadcast %cst_111 : f32 to vector<2x16xf32>
    %319 = arith.divf %318, %317 : vector<2x16xf32>
    %320 = vector.extract_strided_slice %303 {offsets = [0, 32], sizes = [2, 16], strides = [1, 1]} : vector<2x64xf32> to vector<2x16xf32>
    %321 = math.tanh %320 : vector<2x16xf32>
    %322 = vector.extract_strided_slice %303 {offsets = [0, 48], sizes = [2, 16], strides = [1, 1]} : vector<2x64xf32> to vector<2x16xf32>
    %cst_112 = arith.constant 0.000000e+00 : f32
    %323 = vector.broadcast %cst_112 : f32 to vector<2x16xf32>
    %324 = arith.subf %323, %322 : vector<2x16xf32>
    %325 = math.exp %324 : vector<2x16xf32>
    %cst_113 = arith.constant 1.000000e+00 : f32
    %326 = vector.broadcast %cst_113 : f32 to vector<2x16xf32>
    %327 = arith.addf %326, %325 : vector<2x16xf32>
    %cst_114 = arith.constant 1.000000e+00 : f32
    %328 = vector.broadcast %cst_114 : f32 to vector<2x16xf32>
    %329 = arith.divf %328, %327 : vector<2x16xf32>
    %330 = arith.mulf %319, %293 : vector<2x16xf32>
    %331 = arith.mulf %311, %321 : vector<2x16xf32>
    %332 = arith.addf %330, %331 : vector<2x16xf32>
    %333 = math.tanh %332 : vector<2x16xf32>
    %334 = arith.mulf %329, %333 : vector<2x16xf32>
    %335 = vector.broadcast %c5_i32 : i32 to vector<2x1xi32>
    %336 = arith.cmpi slt, %335, %6 : vector<2x1xi32>
    %cst_115 = arith.constant 0.000000e+00 : f32
    %337 = vector.shape_cast %336 : vector<2x1xi1> to vector<2x1xi1>
    %338 = vector.broadcast %337 : vector<2x1xi1> to vector<2x16xi1>
    %339 = vector.broadcast %cst_115 : f32 to vector<2x16xf32>
    %340 = arith.select %338, %334, %339 : vector<2x16xi1>, vector<2x16xf32>
    %c0_116 = arith.constant 0 : index
    %341 = arith.index_cast %c5_i32 : i32 to index
    %c0_117 = arith.constant 0 : index
    %c0_118 = arith.constant 0 : index
    %342 = vector.load %arg6[%c0_116, %341, %c0_117, %c0_118] : memref<1x8x2x16xf32, #tpu.memory_space<vmem>>, vector<1x1x2x16xf32>
    %343 = vector.shape_cast %342 : vector<1x1x2x16xf32> to vector<2x16xf32>
    %344 = vector.shape_cast %340 : vector<2x16xf32> to vector<1x1x2x16xf32>
    tpu.vector_store %arg6[%c0_116, %341, %c0_117, %c0_118], %344 {strides = array<i32>} : memref<1x8x2x16xf32, #tpu.memory_space<vmem>>, vector<1x1x2x16xf32>,
    %345 = vector.shape_cast %336 : vector<2x1xi1> to vector<2x1xi1>
    %346 = vector.broadcast %345 : vector<2x1xi1> to vector<2x16xi1>
    %347 = arith.select %346, %334, %290 : vector<2x16xi1>, vector<2x16xf32>
    %348 = vector.shape_cast %336 : vector<2x1xi1> to vector<2x1xi1>
    %349 = vector.broadcast %348 : vector<2x1xi1> to vector<2x16xi1>
    %350 = arith.select %349, %332, %293 : vector<2x16xi1>, vector<2x16xf32>
    %c6_i32 = arith.constant 6 : i32
    %c0_119 = arith.constant 0 : index
    %351 = arith.index_cast %c6_i32 : i32 to index
    %c0_120 = arith.constant 0 : index
    %c0_121 = arith.constant 0 : index
    %352 = vector.load %arg1[%c0_119, %351, %c0_120, %c0_121] : memref<1x8x2x32xf32, #tpu.memory_space<vmem>>, vector<1x1x2x32xf32>
    %353 = vector.shape_cast %352 : vector<1x1x2x32xf32> to vector<2x32xf32>
    %354 = arith.truncf %353 : vector<2x32xf32> to vector<2x32xbf16>
    %cst_122 = arith.constant dense<0.000000e+00> : vector<2x64xf32>
    %355 = tpu.matmul %354, %1, %cst_122 {dimension_numbers = #tpu.dot_dimension_numbers<[1], [0], [0], [1], [0, 0, 1, 1], [], []>} : vector<2x32xbf16>, vector<32x64xbf16>, vector<2x64xf32> -> vector<2x64xf32>
    %356 = arith.truncf %347 : vector<2x16xf32> to vector<2x16xbf16>
    %cst_123 = arith.constant dense<0.000000e+00> : vector<2x64xf32>
    %357 = tpu.matmul %356, %3, %cst_123 {dimension_numbers = #tpu.dot_dimension_numbers<[1], [0], [0], [1], [0, 0, 1, 1], [], []>} : vector<2x16xbf16>, vector<16x64xbf16>, vector<2x64xf32> -> vector<2x64xf32>
    %358 = arith.addf %355, %357 : vector<2x64xf32>
    %359 = vector.broadcast %5 : vector<1x64xf32> to vector<2x64xf32>
    %360 = arith.addf %358, %359 : vector<2x64xf32>
    %361 = vector.extract_strided_slice %360 {offsets = [0, 0], sizes = [2, 16], strides = [1, 1]} : vector<2x64xf32> to vector<2x16xf32>
    %cst_124 = arith.constant 0.000000e+00 : f32
    %362 = vector.broadcast %cst_124 : f32 to vector<2x16xf32>
    %363 = arith.subf %362, %361 : vector<2x16xf32>
    %364 = math.exp %363 : vector<2x16xf32>
    %cst_125 = arith.constant 1.000000e+00 : f32
    %365 = vector.broadcast %cst_125 : f32 to vector<2x16xf32>
    %366 = arith.addf %365, %364 : vector<2x16xf32>
    %cst_126 = arith.constant 1.000000e+00 : f32
    %367 = vector.broadcast %cst_126 : f32 to vector<2x16xf32>
    %368 = arith.divf %367, %366 : vector<2x16xf32>
    %369 = vector.extract_strided_slice %360 {offsets = [0, 16], sizes = [2, 16], strides = [1, 1]} : vector<2x64xf32> to vector<2x16xf32>
    %cst_127 = arith.constant 0.000000e+00 : f32
    %370 = vector.broadcast %cst_127 : f32 to vector<2x16xf32>
    %371 = arith.subf %370, %369 : vector<2x16xf32>
    %372 = math.exp %371 : vector<2x16xf32>
    %cst_128 = arith.constant 1.000000e+00 : f32
    %373 = vector.broadcast %cst_128 : f32 to vector<2x16xf32>
    %374 = arith.addf %373, %372 : vector<2x16xf32>
    %cst_129 = arith.constant 1.000000e+00 : f32
    %375 = vector.broadcast %cst_129 : f32 to vector<2x16xf32>
    %376 = arith.divf %375, %374 : vector<2x16xf32>
    %377 = vector.extract_strided_slice %360 {offsets = [0, 32], sizes = [2, 16], strides = [1, 1]} : vector<2x64xf32> to vector<2x16xf32>
    %378 = math.tanh %377 : vector<2x16xf32>
    %379 = vector.extract_strided_slice %360 {offsets = [0, 48], sizes = [2, 16], strides = [1, 1]} : vector<2x64xf32> to vector<2x16xf32>
    %cst_130 = arith.constant 0.000000e+00 : f32
    %380 = vector.broadcast %cst_130 : f32 to vector<2x16xf32>
    %381 = arith.subf %380, %379 : vector<2x16xf32>
    %382 = math.exp %381 : vector<2x16xf32>
    %cst_131 = arith.constant 1.000000e+00 : f32
    %383 = vector.broadcast %cst_131 : f32 to vector<2x16xf32>
    %384 = arith.addf %383, %382 : vector<2x16xf32>
    %cst_132 = arith.constant 1.000000e+00 : f32
    %385 = vector.broadcast %cst_132 : f32 to vector<2x16xf32>
    %386 = arith.divf %385, %384 : vector<2x16xf32>
    %387 = arith.mulf %376, %350 : vector<2x16xf32>
    %388 = arith.mulf %368, %378 : vector<2x16xf32>
    %389 = arith.addf %387, %388 : vector<2x16xf32>
    %390 = math.tanh %389 : vector<2x16xf32>
    %391 = arith.mulf %386, %390 : vector<2x16xf32>
    %392 = vector.broadcast %c6_i32 : i32 to vector<2x1xi32>
    %393 = arith.cmpi slt, %392, %6 : vector<2x1xi32>
    %cst_133 = arith.constant 0.000000e+00 : f32
    %394 = vector.shape_cast %393 : vector<2x1xi1> to vector<2x1xi1>
    %395 = vector.broadcast %394 : vector<2x1xi1> to vector<2x16xi1>
    %396 = vector.broadcast %cst_133 : f32 to vector<2x16xf32>
    %397 = arith.select %395, %391, %396 : vector<2x16xi1>, vector<2x16xf32>
    %c0_134 = arith.constant 0 : index
    %398 = arith.index_cast %c6_i32 : i32 to index
    %c0_135 = arith.constant 0 : index
    %c0_136 = arith.constant 0 : index
    %399 = vector.load %arg6[%c0_134, %398, %c0_135, %c0_136] : memref<1x8x2x16xf32, #tpu.memory_space<vmem>>, vector<1x1x2x16xf32>
    %400 = vector.shape_cast %399 : vector<1x1x2x16xf32> to vector<2x16xf32>
    %401 = vector.shape_cast %397 : vector<2x16xf32> to vector<1x1x2x16xf32>
    tpu.vector_store %arg6[%c0_134, %398, %c0_135, %c0_136], %401 {strides = array<i32>} : memref<1x8x2x16xf32, #tpu.memory_space<vmem>>, vector<1x1x2x16xf32>,
    %402 = vector.shape_cast %393 : vector<2x1xi1> to vector<2x1xi1>
    %403 = vector.broadcast %402 : vector<2x1xi1> to vector<2x16xi1>
    %404 = arith.select %403, %391, %347 : vector<2x16xi1>, vector<2x16xf32>
    %405 = vector.shape_cast %393 : vector<2x1xi1> to vector<2x1xi1>
    %406 = vector.broadcast %405 : vector<2x1xi1> to vector<2x16xi1>
    %407 = arith.select %406, %389, %350 : vector<2x16xi1>, vector<2x16xf32>
    %c7_i32 = arith.constant 7 : i32
    %c0_137 = arith.constant 0 : index
    %408 = arith.index_cast %c7_i32 : i32 to index
    %c0_138 = arith.constant 0 : index
    %c0_139 = arith.constant 0 : index
    %409 = vector.load %arg1[%c0_137, %408, %c0_138, %c0_139] : memref<1x8x2x32xf32, #tpu.memory_space<vmem>>, vector<1x1x2x32xf32>
    %410 = vector.shape_cast %409 : vector<1x1x2x32xf32> to vector<2x32xf32>
    %411 = arith.truncf %410 : vector<2x32xf32> to vector<2x32xbf16>
    %cst_140 = arith.constant dense<0.000000e+00> : vector<2x64xf32>
    %412 = tpu.matmul %411, %1, %cst_140 {dimension_numbers = #tpu.dot_dimension_numbers<[1], [0], [0], [1], [0, 0, 1, 1], [], []>} : vector<2x32xbf16>, vector<32x64xbf16>, vector<2x64xf32> -> vector<2x64xf32>
    %413 = arith.truncf %404 : vector<2x16xf32> to vector<2x16xbf16>
    %cst_141 = arith.constant dense<0.000000e+00> : vector<2x64xf32>
    %414 = tpu.matmul %413, %3, %cst_141 {dimension_numbers = #tpu.dot_dimension_numbers<[1], [0], [0], [1], [0, 0, 1, 1], [], []>} : vector<2x16xbf16>, vector<16x64xbf16>, vector<2x64xf32> -> vector<2x64xf32>
    %415 = arith.addf %412, %414 : vector<2x64xf32>
    %416 = vector.broadcast %5 : vector<1x64xf32> to vector<2x64xf32>
    %417 = arith.addf %415, %416 : vector<2x64xf32>
    %418 = vector.extract_strided_slice %417 {offsets = [0, 0], sizes = [2, 16], strides = [1, 1]} : vector<2x64xf32> to vector<2x16xf32>
    %cst_142 = arith.constant 0.000000e+00 : f32
    %419 = vector.broadcast %cst_142 : f32 to vector<2x16xf32>
    %420 = arith.subf %419, %418 : vector<2x16xf32>
    %421 = math.exp %420 : vector<2x16xf32>
    %cst_143 = arith.constant 1.000000e+00 : f32
    %422 = vector.broadcast %cst_143 : f32 to vector<2x16xf32>
    %423 = arith.addf %422, %421 : vector<2x16xf32>
    %cst_144 = arith.constant 1.000000e+00 : f32
    %424 = vector.broadcast %cst_144 : f32 to vector<2x16xf32>
    %425 = arith.divf %424, %423 : vector<2x16xf32>
    %426 = vector.extract_strided_slice %417 {offsets = [0, 16], sizes = [2, 16], strides = [1, 1]} : vector<2x64xf32> to vector<2x16xf32>
    %cst_145 = arith.constant 0.000000e+00 : f32
    %427 = vector.broadcast %cst_145 : f32 to vector<2x16xf32>
    %428 = arith.subf %427, %426 : vector<2x16xf32>
    %429 = math.exp %428 : vector<2x16xf32>
    %cst_146 = arith.constant 1.000000e+00 : f32
    %430 = vector.broadcast %cst_146 : f32 to vector<2x16xf32>
    %431 = arith.addf %430, %429 : vector<2x16xf32>
    %cst_147 = arith.constant 1.000000e+00 : f32
    %432 = vector.broadcast %cst_147 : f32 to vector<2x16xf32>
    %433 = arith.divf %432, %431 : vector<2x16xf32>
    %434 = vector.extract_strided_slice %417 {offsets = [0, 32], sizes = [2, 16], strides = [1, 1]} : vector<2x64xf32> to vector<2x16xf32>
    %435 = math.tanh %434 : vector<2x16xf32>
    %436 = vector.extract_strided_slice %417 {offsets = [0, 48], sizes = [2, 16], strides = [1, 1]} : vector<2x64xf32> to vector<2x16xf32>
    %cst_148 = arith.constant 0.000000e+00 : f32
    %437 = vector.broadcast %cst_148 : f32 to vector<2x16xf32>
    %438 = arith.subf %437, %436 : vector<2x16xf32>
    %439 = math.exp %438 : vector<2x16xf32>
    %cst_149 = arith.constant 1.000000e+00 : f32
    %440 = vector.broadcast %cst_149 : f32 to vector<2x16xf32>
    %441 = arith.addf %440, %439 : vector<2x16xf32>
    %cst_150 = arith.constant 1.000000e+00 : f32
    %442 = vector.broadcast %cst_150 : f32 to vector<2x16xf32>
    %443 = arith.divf %442, %441 : vector<2x16xf32>
    %444 = arith.mulf %433, %407 : vector<2x16xf32>
    %445 = arith.mulf %425, %435 : vector<2x16xf32>
    %446 = arith.addf %444, %445 : vector<2x16xf32>
    %447 = math.tanh %446 : vector<2x16xf32>
    %448 = arith.mulf %443, %447 : vector<2x16xf32>
    %449 = vector.broadcast %c7_i32 : i32 to vector<2x1xi32>
    %450 = arith.cmpi slt, %449, %6 : vector<2x1xi32>
    %cst_151 = arith.constant 0.000000e+00 : f32
    %451 = vector.shape_cast %450 : vector<2x1xi1> to vector<2x1xi1>
    %452 = vector.broadcast %451 : vector<2x1xi1> to vector<2x16xi1>
    %453 = vector.broadcast %cst_151 : f32 to vector<2x16xf32>
    %454 = arith.select %452, %448, %453 : vector<2x16xi1>, vector<2x16xf32>
    %c0_152 = arith.constant 0 : index
    %455 = arith.index_cast %c7_i32 : i32 to index
    %c0_153 = arith.constant 0 : index
    %c0_154 = arith.constant 0 : index
    %456 = vector.load %arg6[%c0_152, %455, %c0_153, %c0_154] : memref<1x8x2x16xf32, #tpu.memory_space<vmem>>, vector<1x1x2x16xf32>
    %457 = vector.shape_cast %456 : vector<1x1x2x16xf32> to vector<2x16xf32>
    %458 = vector.shape_cast %454 : vector<2x16xf32> to vector<1x1x2x16xf32>
    tpu.vector_store %arg6[%c0_152, %455, %c0_153, %c0_154], %458 {strides = array<i32>} : memref<1x8x2x16xf32, #tpu.memory_space<vmem>>, vector<1x1x2x16xf32>,
    %459 = vector.shape_cast %450 : vector<2x1xi1> to vector<2x1xi1>
    %460 = vector.broadcast %459 : vector<2x1xi1> to vector<2x16xi1>
    %461 = arith.select %460, %448, %404 : vector<2x16xi1>, vector<2x16xf32>
    %462 = vector.shape_cast %450 : vector<2x1xi1> to vector<2x1xi1>
    %463 = vector.broadcast %462 : vector<2x1xi1> to vector<2x16xi1>
    %464 = arith.select %463, %446, %407 : vector<2x16xi1>, vector<2x16xf32>
    %c8_i32 = arith.constant 8 : i32
    return
  }
  func.func @transform_0(%arg0: i32) -> (i32, i32, i32, i32) {
    %c0_i32 = arith.constant 0 : i32
    %c0_i32_0 = arith.constant 0 : i32
    %c0_i32_1 = arith.constant 0 : i32
    %c0_i32_2 = arith.constant 0 : i32
    return %arg0, %c0_i32, %c0_i32_0, %c0_i32_1 : i32, i32, i32, i32
  }
  func.func @transform_1(%arg0: i32) -> (i32, i32, i32) {
    %c0_i32 = arith.constant 0 : i32
    %c0_i32_0 = arith.constant 0 : i32
    %c0_i32_1 = arith.constant 0 : i32
    return %arg0, %c0_i32, %c0_i32_0 : i32, i32, i32
  }
  func.func @transform_2(%arg0: i32) -> (i32, i32, i32) {
    %c0_i32 = arith.constant 0 : i32
    %c0_i32_0 = arith.constant 0 : i32
    %c0_i32_1 = arith.constant 0 : i32
    return %arg0, %c0_i32, %c0_i32_0 : i32, i32, i32
  }
  func.func @transform_3(%arg0: i32) -> (i32, i32, i32) {
    %c0_i32 = arith.constant 0 : i32
    %c0_i32_0 = arith.constant 0 : i32
    %c0_i32_1 = arith.constant 0 : i32
    return %arg0, %c0_i32, %c0_i32_0 : i32, i32, i32
  }
  func.func @transform_4(%arg0: i32) -> (i32, i32) {
    %c0_i32 = arith.constant 0 : i32
    %c0_i32_0 = arith.constant 0 : i32
    %c0_i32_1 = arith.constant 0 : i32
    return %c0_i32, %c0_i32_0 : i32, i32
  }
  func.func @transform_5(%arg0: i32) -> (i32, i32, i32, i32) {
    %c0_i32 = arith.constant 0 : i32
    %c0_i32_0 = arith.constant 0 : i32
    %c0_i32_1 = arith.constant 0 : i32
    %c0_i32_2 = arith.constant 0 : i32
    return %arg0, %c0_i32, %c0_i32_0, %c0_i32_1 : i32, i32, i32, i32
  }
}

module attributes {stable_mosaic.version = 11 : i64} {
  func.func @_att_span_head_kernel(%arg0: i32, %arg1: memref<1x8x32xf32, #tpu.memory_space<vmem>>, %arg2: memref<1x12x8xf32, #tpu.memory_space<vmem>>, %arg3: memref<1x12x1xf32, #tpu.memory_space<vmem>>, %arg4: memref<1x12x128xf32, #tpu.memory_space<vmem>>, %arg5: memref<1x32xf32, #tpu.memory_space<vmem>>, %arg6: memref<1x1xf32, #tpu.memory_space<vmem>>, %arg7: memref<160x32xbf16, #tpu.memory_space<vmem>>, %arg8: memref<1x32xf32, #tpu.memory_space<vmem>>, %arg9: memref<32x32xbf16, #tpu.memory_space<vmem>>, %arg10: memref<1x32xf32, #tpu.memory_space<vmem>>, %arg11: memref<32x128xbf16, #tpu.memory_space<vmem>>, %arg12: memref<1x128xf32, #tpu.memory_space<vmem>>, %arg13: memref<1x12x160xf32, #tpu.memory_space<vmem>>, %arg14: memref<1x12x128xf32, #tpu.memory_space<vmem>>, %arg15: memref<1x12x128xf32, #tpu.memory_space<vmem>>) attributes {dimension_semantics = [#tpu.dimension_semantics<parallel>], iteration_bounds = array<i64: 2>, scalar_prefetch = 0 : i64, scratch_operands = 0 : i64, tpu.core_type = #tpu.core_type<tc>, window_params = [{transform_indices = @transform_0, window_bounds = array<i64: 1, 8, 32>}, {transform_indices = @transform_1, window_bounds = array<i64: 1, 12, 8>}, {transform_indices = @transform_2, window_bounds = array<i64: 1, 12, 1>}, {transform_indices = @transform_3, window_bounds = array<i64: 1, 12, 128>}, {pipeline_mode = #tpu.pipeline_mode<synchronous>, transform_indices = @transform_4, window_bounds = array<i64: 1, 32>}, {pipeline_mode = #tpu.pipeline_mode<synchronous>, transform_indices = @transform_5, window_bounds = array<i64: 1, 1>}, {pipeline_mode = #tpu.pipeline_mode<synchronous>, transform_indices = @transform_6, window_bounds = array<i64: 160, 32>}, {pipeline_mode = #tpu.pipeline_mode<synchronous>, transform_indices = @transform_7, window_bounds = array<i64: 1, 32>}, {pipeline_mode = #tpu.pipeline_mode<synchronous>, transform_indices = @transform_8, window_bounds = array<i64: 32, 32>}, {pipeline_mode = #tpu.pipeline_mode<synchronous>, transform_indices = @transform_9, window_bounds = array<i64: 1, 32>}, {pipeline_mode = #tpu.pipeline_mode<synchronous>, transform_indices = @transform_10, window_bounds = array<i64: 32, 128>}, {pipeline_mode = #tpu.pipeline_mode<synchronous>, transform_indices = @transform_11, window_bounds = array<i64: 1, 128>}, {transform_indices = @transform_12, window_bounds = array<i64: 1, 12, 160>}, {transform_indices = @transform_13, window_bounds = array<i64: 1, 12, 128>}, {transform_indices = @transform_14, window_bounds = array<i64: 1, 12, 128>}]} {
    %c0 = arith.constant 0 : index
    %c0_0 = arith.constant 0 : index
    %c0_1 = arith.constant 0 : index
    %0 = vector.load %arg1[%c0, %c0_0, %c0_1] : memref<1x8x32xf32, #tpu.memory_space<vmem>>, vector<1x8x32xf32>
    %1 = vector.shape_cast %0 : vector<1x8x32xf32> to vector<8x32xf32>
    %c0_2 = arith.constant 0 : index
    %c0_3 = arith.constant 0 : index
    %2 = vector.load %arg5[%c0_2, %c0_3] : memref<1x32xf32, #tpu.memory_space<vmem>>, vector<1x32xf32>
    %3 = vector.broadcast %2 : vector<1x32xf32> to vector<8x32xf32>
    %4 = arith.mulf %1, %3 : vector<8x32xf32>
    %cst = arith.constant dense<0.000000e+00> : vector<8xf32>
    %5 = vector.multi_reduction <add>, %4, %cst [1] : vector<8x32xf32> to vector<8xf32>
    %6 = vector.shape_cast %5 : vector<8xf32> to vector<8x1xf32>
    %c0_4 = arith.constant 0 : index
    %c0_5 = arith.constant 0 : index
    %7 = vector.load %arg6[%c0_4, %c0_5] : memref<1x1xf32, #tpu.memory_space<vmem>>, vector<1x1xf32>
    %8 = vector.broadcast %7 : vector<1x1xf32> to vector<8x1xf32>
    %9 = arith.addf %6, %8 : vector<8x1xf32>
    %cst_6 = arith.constant dense<0xFF800000> : vector<1xf32>
    %10 = vector.multi_reduction <maximumf>, %9, %cst_6 [0] : vector<8x1xf32> to vector<1xf32>
    %11 = vector.shape_cast %10 : vector<1xf32> to vector<1x1xf32>
    %12 = vector.broadcast %11 : vector<1x1xf32> to vector<8x1xf32>
    %13 = arith.subf %9, %12 : vector<8x1xf32>
    %14 = math.exp %13 : vector<8x1xf32>
    %c0_7 = arith.constant 0 : index
    %c0_8 = arith.constant 0 : index
    %c0_9 = arith.constant 0 : index
    %15 = vector.load %arg2[%c0_7, %c0_8, %c0_9] : memref<1x12x8xf32, #tpu.memory_space<vmem>>, vector<1x12x8xf32>
    %16 = vector.shape_cast %15 : vector<1x12x8xf32> to vector<12x8xf32>
    %17 = arith.truncf %16 : vector<12x8xf32> to vector<12x8xbf16>
    %18 = vector.broadcast %14 : vector<8x1xf32> to vector<8x32xf32>
    %19 = arith.mulf %18, %1 : vector<8x32xf32>
    %20 = arith.truncf %19 : vector<8x32xf32> to vector<8x32xbf16>
    %cst_10 = arith.constant dense<0.000000e+00> : vector<12x32xf32>
    %21 = tpu.matmul %17, %20, %cst_10 {dimension_numbers = #tpu.dot_dimension_numbers<[1], [0], [0], [1], [0, 0, 1, 1], [], []>} : vector<12x8xbf16>, vector<8x32xbf16>, vector<12x32xf32> -> vector<12x32xf32>
    %22 = arith.truncf %14 : vector<8x1xf32> to vector<8x1xbf16>
    %cst_11 = arith.constant dense<0.000000e+00> : vector<12x1xf32>
    %23 = tpu.matmul %17, %22, %cst_11 {dimension_numbers = #tpu.dot_dimension_numbers<[1], [0], [0], [1], [0, 0, 1, 1], [], []>} : vector<12x8xbf16>, vector<8x1xbf16>, vector<12x1xf32> -> vector<12x1xf32>
    %cst_12 = arith.constant 1.000000e-30 : f32
    %24 = vector.broadcast %cst_12 : f32 to vector<12x1xf32>
    %25 = arith.maximumf %23, %24 : vector<12x1xf32>
    %26 = tpu.reciprocal %25 {approx = true} : vector<12x1xf32> -> vector<12x1xf32>
    %27 = vector.broadcast %26 : vector<12x1xf32> to vector<12x32xf32>
    %28 = arith.mulf %21, %27 : vector<12x32xf32>
    %c0_13 = arith.constant 0 : index
    %c0_14 = arith.constant 0 : index
    %c0_15 = arith.constant 0 : index
    %29 = vector.load %arg3[%c0_13, %c0_14, %c0_15] : memref<1x12x1xf32, #tpu.memory_space<vmem>>, vector<1x12x1xf32>
    %30 = vector.shape_cast %29 : vector<1x12x1xf32> to vector<12x1xf32>
    %31 = vector.broadcast %30 : vector<12x1xf32> to vector<12x32xf32>
    %32 = arith.mulf %28, %31 : vector<12x32xf32>
    %c0_16 = arith.constant 0 : index
    %c0_17 = arith.constant 0 : index
    %c0_18 = arith.constant 0 : index
    %33 = vector.load %arg4[%c0_16, %c0_17, %c0_18] : memref<1x12x128xf32, #tpu.memory_space<vmem>>, vector<1x12x128xf32>
    %34 = vector.shape_cast %33 : vector<1x12x128xf32> to vector<12x128xf32>
    %35 = tpu.concatenate %34, %32 in 1 : vector<12x128xf32>, vector<12x32xf32> -> vector<12x160xf32>
    %c0_19 = arith.constant 0 : index
    %c0_20 = arith.constant 0 : index
    %c0_21 = arith.constant 0 : index
    %36 = vector.load %arg13[%c0_19, %c0_20, %c0_21] : memref<1x12x160xf32, #tpu.memory_space<vmem>>, vector<1x12x160xf32>
    %37 = vector.shape_cast %36 : vector<1x12x160xf32> to vector<12x160xf32>
    %38 = vector.shape_cast %35 : vector<12x160xf32> to vector<1x12x160xf32>
    tpu.vector_store %arg13[%c0_19, %c0_20, %c0_21], %38 {strides = array<i32>} : memref<1x12x160xf32, #tpu.memory_space<vmem>>, vector<1x12x160xf32>,
    %39 = arith.truncf %35 : vector<12x160xf32> to vector<12x160xbf16>
    %c0_22 = arith.constant 0 : index
    %c0_23 = arith.constant 0 : index
    %40 = vector.load %arg7[%c0_22, %c0_23] : memref<160x32xbf16, #tpu.memory_space<vmem>>, vector<160x32xbf16>
    %cst_24 = arith.constant dense<0.000000e+00> : vector<12x32xf32>
    %41 = tpu.matmul %39, %40, %cst_24 {dimension_numbers = #tpu.dot_dimension_numbers<[1], [0], [0], [1], [0, 0, 1, 1], [], []>} : vector<12x160xbf16>, vector<160x32xbf16>, vector<12x32xf32> -> vector<12x32xf32>
    %c0_25 = arith.constant 0 : index
    %c0_26 = arith.constant 0 : index
    %42 = vector.load %arg8[%c0_25, %c0_26] : memref<1x32xf32, #tpu.memory_space<vmem>>, vector<1x32xf32>
    %43 = vector.broadcast %42 : vector<1x32xf32> to vector<12x32xf32>
    %44 = arith.addf %41, %43 : vector<12x32xf32>
    %cst_27 = arith.constant 0.000000e+00 : f32
    %45 = vector.broadcast %cst_27 : f32 to vector<12x32xf32>
    %46 = arith.maximumf %44, %45 : vector<12x32xf32>
    %47 = arith.truncf %46 : vector<12x32xf32> to vector<12x32xbf16>
    %c0_28 = arith.constant 0 : index
    %c0_29 = arith.constant 0 : index
    %48 = vector.load %arg9[%c0_28, %c0_29] : memref<32x32xbf16, #tpu.memory_space<vmem>>, vector<32x32xbf16>
    %cst_30 = arith.constant dense<0.000000e+00> : vector<12x32xf32>
    %49 = tpu.matmul %47, %48, %cst_30 {dimension_numbers = #tpu.dot_dimension_numbers<[1], [0], [0], [1], [0, 0, 1, 1], [], []>} : vector<12x32xbf16>, vector<32x32xbf16>, vector<12x32xf32> -> vector<12x32xf32>
    %c0_31 = arith.constant 0 : index
    %c0_32 = arith.constant 0 : index
    %50 = vector.load %arg10[%c0_31, %c0_32] : memref<1x32xf32, #tpu.memory_space<vmem>>, vector<1x32xf32>
    %51 = vector.broadcast %50 : vector<1x32xf32> to vector<12x32xf32>
    %52 = arith.addf %49, %51 : vector<12x32xf32>
    %cst_33 = arith.constant 0.000000e+00 : f32
    %53 = vector.broadcast %cst_33 : f32 to vector<12x32xf32>
    %54 = arith.maximumf %52, %53 : vector<12x32xf32>
    %55 = arith.truncf %54 : vector<12x32xf32> to vector<12x32xbf16>
    %c0_34 = arith.constant 0 : index
    %c0_35 = arith.constant 0 : index
    %56 = vector.load %arg11[%c0_34, %c0_35] : memref<32x128xbf16, #tpu.memory_space<vmem>>, vector<32x128xbf16>
    %cst_36 = arith.constant dense<0.000000e+00> : vector<12x128xf32>
    %57 = tpu.matmul %55, %56, %cst_36 {dimension_numbers = #tpu.dot_dimension_numbers<[1], [0], [0], [1], [0, 0, 1, 1], [], []>} : vector<12x32xbf16>, vector<32x128xbf16>, vector<12x128xf32> -> vector<12x128xf32>
    %c0_37 = arith.constant 0 : index
    %c0_38 = arith.constant 0 : index
    %58 = vector.load %arg12[%c0_37, %c0_38] : memref<1x128xf32, #tpu.memory_space<vmem>>, vector<1x128xf32>
    %59 = vector.broadcast %58 : vector<1x128xf32> to vector<12x128xf32>
    %60 = arith.addf %57, %59 : vector<12x128xf32>
    %c0_39 = arith.constant 0 : index
    %c0_40 = arith.constant 0 : index
    %c0_41 = arith.constant 0 : index
    %61 = vector.load %arg14[%c0_39, %c0_40, %c0_41] : memref<1x12x128xf32, #tpu.memory_space<vmem>>, vector<1x12x128xf32>
    %62 = vector.shape_cast %61 : vector<1x12x128xf32> to vector<12x128xf32>
    %63 = vector.shape_cast %60 : vector<12x128xf32> to vector<1x12x128xf32>
    tpu.vector_store %arg14[%c0_39, %c0_40, %c0_41], %63 {strides = array<i32>} : memref<1x12x128xf32, #tpu.memory_space<vmem>>, vector<1x12x128xf32>,
    %cst_42 = arith.constant dense<0xFF800000> : vector<12xf32>
    %64 = vector.multi_reduction <maximumf>, %60, %cst_42 [1] : vector<12x128xf32> to vector<12xf32>
    %65 = vector.shape_cast %64 : vector<12xf32> to vector<12x1xf32>
    %66 = vector.broadcast %65 : vector<12x1xf32> to vector<12x128xf32>
    %67 = arith.subf %60, %66 : vector<12x128xf32>
    %68 = math.exp %67 : vector<12x128xf32>
    %cst_43 = arith.constant dense<0.000000e+00> : vector<12xf32>
    %69 = vector.multi_reduction <add>, %68, %cst_43 [1] : vector<12x128xf32> to vector<12xf32>
    %70 = vector.shape_cast %69 : vector<12xf32> to vector<12x1xf32>
    %71 = tpu.reciprocal %70 {approx = true} : vector<12x1xf32> -> vector<12x1xf32>
    %72 = vector.broadcast %71 : vector<12x1xf32> to vector<12x128xf32>
    %73 = arith.mulf %68, %72 : vector<12x128xf32>
    %c0_44 = arith.constant 0 : index
    %c0_45 = arith.constant 0 : index
    %c0_46 = arith.constant 0 : index
    %74 = vector.load %arg15[%c0_44, %c0_45, %c0_46] : memref<1x12x128xf32, #tpu.memory_space<vmem>>, vector<1x12x128xf32>
    %75 = vector.shape_cast %74 : vector<1x12x128xf32> to vector<12x128xf32>
    %76 = vector.shape_cast %73 : vector<12x128xf32> to vector<1x12x128xf32>
    tpu.vector_store %arg15[%c0_44, %c0_45, %c0_46], %76 {strides = array<i32>} : memref<1x12x128xf32, #tpu.memory_space<vmem>>, vector<1x12x128xf32>,
    return
  }
  func.func @transform_0(%arg0: i32) -> (i32, i32, i32) {
    %c0_i32 = arith.constant 0 : i32
    %c0_i32_0 = arith.constant 0 : i32
    %c0_i32_1 = arith.constant 0 : i32
    return %arg0, %c0_i32, %c0_i32_0 : i32, i32, i32
  }
  func.func @transform_1(%arg0: i32) -> (i32, i32, i32) {
    %c0_i32 = arith.constant 0 : i32
    %c0_i32_0 = arith.constant 0 : i32
    %c0_i32_1 = arith.constant 0 : i32
    return %arg0, %c0_i32, %c0_i32_0 : i32, i32, i32
  }
  func.func @transform_2(%arg0: i32) -> (i32, i32, i32) {
    %c0_i32 = arith.constant 0 : i32
    %c0_i32_0 = arith.constant 0 : i32
    %c0_i32_1 = arith.constant 0 : i32
    return %arg0, %c0_i32, %c0_i32_0 : i32, i32, i32
  }
  func.func @transform_3(%arg0: i32) -> (i32, i32, i32) {
    %c0_i32 = arith.constant 0 : i32
    %c0_i32_0 = arith.constant 0 : i32
    %c0_i32_1 = arith.constant 0 : i32
    return %arg0, %c0_i32, %c0_i32_0 : i32, i32, i32
  }
  func.func @transform_4(%arg0: i32) -> (i32, i32) {
    %c0_i32 = arith.constant 0 : i32
    %c0_i32_0 = arith.constant 0 : i32
    %c0_i32_1 = arith.constant 0 : i32
    return %c0_i32, %c0_i32_0 : i32, i32
  }
  func.func @transform_5(%arg0: i32) -> (i32, i32) {
    %c0_i32 = arith.constant 0 : i32
    %c0_i32_0 = arith.constant 0 : i32
    %c0_i32_1 = arith.constant 0 : i32
    return %c0_i32, %c0_i32_0 : i32, i32
  }
  func.func @transform_6(%arg0: i32) -> (i32, i32) {
    %c0_i32 = arith.constant 0 : i32
    %c0_i32_0 = arith.constant 0 : i32
    %c0_i32_1 = arith.constant 0 : i32
    return %c0_i32, %c0_i32_0 : i32, i32
  }
  func.func @transform_7(%arg0: i32) -> (i32, i32) {
    %c0_i32 = arith.constant 0 : i32
    %c0_i32_0 = arith.constant 0 : i32
    %c0_i32_1 = arith.constant 0 : i32
    return %c0_i32, %c0_i32_0 : i32, i32
  }
  func.func @transform_8(%arg0: i32) -> (i32, i32) {
    %c0_i32 = arith.constant 0 : i32
    %c0_i32_0 = arith.constant 0 : i32
    %c0_i32_1 = arith.constant 0 : i32
    return %c0_i32, %c0_i32_0 : i32, i32
  }
  func.func @transform_9(%arg0: i32) -> (i32, i32) {
    %c0_i32 = arith.constant 0 : i32
    %c0_i32_0 = arith.constant 0 : i32
    %c0_i32_1 = arith.constant 0 : i32
    return %c0_i32, %c0_i32_0 : i32, i32
  }
  func.func @transform_10(%arg0: i32) -> (i32, i32) {
    %c0_i32 = arith.constant 0 : i32
    %c0_i32_0 = arith.constant 0 : i32
    %c0_i32_1 = arith.constant 0 : i32
    return %c0_i32, %c0_i32_0 : i32, i32
  }
  func.func @transform_11(%arg0: i32) -> (i32, i32) {
    %c0_i32 = arith.constant 0 : i32
    %c0_i32_0 = arith.constant 0 : i32
    %c0_i32_1 = arith.constant 0 : i32
    return %c0_i32, %c0_i32_0 : i32, i32
  }
  func.func @transform_12(%arg0: i32) -> (i32, i32, i32) {
    %c0_i32 = arith.constant 0 : i32
    %c0_i32_0 = arith.constant 0 : i32
    %c0_i32_1 = arith.constant 0 : i32
    return %arg0, %c0_i32, %c0_i32_0 : i32, i32, i32
  }
  func.func @transform_13(%arg0: i32) -> (i32, i32, i32) {
    %c0_i32 = arith.constant 0 : i32
    %c0_i32_0 = arith.constant 0 : i32
    %c0_i32_1 = arith.constant 0 : i32
    return %arg0, %c0_i32, %c0_i32_0 : i32, i32, i32
  }
  func.func @transform_14(%arg0: i32) -> (i32, i32, i32) {
    %c0_i32 = arith.constant 0 : i32
    %c0_i32_0 = arith.constant 0 : i32
    %c0_i32_1 = arith.constant 0 : i32
    return %arg0, %c0_i32, %c0_i32_0 : i32, i32, i32
  }
}

module attributes {stable_mosaic.version = 11 : i64} {
  func.func @_pair_head_kernel(%arg0: i32, %arg1: memref<1x4x160xf32, #tpu.memory_space<vmem>>, %arg2: memref<1x16x4xbf16, #tpu.memory_space<vmem>>, %arg3: memref<1x16x4xbf16, #tpu.memory_space<vmem>>, %arg4: memref<1x16x64xf32, #tpu.memory_space<vmem>>, %arg5: memref<160x32xbf16, #tpu.memory_space<vmem>>, %arg6: memref<1x32xf32, #tpu.memory_space<vmem>>, %arg7: memref<160x8xbf16, #tpu.memory_space<vmem>>, %arg8: memref<1x8xf32, #tpu.memory_space<vmem>>, %arg9: memref<8x8xbf16, #tpu.memory_space<vmem>>, %arg10: memref<1x8xf32, #tpu.memory_space<vmem>>, %arg11: memref<8x128xbf16, #tpu.memory_space<vmem>>, %arg12: memref<1x128xf32, #tpu.memory_space<vmem>>, %arg13: memref<1x16x128xf32, #tpu.memory_space<vmem>>, %arg14: memref<1x16x128xf32, #tpu.memory_space<vmem>>) attributes {dimension_semantics = [#tpu.dimension_semantics<parallel>], iteration_bounds = array<i64: 2>, scalar_prefetch = 0 : i64, scratch_operands = 0 : i64, tpu.core_type = #tpu.core_type<tc>, window_params = [{transform_indices = @transform_0, window_bounds = array<i64: 1, 4, 160>}, {transform_indices = @transform_1, window_bounds = array<i64: 1, 16, 4>}, {transform_indices = @transform_2, window_bounds = array<i64: 1, 16, 4>}, {transform_indices = @transform_3, window_bounds = array<i64: 1, 16, 64>}, {pipeline_mode = #tpu.pipeline_mode<synchronous>, transform_indices = @transform_4, window_bounds = array<i64: 160, 32>}, {pipeline_mode = #tpu.pipeline_mode<synchronous>, transform_indices = @transform_5, window_bounds = array<i64: 1, 32>}, {pipeline_mode = #tpu.pipeline_mode<synchronous>, transform_indices = @transform_6, window_bounds = array<i64: 160, 8>}, {pipeline_mode = #tpu.pipeline_mode<synchronous>, transform_indices = @transform_7, window_bounds = array<i64: 1, 8>}, {pipeline_mode = #tpu.pipeline_mode<synchronous>, transform_indices = @transform_8, window_bounds = array<i64: 8, 8>}, {pipeline_mode = #tpu.pipeline_mode<synchronous>, transform_indices = @transform_9, window_bounds = array<i64: 1, 8>}, {pipeline_mode = #tpu.pipeline_mode<synchronous>, transform_indices = @transform_10, window_bounds = array<i64: 8, 128>}, {pipeline_mode = #tpu.pipeline_mode<synchronous>, transform_indices = @transform_11, window_bounds = array<i64: 1, 128>}, {transform_indices = @transform_12, window_bounds = array<i64: 1, 16, 128>}, {transform_indices = @transform_13, window_bounds = array<i64: 1, 16, 128>}]} {
    %c0 = arith.constant 0 : index
    %c0_0 = arith.constant 0 : index
    %c0_1 = arith.constant 0 : index
    %0 = vector.load %arg1[%c0, %c0_0, %c0_1] : memref<1x4x160xf32, #tpu.memory_space<vmem>>, vector<1x4x160xf32>
    %1 = vector.shape_cast %0 : vector<1x4x160xf32> to vector<4x160xf32>
    %2 = arith.truncf %1 : vector<4x160xf32> to vector<4x160xbf16>
    %c0_2 = arith.constant 0 : index
    %c0_3 = arith.constant 0 : index
    %3 = vector.load %arg5[%c0_2, %c0_3] : memref<160x32xbf16, #tpu.memory_space<vmem>>, vector<160x32xbf16>
    %cst = arith.constant dense<0.000000e+00> : vector<4x32xf32>
    %4 = tpu.matmul %2, %3, %cst {dimension_numbers = #tpu.dot_dimension_numbers<[1], [0], [0], [1], [0, 0, 1, 1], [], []>} : vector<4x160xbf16>, vector<160x32xbf16>, vector<4x32xf32> -> vector<4x32xf32>
    %c0_4 = arith.constant 0 : index
    %c0_5 = arith.constant 0 : index
    %5 = vector.load %arg6[%c0_4, %c0_5] : memref<1x32xf32, #tpu.memory_space<vmem>>, vector<1x32xf32>
    %6 = vector.broadcast %5 : vector<1x32xf32> to vector<4x32xf32>
    %7 = arith.addf %4, %6 : vector<4x32xf32>
    %cst_6 = arith.constant 0.000000e+00 : f32
    %8 = vector.broadcast %cst_6 : f32 to vector<4x32xf32>
    %9 = arith.maximumf %7, %8 : vector<4x32xf32>
    %10 = arith.truncf %9 : vector<4x32xf32> to vector<4x32xbf16>
    %c0_7 = arith.constant 0 : index
    %c0_8 = arith.constant 0 : index
    %c0_9 = arith.constant 0 : index
    %11 = vector.load %arg2[%c0_7, %c0_8, %c0_9] : memref<1x16x4xbf16, #tpu.memory_space<vmem>>, vector<1x16x4xbf16>
    %12 = vector.shape_cast %11 : vector<1x16x4xbf16> to vector<16x4xbf16>
    %cst_10 = arith.constant dense<0.000000e+00> : vector<16x32xf32>
    %13 = tpu.matmul %12, %10, %cst_10 {dimension_numbers = #tpu.dot_dimension_numbers<[1], [0], [0], [1], [0, 0, 1, 1], [], []>} : vector<16x4xbf16>, vector<4x32xbf16>, vector<16x32xf32> -> vector<16x32xf32>
    %c0_11 = arith.constant 0 : index
    %c0_12 = arith.constant 0 : index
    %c0_13 = arith.constant 0 : index
    %14 = vector.load %arg3[%c0_11, %c0_12, %c0_13] : memref<1x16x4xbf16, #tpu.memory_space<vmem>>, vector<1x16x4xbf16>
    %15 = vector.shape_cast %14 : vector<1x16x4xbf16> to vector<16x4xbf16>
    %cst_14 = arith.constant dense<0.000000e+00> : vector<16x32xf32>
    %16 = tpu.matmul %15, %10, %cst_14 {dimension_numbers = #tpu.dot_dimension_numbers<[1], [0], [0], [1], [0, 0, 1, 1], [], []>} : vector<16x4xbf16>, vector<4x32xbf16>, vector<16x32xf32> -> vector<16x32xf32>
    %17 = arith.mulf %13, %16 : vector<16x32xf32>
    %c0_15 = arith.constant 0 : index
    %c0_16 = arith.constant 0 : index
    %c0_17 = arith.constant 0 : index
    %18 = vector.load %arg4[%c0_15, %c0_16, %c0_17] : memref<1x16x64xf32, #tpu.memory_space<vmem>>, vector<1x16x64xf32>
    %19 = vector.shape_cast %18 : vector<1x16x64xf32> to vector<16x64xf32>
    %20 = tpu.concatenate %13, %16, %17, %19 in 1 : vector<16x32xf32>, vector<16x32xf32>, vector<16x32xf32>, vector<16x64xf32> -> vector<16x160xf32>
    %21 = arith.truncf %20 : vector<16x160xf32> to vector<16x160xbf16>
    %c0_18 = arith.constant 0 : index
    %c0_19 = arith.constant 0 : index
    %22 = vector.load %arg7[%c0_18, %c0_19] : memref<160x8xbf16, #tpu.memory_space<vmem>>, vector<160x8xbf16>
    %cst_20 = arith.constant dense<0.000000e+00> : vector<16x8xf32>
    %23 = tpu.matmul %21, %22, %cst_20 {dimension_numbers = #tpu.dot_dimension_numbers<[1], [0], [0], [1], [0, 0, 1, 1], [], []>} : vector<16x160xbf16>, vector<160x8xbf16>, vector<16x8xf32> -> vector<16x8xf32>
    %c0_21 = arith.constant 0 : index
    %c0_22 = arith.constant 0 : index
    %24 = vector.load %arg8[%c0_21, %c0_22] : memref<1x8xf32, #tpu.memory_space<vmem>>, vector<1x8xf32>
    %25 = vector.broadcast %24 : vector<1x8xf32> to vector<16x8xf32>
    %26 = arith.addf %23, %25 : vector<16x8xf32>
    %cst_23 = arith.constant 0.000000e+00 : f32
    %27 = vector.broadcast %cst_23 : f32 to vector<16x8xf32>
    %28 = arith.maximumf %26, %27 : vector<16x8xf32>
    %29 = arith.truncf %28 : vector<16x8xf32> to vector<16x8xbf16>
    %c0_24 = arith.constant 0 : index
    %c0_25 = arith.constant 0 : index
    %30 = vector.load %arg9[%c0_24, %c0_25] : memref<8x8xbf16, #tpu.memory_space<vmem>>, vector<8x8xbf16>
    %cst_26 = arith.constant dense<0.000000e+00> : vector<16x8xf32>
    %31 = tpu.matmul %29, %30, %cst_26 {dimension_numbers = #tpu.dot_dimension_numbers<[1], [0], [0], [1], [0, 0, 1, 1], [], []>} : vector<16x8xbf16>, vector<8x8xbf16>, vector<16x8xf32> -> vector<16x8xf32>
    %c0_27 = arith.constant 0 : index
    %c0_28 = arith.constant 0 : index
    %32 = vector.load %arg10[%c0_27, %c0_28] : memref<1x8xf32, #tpu.memory_space<vmem>>, vector<1x8xf32>
    %33 = vector.broadcast %32 : vector<1x8xf32> to vector<16x8xf32>
    %34 = arith.addf %31, %33 : vector<16x8xf32>
    %cst_29 = arith.constant 0.000000e+00 : f32
    %35 = vector.broadcast %cst_29 : f32 to vector<16x8xf32>
    %36 = arith.maximumf %34, %35 : vector<16x8xf32>
    %37 = arith.truncf %36 : vector<16x8xf32> to vector<16x8xbf16>
    %c0_30 = arith.constant 0 : index
    %c0_31 = arith.constant 0 : index
    %38 = vector.load %arg11[%c0_30, %c0_31] : memref<8x128xbf16, #tpu.memory_space<vmem>>, vector<8x128xbf16>
    %cst_32 = arith.constant dense<0.000000e+00> : vector<16x128xf32>
    %39 = tpu.matmul %37, %38, %cst_32 {dimension_numbers = #tpu.dot_dimension_numbers<[1], [0], [0], [1], [0, 0, 1, 1], [], []>} : vector<16x8xbf16>, vector<8x128xbf16>, vector<16x128xf32> -> vector<16x128xf32>
    %c0_33 = arith.constant 0 : index
    %c0_34 = arith.constant 0 : index
    %40 = vector.load %arg12[%c0_33, %c0_34] : memref<1x128xf32, #tpu.memory_space<vmem>>, vector<1x128xf32>
    %41 = vector.broadcast %40 : vector<1x128xf32> to vector<16x128xf32>
    %42 = arith.addf %39, %41 : vector<16x128xf32>
    %c0_35 = arith.constant 0 : index
    %c0_36 = arith.constant 0 : index
    %c0_37 = arith.constant 0 : index
    %43 = vector.load %arg13[%c0_35, %c0_36, %c0_37] : memref<1x16x128xf32, #tpu.memory_space<vmem>>, vector<1x16x128xf32>
    %44 = vector.shape_cast %43 : vector<1x16x128xf32> to vector<16x128xf32>
    %45 = vector.shape_cast %42 : vector<16x128xf32> to vector<1x16x128xf32>
    tpu.vector_store %arg13[%c0_35, %c0_36, %c0_37], %45 {strides = array<i32>} : memref<1x16x128xf32, #tpu.memory_space<vmem>>, vector<1x16x128xf32>,
    %cst_38 = arith.constant dense<0xFF800000> : vector<16xf32>
    %46 = vector.multi_reduction <maximumf>, %42, %cst_38 [1] : vector<16x128xf32> to vector<16xf32>
    %47 = vector.shape_cast %46 : vector<16xf32> to vector<16x1xf32>
    %48 = vector.broadcast %47 : vector<16x1xf32> to vector<16x128xf32>
    %49 = arith.subf %42, %48 : vector<16x128xf32>
    %50 = math.exp %49 : vector<16x128xf32>
    %cst_39 = arith.constant dense<0.000000e+00> : vector<16xf32>
    %51 = vector.multi_reduction <add>, %50, %cst_39 [1] : vector<16x128xf32> to vector<16xf32>
    %52 = vector.shape_cast %51 : vector<16xf32> to vector<16x1xf32>
    %53 = tpu.reciprocal %52 {approx = true} : vector<16x1xf32> -> vector<16x1xf32>
    %54 = vector.broadcast %53 : vector<16x1xf32> to vector<16x128xf32>
    %55 = arith.mulf %50, %54 : vector<16x128xf32>
    %c0_40 = arith.constant 0 : index
    %c0_41 = arith.constant 0 : index
    %c0_42 = arith.constant 0 : index
    %56 = vector.load %arg14[%c0_40, %c0_41, %c0_42] : memref<1x16x128xf32, #tpu.memory_space<vmem>>, vector<1x16x128xf32>
    %57 = vector.shape_cast %56 : vector<1x16x128xf32> to vector<16x128xf32>
    %58 = vector.shape_cast %55 : vector<16x128xf32> to vector<1x16x128xf32>
    tpu.vector_store %arg14[%c0_40, %c0_41, %c0_42], %58 {strides = array<i32>} : memref<1x16x128xf32, #tpu.memory_space<vmem>>, vector<1x16x128xf32>,
    return
  }
  func.func @transform_0(%arg0: i32) -> (i32, i32, i32) {
    %c0_i32 = arith.constant 0 : i32
    %c0_i32_0 = arith.constant 0 : i32
    %c0_i32_1 = arith.constant 0 : i32
    return %arg0, %c0_i32, %c0_i32_0 : i32, i32, i32
  }
  func.func @transform_1(%arg0: i32) -> (i32, i32, i32) {
    %c0_i32 = arith.constant 0 : i32
    %c0_i32_0 = arith.constant 0 : i32
    %c0_i32_1 = arith.constant 0 : i32
    return %arg0, %c0_i32, %c0_i32_0 : i32, i32, i32
  }
  func.func @transform_2(%arg0: i32) -> (i32, i32, i32) {
    %c0_i32 = arith.constant 0 : i32
    %c0_i32_0 = arith.constant 0 : i32
    %c0_i32_1 = arith.constant 0 : i32
    return %arg0, %c0_i32, %c0_i32_0 : i32, i32, i32
  }
  func.func @transform_3(%arg0: i32) -> (i32, i32, i32) {
    %c0_i32 = arith.constant 0 : i32
    %c0_i32_0 = arith.constant 0 : i32
    %c0_i32_1 = arith.constant 0 : i32
    return %arg0, %c0_i32, %c0_i32_0 : i32, i32, i32
  }
  func.func @transform_4(%arg0: i32) -> (i32, i32) {
    %c0_i32 = arith.constant 0 : i32
    %c0_i32_0 = arith.constant 0 : i32
    %c0_i32_1 = arith.constant 0 : i32
    return %c0_i32, %c0_i32_0 : i32, i32
  }
  func.func @transform_5(%arg0: i32) -> (i32, i32) {
    %c0_i32 = arith.constant 0 : i32
    %c0_i32_0 = arith.constant 0 : i32
    %c0_i32_1 = arith.constant 0 : i32
    return %c0_i32, %c0_i32_0 : i32, i32
  }
  func.func @transform_6(%arg0: i32) -> (i32, i32) {
    %c0_i32 = arith.constant 0 : i32
    %c0_i32_0 = arith.constant 0 : i32
    %c0_i32_1 = arith.constant 0 : i32
    return %c0_i32, %c0_i32_0 : i32, i32
  }
  func.func @transform_7(%arg0: i32) -> (i32, i32) {
    %c0_i32 = arith.constant 0 : i32
    %c0_i32_0 = arith.constant 0 : i32
    %c0_i32_1 = arith.constant 0 : i32
    return %c0_i32, %c0_i32_0 : i32, i32
  }
  func.func @transform_8(%arg0: i32) -> (i32, i32) {
    %c0_i32 = arith.constant 0 : i32
    %c0_i32_0 = arith.constant 0 : i32
    %c0_i32_1 = arith.constant 0 : i32
    return %c0_i32, %c0_i32_0 : i32, i32
  }
  func.func @transform_9(%arg0: i32) -> (i32, i32) {
    %c0_i32 = arith.constant 0 : i32
    %c0_i32_0 = arith.constant 0 : i32
    %c0_i32_1 = arith.constant 0 : i32
    return %c0_i32, %c0_i32_0 : i32, i32
  }
  func.func @transform_10(%arg0: i32) -> (i32, i32) {
    %c0_i32 = arith.constant 0 : i32
    %c0_i32_0 = arith.constant 0 : i32
    %c0_i32_1 = arith.constant 0 : i32
    return %c0_i32, %c0_i32_0 : i32, i32
  }
  func.func @transform_11(%arg0: i32) -> (i32, i32) {
    %c0_i32 = arith.constant 0 : i32
    %c0_i32_0 = arith.constant 0 : i32
    %c0_i32_1 = arith.constant 0 : i32
    return %c0_i32, %c0_i32_0 : i32, i32
  }
  func.func @transform_12(%arg0: i32) -> (i32, i32, i32) {
    %c0_i32 = arith.constant 0 : i32
    %c0_i32_0 = arith.constant 0 : i32
    %c0_i32_1 = arith.constant 0 : i32
    return %arg0, %c0_i32, %c0_i32_0 : i32, i32, i32
  }
  func.func @transform_13(%arg0: i32) -> (i32, i32, i32) {
    %c0_i32 = arith.constant 0 : i32
    %c0_i32_0 = arith.constant 0 : i32
    %c0_i32_1 = arith.constant 0 : i32
    return %arg0, %c0_i32, %c0_i32_0 : i32, i32, i32
  }
}

</mosaic_0001>

<bundles_post_ra>
// kernel: transformers_crf_forward.4
= control target key start
LH: loop header
LB: loop body
LE: loop exit
PB: predicated region body
PF: predicated region fallthrough
CT: control target
= control target key end

     0   :  { %vm43_vm0 = vcmask 261120   ;;  %s185_s1 = inlined_call_operand.vmem [shape: bf16[32,32], index: 1, kind: input, shape index: {}]   ;;  %s186_s0 = inlined_call_operand.vmem [shape: f32[24,32], index: 0, kind: input, shape index: {}]   ;;  %s187_s2 = inlined_call_operand.vmem [shape: f32[1,32], index: 2, kind: input, shape index: {}]   ;;  %s188_s3 = inlined_call_operand.vmem [shape: f32[24,32], index: 3, kind: output, shape index: {}]  }
   0x1   :  { %v125_v0 = vld [vmem:[%s185_s1 + $0x8] sm:$0xff]   ;;  %v126_v1 = vld [vmem:[%s185_s1] sm:$0xff]   ;;  %v17_v4 = vld [vmem:[%s186_s0 + $0x10] sm:$0xff] }
   0x2   :  { %117 = vmatprep.subr.bf16.mxu0 %v125_v0  ;;  %v15_v2 = vld [vmem:[%s186_s0] sm:$0xff]  ;;  %v16_v3 = vld [vmem:[%s186_s0 + $0x8] sm:$0xff]  ;;  %v19_v6 = vpack.c.bf16 %v17_v4, %v17_v4 }
   0x3   :  { %118 = vmatpush3.bf16.msra.mxu0 %v125_v0  ;;  %v18_v5 = vpack.c.bf16 %v16_v3, %v15_v2  ;;  %v108_v7 = vld [vmem:[%s187_s2] ss:$0 sm:$0xff] }
   0x4   :  { %119 = vmatprep.subr.bf16.mxu0 %v126_v1 }
   0x5   :  { %121 = vmatprep.mubr.msk.bf16.mxu0 %vm43_vm0, %v18_v5 }
   0x7   :  { %120 = vmatpush3.bf16.msra.mxu0 %v126_v1 }
   0xa   :  { %122 = vmatmul.mubr.msk.bf16.vlgmr.msra.gmra.mxu0 %vm43_vm0, %v19_v6 }
  0xca   :  { %v123_v8 = vpop.f32.mrf.mxu0 }
  0xcb   :  { %v93_v9 = vadd.f32 %v123_v8, %v108_v7 }
  0xcc   :  { %v84_v10 = vpop.f32.mrf.mxu0 }
  0xcd   :  { %127 = vtanh.f32 %v93_v9  ;;  %v85_v11 = vadd.f32 %v108_v7, %v84_v10 }
  0xce   :  { %v124_v12 = vpop.f32.mrf.mxu0 }
  0xcf   :  { %129 = vtanh.f32 %v85_v11 }
  0xd0   :  { %v87_v13 = vpop.f32.mrf.mxu0 }
  0xd1   :  { %v88_v14 = vadd.f32 %v108_v7, %v87_v13 }
  0xd3   :  { %131 = vtanh.f32 %v88_v14 }
  0xda   :  { %v128_v15 = vpop.eup %127 }
  0xdb   :  { %103 = vst.msk [vmem:[%s188_s3 + $0x10] sm:$0xff] %vm43_vm0, %v128_v15 }
  0xdc   :  { %v130_v16 = vpop.eup %129 }
  0xdd   :  { %101 = vst.msk [vmem:[%s188_s3] sm:$0xff] %vm43_vm0, %v130_v16 }
  0xe0   :  { %v132_v17 = vpop.eup %131 }
  0xe1   :  { %102 = vst.msk [vmem:[%s188_s3 + $0x8] sm:$0xff] %vm43_vm0, %v132_v17 }

// kernel: transformers_crf_forward.5
= control target key start
LH: loop header
LB: loop body
LE: loop exit
PB: predicated region body
PF: predicated region fallthrough
CT: control target
= control target key end

     0   :  { %s1791_s18 = smov 0   ;;  %s2109_s0 = inlined_call_operand.vmem [shape: f32[2,8,2,32], index: 0, kind: input, shape index: {}]   ;;  %s2110_s1 = inlined_call_operand.vmem [shape: bf16[2,32,64], index: 1, kind: input, shape index: {}]   ;;  %s2111_s2 = inlined_call_operand.vmem [shape: bf16[2,16,64], index: 2, kind: input, shape index: {}]   ;;  %s2112_s3 = inlined_call_operand.vmem [shape: f32[2,1,64], index: 3, kind: input, shape index: {}]   ;;  %s2113_s4 = inlined_call_operand.vmem [shape: s32[2,1], index: 4, kind: input, shape index: {}]   ;;  %s2114_s5 = inlined_call_operand.vmem [shape: f32[2,8,2,16], index: 5, kind: output, shape index: {}]  }
   0x1 LB: > { %s1458_s19 = sadd.s32 4294967295, %s1752_s18   ;;  %p1462_p0 = scmp.ge.s32.totalorder %s1752_s18, 1  ;;  %s1752_s18 = sphi %s1791_s18, %s15_s18  }
   0x2   : > { %p215_p1 = scmp.lt.s32.totalorder %s1752_s18, 3 }
   0x4   : > { %p216_p2 = pnand %p1462_p0, %p215_p1 }
   0x5   : > { %p256_p3 = scmp.lt.s32.totalorder (!%p216_p2), %s1458_s19, 1  ;;  %s1757_s11 = smov (!%p216_p2), 96  }
   0x6   : > { %219 = sbr.rel (%p216_p2) target bundleno = 5574 (0x15c6), region = 40  ;;  %s1758_s12 = smov (!%p216_p2), 16  }
   0x7   : > { %s1759_s13 = smov (!%p216_p2), 32   ;;  %s1760_s14 = smov (!%p216_p2), 80  }
   0xb   : > { %v1754_v0 = vmov 0.0   ;;  %s2116_s19 = smov (!%p256_p3, %s1458_s19), 1  ;;  %vm1755_vm0 = vmmov 0   ;;  %v1756_v1 = vmov 0   ;;  %vm352_vm1 = vcmask 261120  }
   0xc   : > { %1550 = vmatprep.subr.bf16.mxu0 %v1754_v0  ;;  %1556 = vmatprep.subr.bf16.mxu1 %v1754_v0  ;;  %s1508_s20 = sshll.u32 %s2116_s19, 3  ;;  %s1811_s21 = sshll.u32 %s2116_s19, 4  ;;  %v1854_v7 = vld [vmem:[%s2113_s4] sm:$0x3]  ;;  %vm296_vm4 = vcmask 130048  }
   0xd   : > { %1552 = vmatprep.mubr.msk.bf16.mxu0 %vm1755_vm0, %v1754_v0  ;;  %1560 = vmatprep.mubr.msk.bf16.mxu1 %vm1755_vm0, %v1754_v0  ;;  %s270_s24 = scalar_lea.vmem %s2111_s2, %s1508_s20  ;;  %s265_s27 = scalar_lea.vmem %s2110_s1, %s1811_s21  ;;  %vm427_vm2 = vcmp.gt.s32.totalorder %v1854_v7, 0  ;;  %vm559_vm5 = vcmp.gt.s32.totalorder %v1854_v7, 1  ;;  %vm692_vm7 = vcmp.gt.s32.totalorder %v1854_v7, 2  ;;  %vm825_vm9 = vcmp.gt.s32.totalorder %v1854_v7, 3 }
   0xe   : > { %1677 = vset.pattern.permute.xlu1 %v1756_v1  ;;  %1678 = vset.pattern.permute.xlu0 %v1756_v1  ;;  %v1820_v2 = vld [vmem:[%s270_s24] sm:$0xff]   ;;  %s1826_s30 = scalar_lea.vmem %s2109_s0, %s1811_s21  ;;  %v1828_v3 = vld [vmem:[%s265_s27 + $0x8] sm:$0xff]   ;;  %v428_v8 = vsel %vm427_vm2, 1, %v1756_v1  ;;  %s273_s10 = scalar_lea.vmem %s2112_s3, %s2116_s19  ;;  %v560_v51 = vsel %vm559_vm5, 1, %v1756_v1  ;;  %vm958_vm11 = vcmp.gt.s32.totalorder %v1854_v7, 4  ;;  %vm1091_vm13 = vcmp.gt.s32.totalorder %v1854_v7, 5 }
   0xf   : > { %1551 = vmatpush3.bf16.msra.mxu0 %v1820_v2  ;;  %1557 = vmatpush3.bf16.msra.mxu1 %v1828_v3  ;;  %v1832_v4 = vld [vmem:[%s265_s27] sm:$0xff]   ;;  %vm1224_vm15 = vcmp.gt.s32.totalorder %v1854_v7, 6  ;;  %s2072_s17 = scalar_lea.vmem %s2114_s5, %s1811_s21  ;;  %vm438_vm2 = vcmask 123904  }
  0x10   : > { %v288_v5 = vld [vmem:[%s1826_s30] sm:$0x3]  ;;  %1564 = vmatprep.subr.bf16.mxu0 %v1754_v0  ;;  %1558 = vmatprep.subr.bf16.mxu1 %v1754_v0  ;;  %v1476_v31 = vld [vmem:[%s1826_s30 + $0x2] sm:$0x3]  ;;  %v1480_v63 = vld [vmem:[%s1826_s30 + $0x4] sm:$0x3] }
  0x11   : > { %v289_v6 = vpack.c.bf16 %v288_v5, %v288_v5  ;;  %430 = vperm.xlu1 %1677, %v428_v8   ;;  %v1862_v12 = vld [vmem:[%s273_s10] ss:$0 sm:$0xff]  ;;  %v443_v32 = vpack.c.bf16 %v1476_v31, %v1476_v31  ;;  %v576_v5 = vpack.c.bf16 %v1480_v63, %v1480_v63 }
  0x12   : > { %1553 = vmatmul.mubr.bf16.vlgmr.msra.gmra.mxu0 %v1756_v1 }
  0x13   : > { %1565 = vmatpush3.bf16.msra.mxu0 %v1820_v2  ;;  %1566 = vmatprep.mubr.msk.bf16.mxu0 %vm1755_vm0, %v1754_v0 }
  0x14   : > { %1559 = vmatpush3.bf16.msra.mxu1 %v1832_v4  ;;  %1578 = vmatprep.subr.bf16.mxu0 %v1754_v0 }
  0x15   : > { %1570 = vmatprep.subr.bf16.mxu1 %v1754_v0 }
  0x17   : > { %1561 = vmatmul.mubr.msk.bf16.vlgmr.msra.gmra.mxu1 %vm352_vm1, %v289_v6 }
  0x18   : > { %1571 = vmatpush3.bf16.msra.mxu1 %v1828_v3  ;;  %1574 = vmatprep.mubr.msk.bf16.mxu1 %vm1755_vm0, %v1754_v0 }
  0x19   : > { %1572 = vmatprep.subr.bf16.mxu1 %v1754_v0 }
  0x1c   : > { %1573 = vmatpush3.bf16.msra.mxu1 %v1832_v4 }
  0x1d   : > { %1584 = vmatprep.subr.bf16.mxu1 %v1754_v0 }
  0x1f   : > { %1575 = vmatmul.mubr.msk.bf16.vlgmr.msra.gmra.mxu1 %vm352_vm1, %v443_v32 }
  0x20   : > { %1585 = vmatpush3.bf16.msra.mxu1 %v1828_v3  ;;  %1588 = vmatprep.mubr.msk.bf16.mxu1 %vm1755_vm0, %v1754_v0 }
  0x21   : > { %1586 = vmatprep.subr.bf16.mxu1 %v1754_v0 }
  0x24   : > { %1587 = vmatpush3.bf16.msra.mxu1 %v1832_v4 }
  0x25   : > { %1598 = vmatprep.subr.bf16.mxu1 %v1754_v0 }
  0x27   : > { %1589 = vmatmul.mubr.msk.bf16.vlgmr.msra.gmra.mxu1 %vm352_vm1, %v576_v5 }
  0x28   : > { %1599 = vmatpush3.bf16.msra.mxu1 %v1828_v3  ;;  %1602 = vmatprep.mubr.msk.bf16.mxu1 %vm1755_vm0, %v1754_v0 }
  0x29   : > { %1600 = vmatprep.subr.bf16.mxu1 %v1754_v0 }
  0x2c   : > { %1601 = vmatpush3.bf16.msra.mxu1 %v1832_v4 }
  0x2d   : > { %1612 = vmatprep.subr.bf16.mxu1 %v1754_v0 }
  0x8c   : > { %v431_v34 = vpop.permute.xlu1 %430 }
  0x8d   : > { %vm432_vm3 = vcmp.eq.s32.totalorder %v431_v34, 1 }
  0xd2   : > { %v334_v9 = vpop.f32.mrf.mxu0 }
  0xd4   : > { %v1554_v10 = vpop.f32.mrf.mxu0 }
  0xd6   : > { %v337_v11 = vpop.f32.mrf.mxu0 }
  0xd7   : > { %v390_v13 = vpop.f32.mrf.mxu1 }
  0xd8   : > { %v391_v14 = vadd.f32 %v390_v13, %v334_v9  ;;  %v1555_v15 = vpop.f32.mrf.mxu0 }
  0xd9   : > { %v1562_v16 = vpop.f32.mrf.mxu1 }
  0xda   : > { %v402_v17 = vadd.f32 %v1862_v12, %v391_v14 }
  0xdb   : > { %v393_v18 = vpop.f32.mrf.mxu1 }
  0xdc   : > { %1682 = vtanh.f32 %v402_v17  ;;  %v403_v21 = vsub.f32 0.0, %v402_v17 }
  0xdd   : > { %v1563_v19 = vpop.f32.mrf.mxu1 }
  0xde   : > { %v404_v22 = vmul.f32 1.442695, %v403_v21 }
  0xdf   : > { %v528_v39 = vpop.f32.mrf.mxu1 }
  0xe0   : > { %1684 = vpow2.f32 %v404_v22 }
  0xe1   : > { %v1576_v40 = vpop.f32.mrf.mxu1 }
  0xe3   : > { %v531_v41 = vpop.f32.mrf.mxu1 }
  0xe5   : > { %v1577_v42 = vpop.f32.mrf.mxu1 }
  0xe7   : > { %v661_v14 = vpop.f32.mrf.mxu1 }
  0xe9   : > { %v1683_v20 = vpop.eup %1682  ;;  %v1590_v15 = vpop.f32.mrf.mxu1 }
  0xea   : > { %412 = vrot.lane.b32.xlu0 %v1683_v20, %s1757_s11 }
  0xeb   : > { %v664_v16 = vpop.f32.mrf.mxu1 }
  0xec   : > { %v1488_v16 = vld [vmem:[%s1826_s30 + $0x8] sm:$0x3] }
  0xed   : > { %v1685_v23 = vpop.eup %1684  ;;  %v1591_v17 = vpop.f32.mrf.mxu1 }
  0xee   : > { %v406_v24 = vadd.f32 1.0, %v1685_v23  ;;  %v842_v17 = vpack.c.bf16 %v1488_v16, %v1488_v16  ;;  %v1092_v16 = vsel %vm1091_vm13, 1, %v1756_v1 }
  0xf0   : > { %1686 = vrcp.f32 %v406_v24 }
  0xfd   : > { %v1687_v25 = vpop.eup %1686 }
  0xfe   : > { %v410_v28 = vmul.f32 0.0, %v1687_v25 }
 0x15c   : > { %v413_v26 = vpop.permute.xlu0 %412 }
 0x15d   : > { %v415_v27 = vmul.f32 %v1687_v25, %v413_v26  ;;  %v693_v26 = vsel %vm692_vm7, 1, %v1756_v1 }
 0x15f   : > { %417 = vrot.lane.b32.xlu0 %v415_v27, %s1758_s12 }
 0x1d1   : > { %v418_v29 = vpop.permute.xlu0 %417 }
 0x1d2   : > { %v420_v30 = vadd.f32 %v418_v29, %v410_v28 }
 0x1d4   : > { %1688 = vtanh.f32 %v420_v30  ;;  %v440_v59 = vsel %vm432_vm3, %v420_v30, 0.0 }
 0x1e1   : > { %v1689_v33 = vpop.eup %1688 }
 0x1e2   : > { %423 = vrot.lane.b32.xlu1 %v1689_v33, %s1759_s13 }
 0x254   : > { %v424_v35 = vpop.permute.xlu1 %423 }
 0x255   : > { %v426_v36 = vmul.f32 %v1687_v25, %v424_v35 }
 0x257   : > { %v1877_v37 = vsel %vm432_vm3, %v426_v36, 0.0 }
 0x258   : > { %v444_v38 = vpack.c.bf16 %v1877_v37, %v1877_v37 }
 0x25a   : > { %446 = vrot.lane.b32.xlu0 %v444_v38, %s1760_s14 }
 0x2cc   : > { %v447_v43 = vpop.permute.xlu0 %446 }
 0x2cd   : > { %1567 = vmatmul.mubr.msk.bf16.vlgmr.msra.gmra.mxu0 %vm296_vm4, %v447_v43 }
 0x2ce   : > { %1579 = vmatpush3.bf16.msra.mxu0 %v1820_v2  ;;  %1580 = vmatprep.mubr.msk.bf16.mxu0 %vm1755_vm0, %v1754_v0 }
 0x2cf   : > { %1592 = vmatprep.subr.bf16.mxu0 %v1754_v0 }
 0x38d   : > { %v485_v44 = vpop.f32.mrf.mxu0 }
 0x38e   : > { %v529_v45 = vadd.f32 %v528_v39, %v485_v44  ;;  %v1484_v39 = vld [vmem:[%s1826_s30 + $0x6] sm:$0x3] }
 0x38f   : > { %v1568_v46 = vpop.f32.mrf.mxu0  ;;  %v709_v40 = vpack.c.bf16 %v1484_v39, %v1484_v39 }
 0x390   : > { %v534_v47 = vadd.f32 %v1862_v12, %v529_v45 }
 0x391   : > { %v488_v48 = vpop.f32.mrf.mxu0  ;;  %1603 = vmatmul.mubr.msk.bf16.vlgmr.msra.gmra.mxu1 %vm352_vm1, %v709_v40 }
 0x392   : > { %1690 = vtanh.f32 %v534_v47  ;;  %v535_v52 = vsub.f32 0.0, %v534_v47  ;;  %1613 = vmatpush3.bf16.msra.mxu1 %v1828_v3  ;;  %1616 = vmatprep.mubr.msk.bf16.mxu1 %vm1755_vm0, %v1754_v0 }
 0x393   : > { %v1569_v49 = vpop.f32.mrf.mxu0  ;;  %1614 = vmatprep.subr.bf16.mxu1 %v1754_v0 }
 0x394   : > { %v536_v53 = vmul.f32 1.442695, %v535_v52 }
 0x396   : > { %1692 = vpow2.f32 %v536_v53  ;;  %1615 = vmatpush3.bf16.msra.mxu1 %v1832_v4 }
 0x397   : > { %1626 = vmatprep.subr.bf16.mxu1 %v1754_v0 }
 0x399   : > { %1617 = vmatmul.mubr.msk.bf16.vlgmr.msra.gmra.mxu1 %vm352_vm1, %v842_v17 }
 0x39a   : > { %1627 = vmatpush3.bf16.msra.mxu1 %v1828_v3  ;;  %1630 = vmatprep.mubr.msk.bf16.mxu1 %vm1755_vm0, %v1754_v0 }
 0x39b   : > { %1628 = vmatprep.subr.bf16.mxu1 %v1754_v0 }
 0x39e   : > { %1629 = vmatpush3.bf16.msra.mxu1 %v1832_v4 }
 0x39f   : > { %v1691_v50 = vpop.eup %1690  ;;  %1640 = vmatprep.subr.bf16.mxu1 %v1754_v0 }
 0x3a0   : > { %544 = vrot.lane.b32.xlu1 %v1691_v50, %s1757_s11 }
 0x3a3   : > { %v1693_v54 = vpop.eup %1692 }
 0x3a4   : > { %562 = vperm.xlu1 %1677, %v560_v51   ;;  %v538_v55 = vadd.f32 1.0, %v1693_v54 }
 0x3a6   : > { %1694 = vrcp.f32 %v538_v55 }
 0x3b3   : > { %v1695_v56 = vpop.eup %1694 }
 0x3b4   : > { %v542_v60 = vmul.f32 %v1695_v56, %v440_v59 }
 0x412   : > { %v545_v57 = vpop.permute.xlu1 %544 }
 0x413   : > { %v547_v58 = vmul.f32 %v1695_v56, %v545_v57 }
 0x415   : > { %549 = vrot.lane.b32.xlu0 %v547_v58, %s1758_s12 }
 0x41f   : > { %v1902_v8 = vpop.permute.xlu1 %562 }
 0x420   : > { %vm564_vm6 = vcmp.eq.s32.totalorder %v1902_v8, 1 }
 0x451   : > { %v794_v47 = vpop.f32.mrf.mxu1 }
 0x453   : > { %v1604_v48 = vpop.f32.mrf.mxu1 }
 0x455   : > { %v797_v49 = vpop.f32.mrf.mxu1 }
 0x457   : > { %v1605_v50 = vpop.f32.mrf.mxu1 }
 0x487   : > { %v550_v61 = vpop.permute.xlu0 %549 }
 0x488   : > { %v552_v62 = vadd.f32 %v550_v61, %v542_v60 }
 0x48a   : > { %1696 = vtanh.f32 %v552_v62  ;;  %v573_v34 = vsel %vm564_vm6, %v552_v62, %v440_v59  ;;  %v826_v59 = vsel %vm825_vm9, 1, %v1756_v1 }
 0x497   : > { %v1697_v6 = vpop.eup %1696 }
 0x498   : > { %555 = vrot.lane.b32.xlu0 %v1697_v6, %s1759_s13 }
 0x50a   : > { %v556_v9 = vpop.permute.xlu0 %555 }
 0x50b   : > { %v1904_v10 = vmul.f32 %v1695_v56, %v556_v9 }
 0x50d   : > { %v572_v11 = vsel %vm564_vm6, %v1904_v10, %v1877_v37 }
 0x50e   : > { %v577_v13 = vpack.c.bf16 %v572_v11, %v572_v11 }
 0x510   : > { %579 = vrot.lane.b32.xlu1 %v577_v13, %s1760_s14 }
 0x582   : > { %v580_v18 = vpop.permute.xlu1 %579 }
 0x583   : > { %1581 = vmatmul.mubr.msk.bf16.vlgmr.msra.gmra.mxu0 %vm296_vm4, %v580_v18 }
 0x584   : > { %1593 = vmatpush3.bf16.msra.mxu0 %v1820_v2  ;;  %1594 = vmatprep.mubr.msk.bf16.mxu0 %vm1755_vm0, %v1754_v0 }
 0x585   : > { %1606 = vmatprep.subr.bf16.mxu0 %v1754_v0 }
 0x643   : > { %v618_v19 = vpop.f32.mrf.mxu0 }
 0x644   : > { %v662_v20 = vadd.f32 %v661_v14, %v618_v19 }
 0x645   : > { %v1582_v21 = vpop.f32.mrf.mxu0 }
 0x646   : > { %v667_v22 = vadd.f32 %v1862_v12, %v662_v20 }
 0x647   : > { %v621_v23 = vpop.f32.mrf.mxu0 }
 0x648   : > { %1698 = vtanh.f32 %v667_v22  ;;  %v668_v27 = vsub.f32 0.0, %v667_v22 }
 0x649   : > { %v1583_v24 = vpop.f32.mrf.mxu0 }
 0x64a   : > { %v669_v28 = vmul.f32 1.442695, %v668_v27  ;;  %v927_v24 = vpop.f32.mrf.mxu1 }
 0x64c   : > { %1700 = vpow2.f32 %v669_v28 }
 0x655   : > { %v1699_v25 = vpop.eup %1698 }
 0x656   : > { %677 = vrot.lane.b32.xlu0 %v1699_v25, %s1757_s11  ;;  %v1618_v25 = vpop.f32.mrf.mxu1 }
 0x659   : > { %v1701_v29 = vpop.eup %1700 }
 0x65a   : > { %695 = vperm.xlu0 %1678, %v693_v26   ;;  %v671_v30 = vadd.f32 1.0, %v1701_v29  ;;  %v930_v26 = vpop.f32.mrf.mxu1 }
 0x65c   : > { %1702 = vrcp.f32 %v671_v30  ;;  %v1619_v27 = vpop.f32.mrf.mxu1 }
 0x669   : > { %v1703_v31 = vpop.eup %1702 }
 0x66a   : > { %v675_v35 = vmul.f32 %v1703_v31, %v573_v34 }
 0x6c8   : > { %v678_v32 = vpop.permute.xlu0 %677 }
 0x6c9   : > { %v680_v33 = vmul.f32 %v1703_v31, %v678_v32 }
 0x6cb   : > { %682 = vrot.lane.b32.xlu1 %v680_v33, %s1758_s12 }
 0x6d5   : > { %v1933_v42 = vpop.permute.xlu0 %695 }
 0x6d6   : > { %vm697_vm8 = vcmp.eq.s32.totalorder %v1933_v42, 1 }
 0x73d   : > { %v683_v36 = vpop.permute.xlu1 %682 }
 0x73e   : > { %v685_v38 = vadd.f32 %v683_v36, %v675_v35  ;;  %v959_v36 = vsel %vm958_vm11, 1, %v1756_v1 }
 0x740   : > { %1704 = vtanh.f32 %v685_v38 }
 0x74d   : > { %v1705_v41 = vpop.eup %1704 }
 0x74e   : > { %688 = vrot.lane.b32.xlu1 %v1705_v41, %s1759_s13 }
 0x7c0   : > { %v689_v43 = vpop.permute.xlu1 %688 }
 0x7c1   : > { %v1935_v44 = vmul.f32 %v1703_v31, %v689_v43 }
 0x7c3   : > { %v705_v45 = vsel %vm697_vm8, %v1935_v44, %v572_v11  ;;  %v706_v11 = vsel %vm697_vm8, %v685_v38, %v573_v34 }
 0x7c4   : > { %v710_v46 = vpack.c.bf16 %v705_v45, %v705_v45 }
 0x7c6   : > { %712 = vrot.lane.b32.xlu1 %v710_v46, %s1760_s14 }
 0x838   : > { %v713_v51 = vpop.permute.xlu1 %712 }
 0x839   : > { %1595 = vmatmul.mubr.msk.bf16.vlgmr.msra.gmra.mxu0 %vm296_vm4, %v713_v51  ;;  %v1492_v51 = vld [vmem:[%s1826_s30 + $0xa] sm:$0x3] }
 0x83a   : > { %1607 = vmatpush3.bf16.msra.mxu0 %v1820_v2  ;;  %1608 = vmatprep.mubr.msk.bf16.mxu0 %vm1755_vm0, %v1754_v0 }
 0x83b   : > { %1620 = vmatprep.subr.bf16.mxu0 %v1754_v0 }
 0x8f9   : > { %v751_v52 = vpop.f32.mrf.mxu0 }
 0x8fa   : > { %v795_v53 = vadd.f32 %v794_v47, %v751_v52  ;;  %v975_v52 = vpack.c.bf16 %v1492_v51, %v1492_v51  ;;  %v1225_v51 = vsel %vm1224_vm15, 1, %v1756_v1 }
 0x8fb   : > { %v1596_v54 = vpop.f32.mrf.mxu0 }
 0x8fc   : > { %v800_v55 = vadd.f32 %v1862_v12, %v795_v53  ;;  %1631 = vmatmul.mubr.msk.bf16.vlgmr.msra.gmra.mxu1 %vm352_vm1, %v975_v52 }
 0x8fd   : > { %v754_v56 = vpop.f32.mrf.mxu0  ;;  %1641 = vmatpush3.bf16.msra.mxu1 %v1828_v3  ;;  %1644 = vmatprep.mubr.msk.bf16.mxu1 %vm1755_vm0, %v1754_v0 }
 0x8fe   : > { %1706 = vtanh.f32 %v800_v55  ;;  %v801_v60 = vsub.f32 0.0, %v800_v55  ;;  %1642 = vmatprep.subr.bf16.mxu1 %v1754_v0 }
 0x8ff   : > { %v1597_v57 = vpop.f32.mrf.mxu0 }
 0x900   : > { %v802_v61 = vmul.f32 1.442695, %v801_v60 }
 0x901   : > { %1643 = vmatpush3.bf16.msra.mxu1 %v1832_v4 }
 0x902   : > { %1708 = vpow2.f32 %v802_v61  ;;  %1654 = vmatprep.subr.bf16.mxu1 %v1754_v0 }
 0x90b   : > { %v1707_v58 = vpop.eup %1706 }
 0x90c   : > { %810 = vrot.lane.b32.xlu0 %v1707_v58, %s1757_s11 }
 0x90f   : > { %v1709_v62 = vpop.eup %1708 }
 0x910   : > { %828 = vperm.xlu0 %1678, %v826_v59   ;;  %v804_v63 = vadd.f32 1.0, %v1709_v62 }
 0x912   : > { %1710 = vrcp.f32 %v804_v63 }
 0x91f   : > { %v1711_v5 = vpop.eup %1710 }
 0x920   : > { %v808_v13 = vmul.f32 %v1711_v5, %v706_v11 }
 0x97e   : > { %v811_v6 = vpop.permute.xlu0 %810 }
 0x97f   : > { %v813_v9 = vmul.f32 %v1711_v5, %v811_v6 }
 0x981   : > { %815 = vrot.lane.b32.xlu1 %v813_v9, %s1758_s12 }
 0x98b   : > { %v1963_v19 = vpop.permute.xlu0 %828 }
 0x98c   : > { %vm830_vm10 = vcmp.eq.s32.totalorder %v1963_v19, 1 }
 0x9bc   : > { %v1060_v59 = vpop.f32.mrf.mxu1 }
 0x9be   : > { %v1632_v60 = vpop.f32.mrf.mxu1 }
 0x9c0   : > { %v1063_v61 = vpop.f32.mrf.mxu1 }
 0x9c2   : > { %v1633_v62 = vpop.f32.mrf.mxu1 }
 0x9f3   : > { %v816_v14 = vpop.permute.xlu1 %815 }
 0x9f4   : > { %v818_v15 = vadd.f32 %v816_v14, %v808_v13 }
 0x9f6   : > { %1712 = vtanh.f32 %v818_v15  ;;  %v839_v47 = vsel %vm830_vm10, %v818_v15, %v706_v11 }
 0xa03   : > { %v1713_v18 = vpop.eup %1712 }
 0xa04   : > { %821 = vrot.lane.b32.xlu1 %v1713_v18, %s1759_s13 }
 0xa76   : > { %v822_v20 = vpop.permute.xlu1 %821 }
 0xa77   : > { %v1965_v21 = vmul.f32 %v1711_v5, %v822_v20 }
 0xa79   : > { %v838_v22 = vsel %vm830_vm10, %v1965_v21, %v705_v45 }
 0xa7a   : > { %v843_v23 = vpack.c.bf16 %v838_v22, %v838_v22 }
 0xa7c   : > { %845 = vrot.lane.b32.xlu0 %v843_v23, %s1760_s14 }
 0xaee   : > { %v846_v28 = vpop.permute.xlu0 %845 }
 0xaef   : > { %1609 = vmatmul.mubr.msk.bf16.vlgmr.msra.gmra.mxu0 %vm296_vm4, %v846_v28 }
 0xaf0   : > { %1621 = vmatpush3.bf16.msra.mxu0 %v1820_v2  ;;  %1622 = vmatprep.mubr.msk.bf16.mxu0 %vm1755_vm0, %v1754_v0 }
 0xaf1   : > { %1634 = vmatprep.subr.bf16.mxu0 %v1754_v0 }
 0xbaf   : > { %v884_v29 = vpop.f32.mrf.mxu0 }
 0xbb0   : > { %v928_v30 = vadd.f32 %v927_v24, %v884_v29 }
 0xbb1   : > { %v1610_v31 = vpop.f32.mrf.mxu0 }
 0xbb2   : > { %v933_v32 = vadd.f32 %v1862_v12, %v928_v30  ;;  %v1496_v30 = vld [vmem:[%s1826_s30 + $0xc] sm:$0x3] }
 0xbb3   : > { %v887_v33 = vpop.f32.mrf.mxu0  ;;  %v1108_v31 = vpack.c.bf16 %v1496_v30, %v1496_v30 }
 0xbb4   : > { %1714 = vtanh.f32 %v933_v32  ;;  %v934_v38 = vsub.f32 0.0, %v933_v32 }
 0xbb5   : > { %v1611_v34 = vpop.f32.mrf.mxu0  ;;  %1645 = vmatmul.mubr.msk.bf16.vlgmr.msra.gmra.mxu1 %vm352_vm1, %v1108_v31  ;;  %v698_v31 = vsel %vm697_vm8, %v1935_v44, 0.0 }
 0xbb6   : > { %v935_v39 = vmul.f32 1.442695, %v934_v38  ;;  %1655 = vmatpush3.bf16.msra.mxu1 %v1828_v3  ;;  %1658 = vmatprep.mubr.msk.bf16.mxu1 %vm1755_vm0, %v1754_v0 }
 0xbb7   : > { %1656 = vmatprep.subr.bf16.mxu1 %v1754_v0 }
 0xbb8   : > { %1716 = vpow2.f32 %v935_v39 }
 0xbba   : > { %1657 = vmatpush3.bf16.msra.mxu1 %v1832_v4 }
 0xbc1   : > { %v1715_v35 = vpop.eup %1714 }
 0xbc2   : > { %943 = vrot.lane.b32.xlu1 %v1715_v35, %s1757_s11 }
 0xbc5   : > { %v1717_v40 = vpop.eup %1716 }
 0xbc6   : > { %961 = vperm.xlu1 %1677, %v959_v36   ;;  %v937_v41 = vadd.f32 1.0, %v1717_v40 }
 0xbc8   : > { %1718 = vrcp.f32 %v937_v41 }
 0xbd5   : > { %v1719_v43 = vpop.eup %1718 }
 0xbd6   : > { %v941_v48 = vmul.f32 %v1719_v43, %v839_v47 }
 0xc34   : > { %v944_v45 = vpop.permute.xlu1 %943 }
 0xc35   : > { %v946_v46 = vmul.f32 %v1719_v43, %v944_v45 }
 0xc37   : > { %948 = vrot.lane.b32.xlu0 %v946_v46, %s1758_s12 }
 0xc41   : > { %v1993_v54 = vpop.permute.xlu1 %961 }
 0xc42   : > { %vm963_vm12 = vcmp.eq.s32.totalorder %v1993_v54, 1 }
 0xc75   : > { %v1193_v38 = vpop.f32.mrf.mxu1 }
 0xc77   : > { %v1646_v39 = vpop.f32.mrf.mxu1 }
 0xc79   : > { %v1196_v40 = vpop.f32.mrf.mxu1 }
 0xc7b   : > { %v1647_v41 = vpop.f32.mrf.mxu1 }
 0xca9   : > { %v949_v49 = vpop.permute.xlu0 %948 }
 0xcaa   : > { %v951_v50 = vadd.f32 %v949_v49, %v941_v48 }
 0xcac   : > { %1720 = vtanh.f32 %v951_v50  ;;  %v972_v26 = vsel %vm963_vm12, %v951_v50, %v839_v47 }
 0xcb9   : > { %v1721_v53 = vpop.eup %1720 }
 0xcba   : > { %954 = vrot.lane.b32.xlu0 %v1721_v53, %s1759_s13 }
 0xd2c   : > { %v955_v55 = vpop.permute.xlu0 %954 }
 0xd2d   : > { %v1995_v56 = vmul.f32 %v1719_v43, %v955_v55 }
 0xd2f   : > { %v971_v57 = vsel %vm963_vm12, %v1995_v56, %v838_v22 }
 0xd30   : > { %v976_v58 = vpack.c.bf16 %v971_v57, %v971_v57 }
 0xd32   : > { %978 = vrot.lane.b32.xlu1 %v976_v58, %s1760_s14 }
 0xda4   : > { %v979_v63 = vpop.permute.xlu1 %978 }
 0xda5   : > { %1623 = vmatmul.mubr.msk.bf16.vlgmr.msra.gmra.mxu0 %vm296_vm4, %v979_v63  ;;  %v1500_v63 = vld [vmem:[%s1826_s30 + $0xe] sm:$0x3] }
 0xda6   : > { %1635 = vmatpush3.bf16.msra.mxu0 %v1820_v2  ;;  %1636 = vmatprep.mubr.msk.bf16.mxu0 %vm1755_vm0, %v1754_v0 }
 0xda7   : > { %1648 = vmatprep.subr.bf16.mxu0 %v1754_v0 }
 0xe65   : > { %v1017_v5 = vpop.f32.mrf.mxu0 }
 0xe66   : > { %v1061_v6 = vadd.f32 %v1060_v59, %v1017_v5  ;;  %v1241_v5 = vpack.c.bf16 %v1500_v63, %v1500_v63 }
 0xe67   : > { %v1624_v9 = vpop.f32.mrf.mxu0 }
 0xe68   : > { %v1066_v11 = vadd.f32 %v1862_v12, %v1061_v6  ;;  %1659 = vmatmul.mubr.msk.bf16.vlgmr.msra.gmra.mxu1 %vm352_vm1, %v1241_v5  ;;  %vm1357_vm1 = vcmp.gt.s32.totalorder %v1854_v7, 7  ;;  %v964_v7 = vsel %vm963_vm12, %v1995_v56, 0.0 }
 0xe69   : > { %v1020_v13 = vpop.f32.mrf.mxu0  ;;  %v1358_v30 = vsel %vm1357_vm1, 1, %v1756_v1 }
 0xe6a   : > { %1722 = vtanh.f32 %v1066_v11  ;;  %v1067_v17 = vsub.f32 0.0, %v1066_v11 }
 0xe6b   : > { %v1625_v14 = vpop.f32.mrf.mxu0 }
 0xe6c   : > { %v1068_v18 = vmul.f32 1.442695, %v1067_v17 }
 0xe6e   : > { %1724 = vpow2.f32 %v1068_v18 }
 0xe77   : > { %v1723_v15 = vpop.eup %1722 }
 0xe78   : > { %1076 = vrot.lane.b32.xlu0 %v1723_v15, %s1757_s11 }
 0xe7b   : > { %v1725_v20 = vpop.eup %1724 }
 0xe7c   : > { %1094 = vperm.xlu0 %1678, %v1092_v16   ;;  %v1070_v22 = vadd.f32 1.0, %v1725_v20 }
 0xe7e   : > { %1726 = vrcp.f32 %v1070_v22 }
 0xe8b   : > { %v1727_v23 = vpop.eup %1726 }
 0xe8c   : > { %v1074_v27 = vmul.f32 %v1727_v23, %v972_v26 }
 0xeea   : > { %v1077_v24 = vpop.permute.xlu0 %1076 }
 0xeeb   : > { %v1079_v25 = vmul.f32 %v1727_v23, %v1077_v24 }
 0xeed   : > { %1081 = vrot.lane.b32.xlu1 %v1079_v25, %s1758_s12 }
 0xef7   : > { %v2022_v33 = vpop.permute.xlu0 %1094 }
 0xef8   : > { %vm1096_vm14 = vcmp.eq.s32.totalorder %v2022_v33, 1 }
 0xf28   : > { %v1326_v16 = vpop.f32.mrf.mxu1 }
 0xf2a   : > { %v1660_v17 = vpop.f32.mrf.mxu1 }
 0xf2c   : > { %v1329_v18 = vpop.f32.mrf.mxu1 }
 0xf2e   : > { %v1661_v20 = vpop.f32.mrf.mxu1 }
 0xf5f   : > { %v1082_v28 = vpop.permute.xlu1 %1081 }
 0xf60   : > { %v1084_v29 = vadd.f32 %v1082_v28, %v1074_v27 }
 0xf62   : > { %1728 = vtanh.f32 %v1084_v29  ;;  %v2042_v59 = vsel %vm1096_vm14, %v1084_v29, %v972_v26 }
 0xf6f   : > { %v1729_v32 = vpop.eup %1728 }
 0xf70   : > { %1087 = vrot.lane.b32.xlu1 %v1729_v32, %s1759_s13 }
 0xfe2   : > { %v1088_v34 = vpop.permute.xlu1 %1087 }
 0xfe3   : > { %v2024_v35 = vmul.f32 %v1727_v23, %v1088_v34 }
 0xfe5   : > { %v1104_v3 = vsel %vm1096_vm14, %v2024_v35, %v971_v57 }
 0xfe6   : > { %v1109_v36 = vpack.c.bf16 %v1104_v3, %v1104_v3 }
 0xfe8   : > { %1111 = vrot.lane.b32.xlu0 %v1109_v36, %s1760_s14 }
0x105a   : > { %v1112_v43 = vpop.permute.xlu0 %1111 }
0x105b   : > { %1637 = vmatmul.mubr.msk.bf16.vlgmr.msra.gmra.mxu0 %vm296_vm4, %v1112_v43 }
0x105c   : > { %1649 = vmatpush3.bf16.msra.mxu0 %v1820_v2  ;;  %1650 = vmatprep.mubr.msk.bf16.mxu0 %vm1755_vm0, %v1754_v0 }
0x111b   : > { %v1150_v4 = vpop.f32.mrf.mxu0 }
0x111c   : > { %v1194_v45 = vadd.f32 %v1193_v38, %v1150_v4 }
0x111d   : > { %v1638_v46 = vpop.f32.mrf.mxu0 }
0x111e   : > { %v1199_v47 = vadd.f32 %v1862_v12, %v1194_v45  ;;  %v565_v46 = vsel %vm564_vm6, %v1904_v10, 0.0 }
0x111f   : > { %v1153_v48 = vpop.f32.mrf.mxu0 }
0x1120   : > { %1730 = vtanh.f32 %v1199_v47  ;;  %v1200_v2 = vsub.f32 0.0, %v1199_v47  ;;  %v831_v47 = vsel %vm830_vm10, %v1965_v21, 0.0  ;;  %v1097_v48 = vsel %vm1096_vm14, %v2024_v35, 0.0 }
0x1121   : > { %v1639_v49 = vpop.f32.mrf.mxu0 }
0x1122   : > { %v1201_v52 = vmul.f32 1.442695, %v1200_v2 }
0x1124   : > { %1732 = vpow2.f32 %v1201_v52 }
0x112d   : > { %v1731_v50 = vpop.eup %1730 }
0x112e   : > { %1209 = vrot.lane.b32.xlu1 %v1731_v50, %s1757_s11 }
0x1131   : > { %v1733_v0 = vpop.eup %1732 }
0x1132   : > { %1227 = vperm.xlu1 %1677, %v1225_v51   ;;  %v1203_v53 = vadd.f32 1.0, %v1733_v0 }
0x1134   : > { %1734 = vrcp.f32 %v1203_v53 }
0x1141   : > { %v1735_v55 = vpop.eup %1734 }
0x1142   : > { %v1207_v60 = vmul.f32 %v1735_v55, %v2042_v59 }
0x11a0   : > { %v1210_v57 = vpop.permute.xlu1 %1209 }
0x11a1   : > { %v1212_v58 = vmul.f32 %v1735_v55, %v1210_v57 }
0x11a3   : > { %1214 = vrot.lane.b32.xlu0 %v1212_v58, %s1758_s12 }
0x11ad   : > { %v1228_v9 = vpop.permute.xlu1 %1227 }
0x11ae   : > { %vm1229_vm0 = vcmp.eq.s32.totalorder %v1228_v9, 1 }
0x1215   : > { %v1215_v61 = vpop.permute.xlu0 %1214 }
0x1216   : > { %v1217_v62 = vadd.f32 %v1215_v61, %v1207_v60 }
0x1218   : > { %1736 = vtanh.f32 %v1217_v62  ;;  %v1238_v40 = vsel %vm1229_vm0, %v1217_v62, %v2042_v59 }
0x1225   : > { %v1737_v6 = vpop.eup %1736 }
0x1226   : > { %1220 = vrot.lane.b32.xlu0 %v1737_v6, %s1759_s13 }
0x1298   : > { %v1221_v11 = vpop.permute.xlu0 %1220 }
0x1299   : > { %v1223_v13 = vmul.f32 %v1735_v55, %v1221_v11 }
0x129b   : > { %v1237_v14 = vsel %vm1229_vm0, %v1223_v13, %v1104_v3 }
0x129c   : > { %v1242_v15 = vpack.c.bf16 %v1237_v14, %v1237_v14 }
0x129e   : > { %1244 = vrot.lane.b32.xlu1 %v1242_v15, %s1760_s14 }
0x1310   : > { %v1245_v22 = vpop.permute.xlu1 %1244 }
0x1311   : > { %1651 = vmatmul.mubr.msk.bf16.vlgmr.msra.gmra.mxu0 %vm296_vm4, %v1245_v22 }
0x13d1   : > { %v1283_v23 = vpop.f32.mrf.mxu0 }
0x13d2   : > { %v1327_v24 = vadd.f32 %v1326_v16, %v1283_v23 }
0x13d3   : > { %v1652_v25 = vpop.f32.mrf.mxu0 }
0x13d4   : > { %v1332_v26 = vadd.f32 %v1862_v12, %v1327_v24  ;;  %v1230_v12 = vsel %vm1229_vm0, %v1223_v13, 0.0 }
0x13d5   : > { %v1286_v27 = vpop.f32.mrf.mxu0 }
0x13d6   : > { %1738 = vtanh.f32 %v1332_v26  ;;  %v1333_v1 = vsub.f32 0.0, %v1332_v26 }
0x13d7   : > { %v1653_v28 = vpop.f32.mrf.mxu0 }
0x13d8   : > { %v1334_v32 = vmul.f32 1.442695, %v1333_v1 }
0x13da   : > { %1740 = vpow2.f32 %v1334_v32 }
0x13e3   : > { %v1739_v29 = vpop.eup %1738 }
0x13e4   : > { %1342 = vrot.lane.b32.xlu0 %v1739_v29, %s1757_s11 }
0x13e8   : > { %1360 = vperm.xlu0 %1678, %v1358_v30  }
0x13ec   : > { %435 = vrot.lane.b32.xlu0 %v1877_v37, %s1760_s14  ;;  %v1741_v37 = vpop.eup %1740 }
0x13ed   : > { %v1336_v34 = vadd.f32 1.0, %v1741_v37 }
0x13ef   : > { %1742 = vrcp.f32 %v1336_v34 }
0x13f0   : > { %700 = vrot.lane.b32.xlu0 %v698_v31, %s1760_s14 }
0x13f4   : > { %966 = vrot.lane.b32.xlu0 %v964_v7, %s1760_s14 }
0x13f8   : > { %1232 = vrot.lane.b32.xlu0 %v1230_v12, %s1760_s14 }
0x13fc   : > { %v1743_v42 = vpop.eup %1742 }
0x13fd   : > { %v1340_v41 = vmul.f32 %v1743_v42, %v1238_v40 }
0x1456   : > { %v1343_v44 = vpop.permute.xlu0 %1342 }
0x1457   : > { %v1345_v3 = vmul.f32 %v1743_v42, %v1343_v44 }
0x1459   : > { %1347 = vrot.lane.b32.xlu1 %v1345_v3, %s1758_s12 }
0x1463   : > { %v1361_v54 = vpop.permute.xlu0 %1360 }
0x1464   : > { %vm1362_vm3 = vcmp.eq.s32.totalorder %v1361_v54, 1 }
0x1467   : > { %v436_v56 = vpop.permute.xlu0 %435 }
0x1468   : > { %439 = vst.msk [vmem:[%s2072_s17] sm:$0x3] %vm438_vm2, %v436_v56 }
0x146b   : > { %v701_v36 = vpop.permute.xlu0 %700 }
0x146c   : > { %1483 = vst.msk [vmem:[%s2072_s17 + $0x4] sm:$0x3] %vm438_vm2, %v701_v36 }
0x146f   : > { %v967_v38 = vpop.permute.xlu0 %966 }
0x1470   : > { %1491 = vst.msk [vmem:[%s2072_s17 + $0x8] sm:$0x3] %vm438_vm2, %v967_v38 }
0x1473   : > { %v1233_v39 = vpop.permute.xlu0 %1232 }
0x1474   : > { %1499 = vst.msk [vmem:[%s2072_s17 + $0xc] sm:$0x3] %vm438_vm2, %v1233_v39 }
0x14cb   : > { %v1348_v43 = vpop.permute.xlu1 %1347 }
0x14cc   : > { %v1350_v4 = vadd.f32 %v1348_v43, %v1340_v41 }
0x14ce   : > { %1744 = vtanh.f32 %v1350_v4 }
0x14db   : > { %v1745_v45 = vpop.eup %1744 }
0x14dc   : > { %1353 = vrot.lane.b32.xlu1 %v1745_v45, %s1759_s13 }
0x14e0   : > { %567 = vrot.lane.b32.xlu1 %v565_v46, %s1760_s14 }
0x14e4   : > { %833 = vrot.lane.b32.xlu1 %v831_v47, %s1760_s14 }
0x14e8   : > { %1099 = vrot.lane.b32.xlu1 %v1097_v48, %s1760_s14 }
0x154e   : > { %v1354_v49 = vpop.permute.xlu1 %1353 }
0x154f   : > { %v1356_v50 = vmul.f32 %v1743_v42, %v1354_v49 }
0x1551   : > { %v1363_v8 = vsel %vm1362_vm3, %v1356_v50, 0.0 }
0x1552   : > { %1365 = vrot.lane.b32.xlu1 %v1363_v8, %s1760_s14  ;;  %v568_v10 = vpop.permute.xlu1 %567 }
0x1553   : > { %1479 = vst.msk [vmem:[%s2072_s17 + $0x2] sm:$0x3] %vm438_vm2, %v568_v10 }
0x1556   : > { %v834_v19 = vpop.permute.xlu1 %833 }
0x1557   : > { %1487 = vst.msk [vmem:[%s2072_s17 + $0x6] sm:$0x3] %vm438_vm2, %v834_v19 }
0x155a   : > { %v1100_v21 = vpop.permute.xlu1 %1099 }
0x155b   : > { %1495 = vst.msk [vmem:[%s2072_s17 + $0xa] sm:$0x3] %vm438_vm2, %v1100_v21 }
0x15c4   : > { %v1366_v51 = vpop.permute.xlu1 %1365 }
0x15c5   : > { %1503 = vst.msk [vmem:[%s2072_s17 + $0xe] sm:$0x3] %vm438_vm2, %v1366_v51 }
0x15c6 PF: > { %s15_s18 = sadd.s32 1, %s1752_s18  }
0x15c7   : > { %p12_p4 = scmp.ge.s32.totalorder %s15_s18, 4  }
0x15c9   :  { %14 = sbr.rel (!%p12_p4) target bundleno = 1 (0x1), region = 93 }

// kernel: transformers_crf_forward.6
= control target key start
LH: loop header
LB: loop body
LE: loop exit
PB: predicated region body
PF: predicated region fallthrough
CT: control target
= control target key end

     0   :  { %s1398_s15 = smov 0   ;;  %s1535_s0 = inlined_call_operand.vmem [shape: f32[2,8,32], index: 0, kind: input, shape index: {}]   ;;  %s1536_s1 = inlined_call_operand.vmem [shape: f32[2,12,8], index: 1, kind: input, shape index: {}]   ;;  %s1537_s2 = inlined_call_operand.vmem [shape: f32[2,12,1], index: 2, kind: input, shape index: {}]   ;;  %s1538_s3 = inlined_call_operand.vmem [shape: f32[2,12,128], index: 3, kind: input, shape index: {}]   ;;  %s1539_s4 = inlined_call_operand.vmem [shape: f32[1,32], index: 4, kind: input, shape index: {}]   ;;  %s1540_s5 = inlined_call_operand.<no memory space> [shape: f32[1,1], index: 5, kind: input, shape index: {}]   ;;  %s1541_s6 = inlined_call_operand.vmem [shape: bf16[160,32], index: 6, kind: input, shape index: {}]   ;;  %s1542_s7 = inlined_call_operand.vmem [shape: f32[1,32], index: 7, kind: input, shape index: {}]   ;;  %s1543_s8 = inlined_call_operand.vmem [shape: bf16[32,32], index: 8, kind: input, shape index: {}]   ;;  %s1544_s9 = inlined_call_operand.vmem [shape: f32[1,32], index: 9, kind: input, shape index: {}]   ;;  %s1545_s10 = inlined_call_operand.vmem [shape: bf16[32,128], index: 10, kind: input, shape index: {}]   ;;  %s1546_s11 = inlined_call_operand.vmem [shape: f32[1,128], index: 11, kind: input, shape index: {}]   ;;  %s1547_s12 = inlined_call_operand.vmem [shape: f32[2,12,160], index: 12, kind: output, shape index: {0}]   ;;  %s1548_s13 = inlined_call_operand.vmem [shape: f32[2,12,128], index: 13, kind: output, shape index: {1}]   ;;  %s1549_s14 = inlined_call_operand.vmem [shape: f32[2,12,128], index: 14, kind: output, shape index: {2}]  }
   0x1   :  { %v20_v0 = vstv %s1540_s5 }
   0x2   :  { %21 = vst [vmem:[#allocation2] sm:$0x1] %v20_v0 }
   0x3 LB: > { %s1180_s16 = sadd.s32 4294967295, %s1315_s15   ;;  %p1184_p0 = scmp.ge.s32.totalorder %s1315_s15, 1  ;;  %s1315_s15 = sphi %s1398_s15, %s27_s15  }
   0x4   : > { %p448_p1 = scmp.lt.s32.totalorder %s1315_s15, 3 }
   0x6   : > { %p449_p2 = pnand %p1184_p0, %p448_p1 }
   0x7   : > { %p518_p3 = scmp.lt.s32.totalorder (!%p449_p2), %s1180_s16, 1 }
   0x8   : > { %452 = sbr.rel (%p449_p2) target bundleno = 1595 (0x63b), region = 68 }
   0xd   : > { %s1551_s16 = smov (!%p518_p3, %s1180_s16), 1  ;;  %v1198_v1 = vld [vmem:[%s1539_s4] ss:$0 sm:$0xff]  ;;  %vm562_vm0 = vcmask 261120   ;;  %v1317_v5 = vmov 0   ;;  %vm574_vm1 = vcmask 7168  }
   0xe   : > { %s1185_s18 = sshll.u32 %s1551_s16, 3  ;;  %1279 = vset.pattern.permute.xlu0 %v1317_v5  ;;  %1280 = vset.pattern.permute.xlu1 %v1317_v5  ;;  %v1199_v6 = vld [vmem:[#allocation2] ss:$0 sm:$0xff]  ;;  %v1318_v19 = vmov 0.0   ;;  %vm1319_vm2 = vmmov 0   ;;  %s1423_s22 = sshll.u32 %s1551_s16, 4 }
   0xf   : > { %s521_s21 = scalar_lea.vmem %s1535_s0, %s1185_s18  ;;  %818 = vmatprep.subr.bf16.mxu0 %v1317_v5  ;;  %1240 = vmatprep.subr.bf16.mxu1 %v1318_v19  ;;  %s526_s25 = scalar_lea.vmem %s1536_s1, %s1423_s22  ;;  %vm599_vm3 = vcmask 1043456   ;;  %vm595_vm4 = vcmask 64512   ;;  %v1281_v30 = vld [vmem:[%s1541_s6 + $0x38] sm:$0xff]   ;;  %v1282_v31 = vld [vmem:[%s1541_s6 + $0x30] sm:$0xff]   ;;  %v1283_v32 = vld [vmem:[%s1541_s6 + $0x28] sm:$0xff]   ;;  %vm724_vm5 = vcmask 257024  }
  0x10   : > { %v553_v2 = vld [vmem:[%s521_s21] sm:$0xff]  ;;  %1242 = vmatprep.mubr.msk.bf16.mxu1 %vm1319_vm2, %v1318_v19  ;;  %v586_v23 = vld [vmem:[%s526_s25 + $0x8] sm:$0xf]  ;;  %s1441_s28 = scalar_lea.vmem %s1537_s2, %s1423_s22  ;;  %819 = vmatpush1.bf16.msra.mxu0 %v1281_v30  ;;  %v1285_v34 = vld [vmem:[%s1541_s6 + $0x18] sm:$0xff]   ;;  %s1227_s19 = sshll.u32 %s1551_s16, 5 }
  0x11   : > { %v561_v3 = vmul.f32 %v1198_v1, %v553_v2  ;;  %v585_v22 = vld [vmem:[%s526_s25] sm:$0xff]  ;;  %820 = vmatprep.subr.bf16.mxu0 %v1317_v5  ;;  %v1286_v35 = vld [vmem:[%s1541_s6 + $0x10] sm:$0xff]   ;;  %v1287_v36 = vld [vmem:[%s1541_s6 + $0x8] sm:$0xff]   ;;  %s536_s25 = scalar_lea.vmem %s1538_s3, %s1423_s22  ;;  %s541_s29 = scalar_lea.vmem %s1547_s12, %s1227_s19 }
  0x12   : > { %v587_v26 = vpack.c.bf16 %v586_v23, %v585_v22  ;;  %v705_v29 = vld [vmem:[%s1441_s28] sm:$0xff]  ;;  %v1289_v49 = vld [vmem:[%s1541_s6 + $0x48] sm:$0xff]   ;;  %s551_s17 = scalar_lea.vmem %s1549_s14, %s1423_s22 }
  0x13   : > { %v563_v4 = vsel %vm562_vm0, %v561_v3, 0.0  ;;  %709 = vperm.xlu1 %1280, %v705_v29   ;;  %v1284_v33 = vld [vmem:[%s1541_s6 + $0x20] sm:$0xff]   ;;  %v706_v52 = vld [vmem:[%s1441_s28 + $0x8] sm:$0xf]  ;;  %s546_s28 = scalar_lea.vmem %s1548_s13, %s1423_s22 }
  0x14   : > { %564 = vadd.xlane.f32.xlu0 %v563_v4  ;;  %821 = vmatpush1.bf16.msra.mxu0 %v1282_v31  ;;  %v1288_v47 = vld [vmem:[%s1541_s6] sm:$0xff]   ;;  %v720_v54 = vld [vmem:[%s536_s25 + $0x8] sm:$0xf] }
  0x15   : > { %822 = vmatprep.subr.bf16.mxu0 %v1317_v5  ;;  %v1290_v51 = vld [vmem:[%s1541_s6 + $0x40] sm:$0xff]   ;;  %723 = vst [vmem:[%s541_s29 + $0x10] sm:$0xf] %v720_v54  ;;  %v1291_v1 = vld [vmem:[%s1543_s8 + $0x8] sm:$0xff]  }
  0x16   : > { %v719_v53 = vld [vmem:[%s536_s25] sm:$0xff] }
  0x17   : > { %721 = vst [vmem:[%s541_s29] sm:$0xff] %v719_v53  ;;  %v726_v55 = vpack.c.bf16 %v720_v54, %v719_v53  ;;  %v1202_v3 = vld [vmem:[%s1542_s7] ss:$0 sm:$0xff] }
  0x18   : > { %823 = vmatpush1.bf16.msra.mxu0 %v1283_v32 }
  0x19   : > { %824 = vmatprep.subr.bf16.mxu0 %v1317_v5 }
  0x1c   : > { %825 = vmatpush1.bf16.msra.mxu0 %v1284_v33 }
  0x1d   : > { %826 = vmatprep.subr.bf16.mxu0 %v1317_v5 }
  0x20   : > { %827 = vmatpush1.bf16.msra.mxu0 %v1285_v34 }
  0x21   : > { %828 = vmatprep.subr.bf16.mxu0 %v1317_v5 }
  0x24   : > { %829 = vmatpush1.bf16.msra.mxu0 %v1286_v35 }
  0x25   : > { %830 = vmatprep.subr.bf16.mxu0 %v1317_v5 }
  0x28   : > { %831 = vmatpush1.bf16.msra.mxu0 %v1287_v36 }
  0x29   : > { %832 = vmatprep.subr.bf16.mxu0 %v1317_v5 }
  0x2c   : > { %833 = vmatpush1.bf16.msra.mxu0 %v1288_v47 }
  0x2d   : > { %846 = vmatprep.subr.bf16.mxu0 %v1317_v5 }
  0x30   : > { %847 = vmatpush2.bf16.msra.mxu0 %v1289_v49 }
  0x31   : > { %848 = vmatprep.subr.bf16.mxu0 %v1317_v5 }
  0x34   : > { %849 = vmatpush2.bf16.msra.mxu0 %v1290_v51 }
  0x8e   : > { %v710_v56 = vpop.permute.xlu1 %709 }
  0x9d   : > { %v565_v7 = vpop.xlane.xlu0 %564 }
  0x9e   : > { %v573_v8 = vadd.f32 %v1199_v6, %v565_v7 }
  0xa0   : > { %v575_v9 = vsel %vm574_vm1, %v573_v8, -inf }
  0xa1   : > { %v576_v10 = vrot.slane %v575_v9, 4 }
  0xa3   : > { %v577_v11 = vmax.f32 %v575_v9, %v576_v10 }
  0xa5   : > { %v578_v12 = vrot.slane %v577_v11, 2 }
  0xa7   : > { %v579_v13 = vmax.f32 %v577_v11, %v578_v12 }
  0xa9   : > { %v580_v14 = vrot.slane %v579_v13, 1 }
  0xab   : > { %v581_v15 = vmax.f32 %v579_v13, %v580_v14  ;;  %v1293_v13 = vld [vmem:[%s1545_s10 + $0x8] sm:$0xff]   ;;  %v1294_v14 = vld [vmem:[%s1545_s10] sm:$0xff]  }
  0xad   : > { %v582_v16 = vsub.f32 %v573_v8, %v581_v15  ;;  %v1214_v15 = vld [vmem:[%s1544_s9] ss:$0 sm:$0xff] }
  0xaf   : > { %v583_v17 = vmul.f32 1.442695, %v582_v16 }
  0xb1   : > { %1295 = vpow2.f32 %v583_v17 }
  0xbe   : > { %v1296_v18 = vpop.eup %1295 }
  0xbf   : > { %590 = vperm.xlu0 %1279, %v1296_v18   ;;  %v644_v27 = vpack.c.bf16 %v1296_v18, %v1296_v18 }
  0xc1   : > { %v646_v28 = vsel %vm599_vm3, %v644_v27, 0 }
 0x13a   : > { %v591_v20 = vpop.permute.xlu0 %590 }
 0x13b   : > { %v593_v21 = vmul.f32 %v591_v20, %v553_v2  ;;  %v1292_v2 = vld [vmem:[%s1543_s8] sm:$0xff]  }
 0x13d   : > { %v594_v24 = vpack.c.bf16 %v593_v21, %v593_v21 }
 0x13f   : > { %v601_v25 = vsel %vm599_vm3, %v594_v24, 0 }
 0x140   : > { %1241 = vmatpush3.bf16.msra.mxu1 %v601_v25 }
 0x141   : > { %1246 = vmatprep.subr.bf16.mxu1 %v1318_v19 }
 0x143   : > { %1243 = vmatmul.mubr.msk.bf16.vlgmr.msra.gmra.mxu1 %vm595_vm4, %v587_v26 }
 0x144   : > { %1247 = vmatpush3.bf16.msra.mxu1 %v646_v28  ;;  %1248 = vmatprep.mubr.msk.bf16.mxu1 %vm1319_vm2, %v1318_v19 }
 0x145   : > { %1252 = vmatprep.subr.bf16.mxu1 %v1318_v19 }
 0x14b   : > { %1249 = vmatmul.mubr.msk.bf16.vlgmr.msra.gmra.mxu1 %vm595_vm4, %v587_v26 }
 0x14c   : > { %1256 = vmatprep.mubr.msk.bf16.mxu1 %vm1319_vm2, %v1318_v19  ;;  %1253 = vmatpush3.bf16.msra.mxu1 %v1291_v1 }
 0x14d   : > { %1254 = vmatprep.subr.bf16.mxu1 %v1318_v19 }
 0x150   : > { %1255 = vmatpush3.bf16.msra.mxu1 %v1292_v2 }
 0x151   : > { %1260 = vmatprep.subr.bf16.mxu1 %v1318_v19 }
 0x203   : > { %v637_v37 = vpop.f32.mrf.mxu1 }
 0x205   : > { %v1244_v38 = vpop.f32.mrf.mxu1 }
 0x207   : > { %v640_v39 = vpop.f32.mrf.mxu1 }
 0x209   : > { %v1245_v40 = vpop.f32.mrf.mxu1 }
 0x20b   : > { %v682_v41 = vpop.f32.mrf.mxu1 }
 0x20c   : > { %v689_v42 = vmax.f32 %v682_v41, 1e-30 }
 0x20d   : > { %v1250_v43 = vpop.f32.mrf.mxu1 }
 0x20e   : > { %1297 = vrcp.f32 %v689_v42 }
 0x20f   : > { %v685_v44 = vpop.f32.mrf.mxu1 }
 0x210   : > { %v690_v45 = vmax.f32 %v685_v44, 1e-30 }
 0x211   : > { %v1251_v46 = vpop.f32.mrf.mxu1 }
 0x212   : > { %1299 = vrcp.f32 %v690_v45 }
 0x21b   : > { %v1298_v48 = vpop.eup %1297 }
 0x21c   : > { %695 = vperm.xlu1 %1280, %v1298_v48  }
 0x21f   : > { %v1300_v50 = vpop.eup %1299 }
 0x220   : > { %700 = vperm.xlu1 %1280, %v1300_v50  }
 0x224   : > { %714 = vperm.xlu1 %1280, %v706_v52  }
 0x297   : > { %v696_v57 = vpop.permute.xlu1 %695 }
 0x298   : > { %v703_v58 = vmul.f32 %v696_v57, %v637_v37 }
 0x29a   : > { %v717_v59 = vmul.f32 %v710_v56, %v703_v58 }
 0x29b   : > { %v701_v60 = vpop.permute.xlu1 %700 }
 0x29c   : > { %722 = vst.msk [vmem:[%s541_s29 + $0x8] sm:$0xff] %vm562_vm0, %v717_v59  ;;  %v704_v61 = vmul.f32 %v701_v60, %v640_v39 }
 0x29f   : > { %v715_v62 = vpop.permute.xlu1 %714 }
 0x2a0   : > { %v718_v63 = vmul.f32 %v715_v62, %v704_v61 }
 0x2a2   : > { %725 = vst.msk [vmem:[%s541_s29 + $0x18] sm:$0xf] %vm724_vm5, %v718_v63  ;;  %v727_v0 = vpack.c.bf16 %v718_v63, %v717_v59 }
 0x2a4   : > { %1213 = vmatprep.mubr.msk.bf16.mxu0 %vm562_vm0, %v727_v0 }
 0x2a5   : > { %851 = vmatmul.mubr.bf16.vlgmr.msra.gmra.mxu0 %v726_v55 }
 0x365   : > { %v852_v4 = vpop.f32.mrf.mxu0 }
 0x366   : > { %v853_v6 = vadd.f32 %v1202_v3, %v852_v4 }
 0x367   : > { %v854_v5 = vpop.f32.mrf.mxu0 }
 0x368   : > { %v859_v10 = vmax.f32 %v853_v6, 0.0 }
 0x369   : > { %v855_v7 = vpop.f32.mrf.mxu0 }
 0x36a   : > { %v856_v8 = vadd.f32 %v1202_v3, %v855_v7 }
 0x36b   : > { %v857_v9 = vpop.f32.mrf.mxu0 }
 0x36c   : > { %v860_v11 = vmax.f32 %v856_v8, 0.0 }
 0x36e   : > { %v861_v12 = vpack.c.bf16 %v860_v11, %v859_v10 }
 0x370   : > { %1257 = vmatmul.mubr.msk.bf16.vlgmr.msra.gmra.mxu1 %vm562_vm0, %v861_v12 }
 0x371   : > { %1264 = vmatprep.mubr.msk.bf16.mxu1 %vm1319_vm2, %v1318_v19  ;;  %1261 = vmatpush3.bf16.msra.mxu1 %v1293_v13 }
 0x372   : > { %1262 = vmatprep.subr.bf16.mxu1 %v1318_v19  ;;  %v1218_v19 = vld [vmem:[%s1546_s11] ss:$0 sm:$0xff] }
 0x375   : > { %1263 = vmatpush3.bf16.msra.mxu1 %v1294_v14 }
 0x430   : > { %v922_v16 = vpop.f32.mrf.mxu1 }
 0x431   : > { %v923_v18 = vadd.f32 %v1214_v15, %v922_v16 }
 0x432   : > { %v1258_v17 = vpop.f32.mrf.mxu1 }
 0x433   : > { %v929_v23 = vmax.f32 %v923_v18, 0.0 }
 0x434   : > { %v925_v20 = vpop.f32.mrf.mxu1 }
 0x435   : > { %v926_v21 = vadd.f32 %v1214_v15, %v925_v20 }
 0x436   : > { %v1259_v22 = vpop.f32.mrf.mxu1 }
 0x437   : > { %v930_v24 = vmax.f32 %v926_v21, 0.0 }
 0x439   : > { %v931_v25 = vpack.c.bf16 %v930_v24, %v929_v23 }
 0x43b   : > { %1265 = vmatmul.mubr.msk.bf16.vlgmr.msra.gmra.mxu1 %vm562_vm0, %v931_v25 }
 0x4fb   : > { %v992_v26 = vpop.f32.mrf.mxu1 }
 0x4fc   : > { %v993_v27 = vadd.f32 %v1218_v19, %v992_v26 }
 0x4fd   : > { %v1266_v28 = vpop.f32.mrf.mxu1 }
 0x4fe   : > { %999 = vst [vmem:[%s546_s28] sm:$0xff] %v993_v27  ;;  %1001 = vmax.xlane.f32.xlu0 %v993_v27 }
 0x4ff   : > { %v995_v29 = vpop.f32.mrf.mxu1 }
 0x500   : > { %v996_v30 = vadd.f32 %v1218_v19, %v995_v29 }
 0x501   : > { %v1267_v31 = vpop.f32.mrf.mxu1 }
 0x502   : > { %1000 = vst [vmem:[%s546_s28 + $0x8] sm:$0xf] %v996_v30  ;;  %v1003_v32 = vsel %vm599_vm3, %v996_v30, -inf }
 0x503   : > { %1004 = vmax.xlane.f32.xlu1 %v1003_v32 }
 0x587   : > { %v1002_v33 = vpop.xlane.xlu0 %1001 }
 0x588   : > { %v1006_v34 = vsub.f32 %v993_v27, %v1002_v33 }
 0x58a   : > { %v1008_v35 = vmul.f32 1.442695, %v1006_v34 }
 0x58c   : > { %1301 = vpow2.f32 %v1008_v35  ;;  %v1005_v36 = vpop.xlane.xlu1 %1004 }
 0x58d   : > { %v1007_v37 = vsub.f32 %v996_v30, %v1005_v36 }
 0x58f   : > { %v1010_v38 = vmul.f32 1.442695, %v1007_v37 }
 0x591   : > { %1303 = vpow2.f32 %v1010_v38 }
 0x599   : > { %v1302_v39 = vpop.eup %1301 }
 0x59a   : > { %1012 = vadd.xlane.f32.xlu1 %v1302_v39 }
 0x59e   : > { %v1304_v40 = vpop.eup %1303 }
 0x59f   : > { %v1014_v41 = vsel %vm599_vm3, %v1304_v40, 0.0 }
 0x5a0   : > { %1015 = vadd.xlane.f32.xlu1 %v1014_v41 }
 0x623   : > { %v1013_v42 = vpop.xlane.xlu1 %1012 }
 0x624   : > { %1305 = vrcp.f32 %v1013_v42 }
 0x629   : > { %v1016_v43 = vpop.xlane.xlu1 %1015 }
 0x62a   : > { %1307 = vrcp.f32 %v1016_v43 }
 0x631   : > { %v1306_v44 = vpop.eup %1305 }
 0x632   : > { %v1019_v45 = vmul.f32 %v1306_v44, %v1302_v39 }
 0x634   : > { %1021 = vst [vmem:[%s551_s17] sm:$0xff] %v1019_v45 }
 0x637   : > { %v1308_v46 = vpop.eup %1307 }
 0x638   : > { %v1020_v47 = vmul.f32 %v1308_v46, %v1304_v40 }
 0x63a   : > { %1022 = vst [vmem:[%s551_s17 + $0x8] sm:$0xf] %v1020_v47 }
 0x63b PF: > { %s27_s15 = sadd.s32 1, %s1315_s15  }
 0x63c   : > { %p24_p4 = scmp.ge.s32.totalorder %s27_s15, 4  }
 0x63e   :  { %26 = sbr.rel (!%p24_p4) target bundleno = 3 (0x3), region = 131 }

// kernel: transformers_crf_forward.7
= control target key start
LH: loop header
LB: loop body
LE: loop exit
PB: predicated region body
PF: predicated region fallthrough
CT: control target
= control target key end

     0   :  { %19 = vsyncpa [#allocation3], 0  ;;  %s1792_s0 = inlined_call_operand.vmem [shape: f32[2,4,160], index: 0, kind: input, shape index: {}]   ;;  %s1793_s1 = inlined_call_operand.vmem [shape: bf16[2,16,4], index: 1, kind: input, shape index: {}]   ;;  %s1794_s2 = inlined_call_operand.vmem [shape: bf16[2,16,4], index: 2, kind: input, shape index: {}]   ;;  %s1795_s3 = inlined_call_operand.vmem [shape: f32[2,16,64], index: 3, kind: input, shape index: {}]   ;;  %s1796_s4 = inlined_call_operand.vmem [shape: bf16[160,32], index: 4, kind: input, shape index: {}]   ;;  %s1797_s5 = inlined_call_operand.vmem [shape: f32[1,32], index: 5, kind: input, shape index: {}]   ;;  %s1798_s6 = inlined_call_operand.vmem [shape: bf16[160,8], index: 6, kind: input, shape index: {}]   ;;  %s1799_s7 = inlined_call_operand.vmem [shape: f32[1,8], index: 7, kind: input, shape index: {}]   ;;  %s1800_s8 = inlined_call_operand.vmem [shape: bf16[8,8], index: 8, kind: input, shape index: {}]   ;;  %s1801_s9 = inlined_call_operand.vmem [shape: f32[1,8], index: 9, kind: input, shape index: {}]   ;;  %s1802_s10 = inlined_call_operand.vmem [shape: bf16[8,128], index: 10, kind: input, shape index: {}]   ;;  %s1803_s11 = inlined_call_operand.vmem [shape: f32[1,128], index: 11, kind: input, shape index: {}]   ;;  %s1804_s12 = inlined_call_operand.vmem [shape: f32[2,16,128], index: 12, kind: output, shape index: {0}]   ;;  %s1805_s13 = inlined_call_operand.hbm [shape: f32[2,16,128], index: 13, kind: output, shape index: {1}]  }
   0x1   :  { %21 = vsyncpa [#allocation3 + $0x1], 0  ;;  %s1537_s25 = smov 0   ;;  %s1539_s26 = smov 0  }
   0x2   :  { %s1541_s27 = smov 0   ;;  %s1543_s28 = smov 0  }
   0x3 LB: > { %1812 = sst [smem:[#allocation5_spill]] %s1444_s25  ;;  %s1558_s29 = sadd.s32 4294967295, %s1456_s28   ;;  %s1456_s28 = sphi %s1543_s28, %s1823_s28   ;;  %s1452_s27 = sphi %s1541_s27, %s1825_s27   ;;  %s1448_s26 = sphi %s1539_s26, %s1827_s26   ;;  %s1444_s25 = sphi %s1537_s25, %s1826_s25  }
   0x4   : > { %1813 = sst [smem:[#allocation6_spill]] %s1452_s27  ;;  %s1213_s30 = sadd.s32 4294967294, %s1456_s28  }
   0x5   : > { %1814 = sst [smem:[#allocation7_spill]] %s1456_s28  ;;  %s1562_s14 = sadd.s32 1, %s1456_s28  }
   0x6   : > { %1815 = sst [smem:[#allocation8_spill]] %s1562_s14  ;;  %s332_s15 = sadd.s32 1, %s1452_s27 }
   0x7   : > { %s329_s16 = ssub.s32 %s1456_s28, %s1562_s14  ;;  %p342_p0 = scmp.ne.s32.totalorder %s1452_s27, %s1448_s26 }
   0x8   : > { %p330_p1 = scmp.eq.s32.totalorder %s329_s16, 0  ;;  %p343_p2 = scmp.eq.s32.totalorder %s1558_s29, 1 }
   0x9   : > { %p348_p3 = scmp.ne.s32.totalorder %s1448_s26, %s1444_s25  ;;  %p349_p4 = scmp.eq.s32.totalorder %s1213_s30, 1 }
   0xa   : > { %s1573_s17 = scalar_select %p330_p1, %s1452_s27, %s332_s15  }
   0xb   : > { %p1575_p5 = por %p343_p2, %p342_p0  ;;  %p1579_p6 = por %p349_p4, %p348_p3 }
   0xc   : > { %1816 = sst [smem:[#allocation9_spill]] %s1573_s17  ;;  %p1216_p7 = scmp.ge.s32.totalorder %s1456_s28, 1 }
   0xd   : > { %s1818_s19 = scalar_select %p1579_p6, 1, 0 }
   0xe   : > { %p423_p8 = scmp.lt.s32.totalorder %s1456_s28, 3 }
   0xf   : > { %1819 = sst [smem:[#allocation10_spill]] %s1818_s19 }
  0x10   : > { %p424_p9 = pnand %p1216_p7, %p423_p8 }
  0x11   : > { %p487_p10 = scmp.lt.s32.totalorder (!%p424_p9), %s1558_s29, 1  ;;  %s1461_s14 = smov (!%p424_p9), 96  }
  0x12   : > { %427 = sbr.rel (%p424_p9) target bundleno = 1528 (0x5f8), region = 68  ;;  %s1463_s23 = smov (!%p424_p9), 64  }
  0x13   : > { %s1270_s20 = sshll.u32 (!%p424_p9), %s1558_s29, 8 }
  0x17   : > { %v1365_v0 = vld [vmem:[%s1796_s4 + $0x38] sm:$0xff]   ;;  %v1458_v1 = vmov 0   ;;  %v1366_v2 = vld [vmem:[%s1796_s4 + $0x30] sm:$0xff]   ;;  %s1595_s24 = scalar_select %p487_p10, %s1558_s29, 1  ;;  %v1367_v3 = vld [vmem:[%s1796_s4 + $0x28] sm:$0xff]   ;;  %vm606_vm0 = vcmask 261120  }
  0x18   : > { %610 = vmatprep.subr.bf16.mxu0 %v1458_v1  ;;  %v1368_v4 = vld [vmem:[%s1796_s4 + $0x20] sm:$0xff]   ;;  %v1369_v7 = vld [vmem:[%s1796_s4 + $0x18] sm:$0xff]   ;;  %v1370_v9 = vld [vmem:[%s1796_s4 + $0x10] sm:$0xff]   ;;  %v1459_v15 = vmov 0.0   ;;  %vm1460_vm1 = vmmov 0   ;;  %vm663_vm2 = vcmask 1041408  }
  0x19   : > { %611 = vmatpush1.bf16.msra.mxu0 %v1365_v0  ;;  %s1598_s30 = sshll.u32 %s1595_s24, 3  ;;  %v1371_v10 = vld [vmem:[%s1796_s4 + $0x8] sm:$0xff]   ;;  %v1372_v11 = vld [vmem:[%s1796_s4] sm:$0xff]   ;;  %1279 = vmatprep.subr.bf16.mxu1 %v1459_v15  ;;  %vm659_vm3 = vcmask 31744   ;;  %v1378_v30 = vld [vmem:[%s1798_s6 + $0x38] sm:$0xff]   ;;  %vm789_vm4 = vcmask 523264  }
  0x1a   : > { %612 = vmatprep.subr.bf16.mxu0 %v1458_v1  ;;  %s491_s22 = scalar_lea.vmem %s1792_s0, %s1598_s30  ;;  %s501_s19 = scalar_lea.vmem %s1794_s2, %s1598_s30  ;;  %v1373_v12 = vld [vmem:[%s1796_s4 + $0x48] sm:$0xff]   ;;  %v1374_v13 = vld [vmem:[%s1796_s4 + $0x40] sm:$0xff]   ;;  %1281 = vmatprep.mubr.msk.bf16.mxu1 %vm1460_vm1, %v1459_v15  ;;  %v1379_v31 = vld [vmem:[%s1798_s6 + $0x30] sm:$0xff]   ;;  %vm792_vm5 = vcmask 785408   ;;  %vm943_vm6 = vcmask 1043456   ;;  %vm939_vm7 = vcmask 64512  }
  0x1b   : > { %s496_s15 = scalar_lea.vmem %s1793_s1, %s1598_s30  ;;  %v513_v5 = vld [vmem:[%s491_s22] sm:$0xff]  ;;  %s1268_s22 = sshll.u32 %s1595_s24, 4  ;;  %v1380_v32 = vld [vmem:[%s1798_s6 + $0x28] sm:$0xff]   ;;  %v1382_v34 = vld [vmem:[%s1798_s6 + $0x18] sm:$0xff]  }
  0x1c   : > { %v515_v6 = vcombine.high %v513_v5, %v513_v5  ;;  %v517_v14 = vpack.c.bf16 %v513_v5, %v513_v5  ;;  %v1228_v16 = vld [vmem:[%s1797_s5] ss:$0 sm:$0xff]  ;;  %s506_s16 = scalar_lea.vmem %s1795_s3, %s1268_s22  ;;  %v1383_v35 = vld [vmem:[%s1798_s6 + $0x10] sm:$0xff]   ;;  %v1384_v36 = vld [vmem:[%s1798_s6 + $0x8] sm:$0xff]   ;;  %s484_s24 = sand.u32 1, %s1448_s26  }
  0x1d   : > { %613 = vmatpush1.bf16.msra.mxu0 %v1366_v2  ;;  %v1377_v25 = vld [vmem:[%s496_s15] sm:$0xff]   ;;  %v762_v28 = vld [vmem:[%s506_s16 + $0x8] sm:$0xff]  ;;  %s1462_s15 = smov 32   ;;  %s1752_s28 = scalar_lea.sflag [#allocation3], %s484_s24 }
  0x1e   : > { %614 = vmatprep.subr.bf16.mxu0 %v1458_v1  ;;  %v518_v8 = vpack.c.bf16 %v515_v6, %v515_v6  ;;  %v1376_v26 = vld [vmem:[%s501_s19] sm:$0xff]   ;;  %v1386_v40 = vld [vmem:[%s1798_s6 + $0x48] sm:$0xff]   ;;  %s1748_s19 = scalar_lea.hbm %s1805_s13, %s1270_s20  ;;  %s1464_s29 = smov [#allocation2]  }
  0x1f   : > { %v761_v27 = vld [vmem:[%s506_s16] sm:$0xff]  ;;  %s511_s16 = scalar_lea.vmem %s1804_s12, %s1268_s22  ;;  %s1217_s22 = sshll.u32 %s484_s24, 4 }
  0x20   : > { %1239 = vmatprep.mubr.msk.bf16.mxu0 %vm606_vm0, %v518_v8  ;;  %v1360_v29 = vpack.i.bf16 %v762_v28, %v761_v27  ;;  %v1381_v33 = vld [vmem:[%s1798_s6 + $0x20] sm:$0xff]   ;;  %s486_s27 = scalar_lea.vmem [#allocation2], %s1217_s22  ;;  %s1400_s21 = sshll.u32 %s1464_s29, 4  ;;  %s1401_s21 = int_to_ptr.vmem [resolvable:$false] %s1400_s21 }
  0x21   : > { %615 = vmatpush1.bf16.msra.mxu0 %v1367_v3  ;;  %v1385_v37 = vld [vmem:[%s1798_s6] sm:$0xff]  }
  0x22   : > { %616 = vmatprep.subr.bf16.mxu0 %v1458_v1  ;;  %1361 = vrot.lane.b32.xlu1 %v1360_v29, %s1461_s14  ;;  %v1387_v46 = vld [vmem:[%s1798_s6 + $0x40] sm:$0xff]   ;;  %s1090_s14 = sshll.u32 %s486_s27, 4  ;;  %s1750_s14 = int_to_ptr.vmem [resolvable:$true] %s1090_s14 }
  0x23   : > { %v931_v5 = vld [vmem:[%s1800_s8] sm:$0xf]  ;;  %s1396_s17 = scalar_lea.vmem %s1750_s14, 256  ;;  %p1403_p0 = scmp.lt.s32.totalorder %s1750_s14, %s1401_s21 }
  0x24   : > { %v945_v6 = vsel %vm943_vm6, %v931_v5, 0  ;;  %v1258_v29 = vld [vmem:[%s1803_s11] ss:$0 sm:$0xff]  ;;  %p1397_p11 = scmp.ne.s32.totalorder %s1750_s14, %s1396_s17 }
  0x25   : > { %617 = vmatpush1.bf16.msra.mxu0 %v1368_v4 }
  0x26   : > { %618 = vmatprep.subr.bf16.mxu0 %v1458_v1  ;;  %p1398_p12 = pnand %p1397_p11, %p1575_p5 }
  0x28   : > { %p1399_p13 = pneg %p1398_p12 }
  0x29   : > { %619 = vmatpush1.bf16.msra.mxu0 %v1369_v7  ;;  %v1244_v7 = vld [vmem:[%s1799_s7] ss:$0 sm:$0xff] }
  0x2a   : > { %620 = vmatprep.subr.bf16.mxu0 %v1458_v1 }
  0x2d   : > { %621 = vmatpush1.bf16.msra.mxu0 %v1370_v9 }
  0x2e   : > { %622 = vmatprep.subr.bf16.mxu0 %v1458_v1 }
  0x31   : > { %623 = vmatpush1.bf16.msra.mxu0 %v1371_v10 }
  0x32   : > { %624 = vmatprep.subr.bf16.mxu0 %v1458_v1 }
  0x35   : > { %625 = vmatpush1.bf16.msra.mxu0 %v1372_v11 }
  0x36   : > { %638 = vmatprep.subr.bf16.mxu0 %v1458_v1 }
  0x39   : > { %639 = vmatpush2.bf16.msra.mxu0 %v1373_v12 }
  0x3a   : > { %640 = vmatprep.subr.bf16.mxu0 %v1458_v1 }
  0x3d   : > { %641 = vmatpush2.bf16.msra.mxu0 %v1374_v13 }
  0x3e   : > { %1291 = vmatprep.subr.bf16.mxu0 %v1459_v15 }
  0x40   : > { %643 = vmatmul.mubr.bf16.vlgmr.msra.gmra.mxu0 %v517_v14 }
  0x41   : > { %1293 = vmatprep.mubr.msk.bf16.mxu0 %vm1460_vm1, %v1459_v15  ;;  %1292 = vmatpush3.bf16.msra.mxu0 %v945_v6 }
  0x42   : > { %1297 = vmatprep.subr.bf16.mxu0 %v1459_v15 }
  0x94   : > { %v1362_v43 = vpop.permute.xlu1 %1361 }
  0x95   : > { %v1364_v44 = vunpack.i.h.bf16 %v1362_v43  ;;  %v1363_v45 = vunpack.i.l.bf16 %v1362_v43 }
  0x97   : > { %v796_v48 = vpack.c.bf16 %v1364_v44, %v1363_v45 }
 0x100   : > { %v644_v17 = vpop.f32.mrf.mxu0 }
 0x101   : > { %v645_v18 = vadd.f32 %v1228_v16, %v644_v17 }
 0x102   : > { %v646_v19 = vpop.f32.mrf.mxu0 }
 0x103   : > { %v650_v20 = vmax.f32 %v645_v18, 0.0  ;;  %v991_v18 = vld [vmem:[%s1802_s10] sm:$0xf] }
 0x104   : > { %v647_v21 = vpop.f32.mrf.mxu0  ;;  %v1003_v19 = vsel %vm943_vm6, %v991_v18, 0 }
 0x105   : > { %v651_v22 = vpack.c.bf16 %v650_v20, %v650_v20  ;;  %v1256_v20 = vld [vmem:[%s1801_s9] ss:$0 sm:$0xff] }
 0x106   : > { %v648_v23 = vpop.f32.mrf.mxu0 }
 0x107   : > { %v665_v24 = vsel %vm663_vm2, %v651_v22, 0 }
 0x108   : > { %1280 = vmatpush3.bf16.msra.mxu1 %v665_v24 }
 0x109   : > { %1285 = vmatprep.subr.bf16.mxu1 %v1459_v15 }
 0x10b   : > { %1282 = vmatmul.mubr.msk.bf16.vlgmr.msra.gmra.mxu1 %vm659_vm3, %v1377_v25 }
 0x10c   : > { %1286 = vmatpush3.bf16.msra.mxu1 %v665_v24  ;;  %1287 = vmatprep.mubr.msk.bf16.mxu1 %vm1460_vm1, %v1459_v15 }
 0x10d   : > { %887 = vmatprep.subr.bf16.mxu1 %v1458_v1 }
 0x113   : > { %1288 = vmatmul.mubr.msk.bf16.vlgmr.msra.gmra.mxu1 %vm659_vm3, %v1376_v26 }
 0x114   : > { %888 = vmatpush1.bf16.msra.mxu1 %v1378_v30  ;;  %1255 = vmatprep.mubr.msk.bf16.mxu1 %vm606_vm0, %v796_v48 }
 0x115   : > { %889 = vmatprep.subr.bf16.mxu1 %v1458_v1 }
 0x118   : > { %890 = vmatpush1.bf16.msra.mxu1 %v1379_v31 }
 0x119   : > { %891 = vmatprep.subr.bf16.mxu1 %v1458_v1 }
 0x11c   : > { %892 = vmatpush1.bf16.msra.mxu1 %v1380_v32 }
 0x11d   : > { %893 = vmatprep.subr.bf16.mxu1 %v1458_v1 }
 0x120   : > { %894 = vmatpush1.bf16.msra.mxu1 %v1381_v33 }
 0x121   : > { %895 = vmatprep.subr.bf16.mxu1 %v1458_v1 }
 0x124   : > { %896 = vmatpush1.bf16.msra.mxu1 %v1382_v34 }
 0x125   : > { %897 = vmatprep.subr.bf16.mxu1 %v1458_v1 }
 0x128   : > { %898 = vmatpush1.bf16.msra.mxu1 %v1383_v35 }
 0x129   : > { %899 = vmatprep.subr.bf16.mxu1 %v1458_v1 }
 0x12c   : > { %900 = vmatpush1.bf16.msra.mxu1 %v1384_v36 }
 0x12d   : > { %901 = vmatprep.subr.bf16.mxu1 %v1458_v1 }
 0x130   : > { %902 = vmatpush1.bf16.msra.mxu1 %v1385_v37 }
 0x131   : > { %915 = vmatprep.subr.bf16.mxu1 %v1458_v1 }
 0x134   : > { %916 = vmatpush2.bf16.msra.mxu1 %v1386_v40 }
 0x135   : > { %917 = vmatprep.subr.bf16.mxu1 %v1458_v1 }
 0x138   : > { %918 = vmatpush2.bf16.msra.mxu1 %v1387_v46 }
 0x1cb   : > { %v701_v38 = vpop.f32.mrf.mxu1 }
 0x1cd   : > { %v1283_v39 = vpop.f32.mrf.mxu1 }
 0x1cf   : > { %v704_v41 = vpop.f32.mrf.mxu1 }
 0x1d1   : > { %v1284_v42 = vpop.f32.mrf.mxu1 }
 0x1d3   : > { %v752_v47 = vpop.f32.mrf.mxu1 }
 0x1d4   : > { %v759_v54 = vmul.f32 %v752_v47, %v701_v38 }
 0x1d5   : > { %v1289_v49 = vpop.f32.mrf.mxu1 }
 0x1d7   : > { %v755_v50 = vpop.f32.mrf.mxu1 }
 0x1d8   : > { %v760_v51 = vmul.f32 %v755_v50, %v704_v41  ;;  %v1350_v52 = vpack.i.bf16 %v755_v50, %v752_v47 }
 0x1d9   : > { %v1290_v53 = vpop.f32.mrf.mxu1 }
 0x1da   : > { %1351 = vrot.lane.b32.xlu0 %v1350_v52, %s1462_s15  ;;  %v1355_v55 = vpack.i.bf16 %v760_v51, %v759_v54  ;;  %s1402_s15 = scalar_lea.vmem %s1401_s21, 512 }
 0x1db   : > { %p1404_p1 = scmp.lt.s32.totalorder %s1402_s15, %s1396_s17 }
 0x1dd   : > { %p1405_p2 = por %p1404_p1, %p1403_p0 }
 0x1de   : > { %1356 = vrot.lane.b32.xlu0 %v1355_v55, %s1463_s23 }
 0x1df   : > { %p1406_p3 = pnand %p1405_p2, %p1399_p13 }
 0x24c   : > { %v1352_v56 = vpop.permute.xlu0 %1351 }
 0x24d   : > { %v1354_v57 = vunpack.i.h.bf16 %v1352_v56  ;;  %v1353_v58 = vunpack.i.l.bf16 %v1352_v56 }
 0x24f   : > { %v788_v62 = vsel %vm606_vm0, %v704_v41, %v1354_v57  ;;  %v787_v63 = vsel %vm606_vm0, %v701_v38, %v1353_v58 }
 0x250   : > { %v1357_v59 = vpop.permute.xlu0 %1356 }
 0x251   : > { %v1359_v60 = vunpack.i.h.bf16 %v1357_v59  ;;  %v1358_v61 = vunpack.i.l.bf16 %v1357_v59 }
 0x253   : > { %v791_v0 = vsel %vm789_vm4, %v788_v62, %v1359_v60  ;;  %v790_v1 = vsel %vm789_vm4, %v787_v63, %v1358_v61 }
 0x254   : > { %v793_v2 = vsel %vm792_vm5, %v790_v1, %v1363_v45  ;;  %v794_v3 = vsel %vm792_vm5, %v791_v0, %v1364_v44 }
 0x255   : > { %v795_v4 = vpack.c.bf16 %v794_v3, %v793_v2 }
 0x257   : > { %920 = vmatmul.mubr.bf16.vlgmr.msra.gmra.mxu1 %v795_v4 }
 0x317   : > { %v921_v8 = vpop.f32.mrf.mxu1 }
 0x318   : > { %v922_v10 = vadd.f32 %v1244_v7, %v921_v8 }
 0x319   : > { %v923_v9 = vpop.f32.mrf.mxu1 }
 0x31a   : > { %v928_v14 = vmax.f32 %v922_v10, 0.0 }
 0x31b   : > { %v924_v11 = vpop.f32.mrf.mxu1 }
 0x31c   : > { %v925_v12 = vadd.f32 %v1244_v7, %v924_v11 }
 0x31d   : > { %v926_v13 = vpop.f32.mrf.mxu1 }
 0x31e   : > { %v929_v16 = vmax.f32 %v925_v12, 0.0 }
 0x320   : > { %v930_v17 = vpack.c.bf16 %v929_v16, %v928_v14 }
 0x322   : > { %1294 = vmatmul.mubr.msk.bf16.vlgmr.msra.gmra.mxu0 %vm939_vm7, %v930_v17 }
 0x323   : > { %1299 = vmatprep.mubr.msk.bf16.mxu0 %vm1460_vm1, %v1459_v15  ;;  %1298 = vmatpush3.bf16.msra.mxu0 %v1003_v19 }
 0x3e2   : > { %v981_v21 = vpop.f32.mrf.mxu0 }
 0x3e3   : > { %v982_v23 = vadd.f32 %v1256_v20, %v981_v21 }
 0x3e4   : > { %v1295_v22 = vpop.f32.mrf.mxu0 }
 0x3e5   : > { %v988_v27 = vmax.f32 %v982_v23, 0.0 }
 0x3e6   : > { %v984_v24 = vpop.f32.mrf.mxu0 }
 0x3e7   : > { %v985_v25 = vadd.f32 %v1256_v20, %v984_v24 }
 0x3e8   : > { %v1296_v26 = vpop.f32.mrf.mxu0 }
 0x3e9   : > { %v989_v15 = vmax.f32 %v985_v25, 0.0 }
 0x3eb   : > { %v990_v28 = vpack.c.bf16 %v989_v15, %v988_v27 }
 0x3ed   : > { %1300 = vmatmul.mubr.msk.bf16.vlgmr.msra.gmra.mxu0 %vm939_vm7, %v990_v28 }
 0x4ad   : > { %v1039_v30 = vpop.f32.mrf.mxu0 }
 0x4ae   : > { %v1040_v31 = vadd.f32 %v1258_v29, %v1039_v30 }
 0x4af   : > { %v1301_v32 = vpop.f32.mrf.mxu0 }
 0x4b0   : > { %1046 = vst [vmem:[%s511_s16] sm:$0xff] %v1040_v31  ;;  %1048 = vmax.xlane.f32.xlu1 %v1040_v31 }
 0x4b1   : > { %v1042_v33 = vpop.f32.mrf.mxu0 }
 0x4b2   : > { %v1043_v34 = vadd.f32 %v1258_v29, %v1042_v33 }
 0x4b3   : > { %v1302_v35 = vpop.f32.mrf.mxu0 }
 0x4b4   : > { %1047 = vst [vmem:[%s511_s16 + $0x8] sm:$0xff] %v1043_v34  ;;  %1050 = vmax.xlane.f32.xlu0 %v1043_v34 }
 0x539   : > { %v1049_v36 = vpop.xlane.xlu1 %1048 }
 0x53a   : > { %v1052_v37 = vsub.f32 %v1040_v31, %v1049_v36 }
 0x53c   : > { %v1054_v38 = vmul.f32 1.442695, %v1052_v37 }
 0x53d   : > { %v1051_v39 = vpop.xlane.xlu0 %1050 }
 0x53e   : > { %1388 = vpow2.f32 %v1054_v38  ;;  %v1053_v40 = vsub.f32 %v1043_v34, %v1051_v39 }
 0x540   : > { %v1056_v41 = vmul.f32 1.442695, %v1053_v40 }
 0x542   : > { %1390 = vpow2.f32 %v1056_v41 }
 0x54b   : > { %v1389_v42 = vpop.eup %1388 }
 0x54c   : > { %1058 = vadd.xlane.f32.xlu0 %v1389_v42 }
 0x54f   : > { %v1391_v43 = vpop.eup %1390 }
 0x550   : > { %1060 = vadd.xlane.f32.xlu1 %v1391_v43 }
 0x5d5   : > { %v1059_v44 = vpop.xlane.xlu0 %1058 }
 0x5d6   : > { %1392 = vrcp.f32 %v1059_v44 }
 0x5d9   : > { %v1061_v45 = vpop.xlane.xlu1 %1060 }
 0x5da   : > { %1394 = vrcp.f32 %v1061_v45 }
 0x5e3   : > { %v1393_v46 = vpop.eup %1392 }
 0x5e4   : > { %v1064_v47 = vmul.f32 %v1393_v46, %v1389_v42 }
 0x5e6   : > { %1066 = vst [vmem:[%s486_s27] sm:$0xff] %v1064_v47 }
 0x5e7   : > { %v1395_v48 = vpop.eup %1394 }
 0x5e8   : > { %v1065_v49 = vmul.f32 %v1395_v48, %v1391_v43 }
 0x5ea   : > { %1067 = vst [vmem:[%s486_s27 + $0x8] sm:$0xff] %v1065_v49 }
 0x5eb   : > { %1409 = shalt.err (!%p1406_p3)
}
 0x5ec   : > { %s1410_s23 = scalar_lea.hbm %s1748_s19, 256  ;;  %s1414_s22 = scalar_lea.hbm %s1805_s13, 512 }
 0x5ed   : > { %p1411_p4 = scmp.ne.s32.totalorder %s1748_s19, %s1410_s23  ;;  %p1415_p9 = scmp.lt.s32.totalorder %s1748_s19, %s1805_s13 }
 0x5ee   : > { %p1416_p10 = scmp.lt.s32.totalorder %s1414_s22, %s1410_s23 }
 0x5ef   : > { %p1412_p7 = pnand %p1411_p4, %p1575_p5 }
 0x5f0   : > { %p1417_p11 = por %p1416_p10, %p1415_p9 }
 0x5f1   : > { %p1413_p8 = pneg %p1412_p7 }
 0x5f3   : > { %p1418_p12 = pnand %p1417_p11, %p1413_p8 }
 0x5f5   : > { %1421 = shalt.err (!%p1418_p12)
}
 0x5f6   : > { %s1465_s25 = smov 128   ;;  %s1466_s30 = smov 8  }
 0x5f7   : > { %1303 = dma.vmem_to_hbm [thread:$0]  (%p1575_p5), %s1750_s14, 256, %s1748_s19, %s1752_s28, %s1465_s25, %s1465_s25, %s1466_s30  }
 0x5f8 PF: > { %s1820_s17 = sld [smem:[#allocation7_spill]] }
 0x5f9   : > { %s1821_s29 = sld [smem:[#allocation5_spill]] }
 0x5fe   : > { %p1309_p13 = scmp.ge.s32.totalorder %s1820_s17, 2 }
 0x5ff   : > { %s1113_s15 = sand.u32 1, %s1821_s29  }
 0x600   : > { %p1306_p0 = pnand %p1309_p13, %p1579_p6  ;;  %s1114_s23 = scalar_lea.sflag [#allocation3], %s1113_s15 }
 0x602   : > { %p1307_p1 = pneg %p1306_p0 }
 0x604   : > { %1439 = dma.done.wait (%p1307_p1), %s1114_s23, 256  }
 0x605   : > { %1441 = vsyncadd (%p1307_p1), %s1114_s23, 4294967040  ;;  %s1823_s28 = sld [smem:[#allocation8_spill]]  ;;  %s1826_s25 = smov %s1448_s26 }
 0x606   : > { %s1824_s16 = sld [smem:[#allocation6_spill]] }
 0x607   : > { %s1825_s27 = sld [smem:[#allocation9_spill]] }
 0x60b   : > { %p24_p2 = scmp.ge.s32.totalorder %s1823_s28, 4  }
 0x60c   : > { %s1827_s26 = smov %s1824_s16 }
 0x60d   :  { %26 = sbr.rel (!%p24_p2) target bundleno = 3 (0x3), region = 124 }
 0x612   :  { %1119 = vsyncpa [#allocation3], 1 }
 0x613   :  { %1121 = vsyncpa [#allocation3 + $0x1], 1 }

</bundles_post_ra>
